<compile_context>
chip_gen: v7x
topology: tpu7x:2x2x1
jax: 0.10.0
libtpu: 0.0.40
codegen_flags: <defaults>
</compile_context>

<pallas_src>
import functools

import jax
import jax.numpy as jnp
from jax import lax
from jax.experimental import pallas as pl
from jax.experimental.pallas import tpu as pltpu

# ---------------- config (consistent with the module) ----------------
N_EMBD = 32
N_HEAD = 4
BLOCK_SIZE = 8          # max sequence length (T)
N_LAYER = 2
VOCAB_SIZE = 64
HEAD_SIZE = N_EMBD // N_HEAD
LN_EPS = 1e-5           # PyTorch nn.LayerNorm default

# ---------------- misc-blob row layout (static offsets) ----------------
MISC_W = max(VOCAB_SIZE, N_EMBD)              # 64 lanes
MISC_TOK_ROW = 0                              # rows [0, V)        : tok_emb (V, C)
MISC_WLM_ROW = VOCAB_SIZE                     # rows [V, V+C)      : lm_head W (C, V)
MISC_HEAD_ROW = VOCAB_SIZE + N_EMBD           # rows [V+C, V+C+8)  : blm | ln_f.w | ln_f.b
MISC_STATIC_ROWS = 104                        # = round_up(V+C+3, 8)


def _round_up(x, m):
    return (x + m - 1) // m * m


# ---------------- in-kernel helpers ----------------
def _layernorm2d(x, w, b):
    # x: (N, C) f32; w, b: (1, C) f32
    mu = jnp.mean(x, axis=-1, keepdims=True)
    var = jnp.mean(jnp.square(x - mu), axis=-1, keepdims=True)
    return (x - mu) * lax.rsqrt(var + LN_EPS) * w + b


# ---------------- fully fused forward kernel ----------------
def gpt_kernel(misc_ref, w_ref, w2_ref, b_ref, o_ref, *, B, T):
    C, V, H, hs = N_EMBD, VOCAB_SIZE, N_HEAD, HEAD_SIZE
    BT = B * T
    BT_pad = _round_up(BT, 8)
    pos_off = MISC_STATIC_ROWS
    idx_off = pos_off + BT_pad
    scale = float(hs) ** -0.5

    # ---- static-offset views into the packed misc blob (single DMA) ----
    tok = misc_ref[0:V, 0:C].astype(jnp.bfloat16)                          # (V, C)
    wlm = misc_ref[MISC_WLM_ROW:MISC_WLM_ROW + C, 0:V].astype(jnp.bfloat16)  # (C, V)
    head = misc_ref[MISC_HEAD_ROW:MISC_HEAD_ROW + 8, 0:V]                  # (8, V)
    blm = head[0:1, :]                                                     # (1, V)
    lnfw, lnfb = head[1:2, 0:C], head[2:3, 0:C]                            # (1, C)
    pos = misc_ref[pos_off:pos_off + BT, 0:C]                              # (BT, C) f32
    ids = misc_ref[idx_off:idx_off + BT, 0:1].astype(jnp.int32)            # (BT, 1)

    # ---- token embedding: one-hot gather on the MXU + pre-tiled pos add ----
    onehot = (ids == lax.broadcasted_iota(jnp.int32, (BT, V), 1)).astype(jnp.bfloat16)
    x = jnp.dot(onehot, tok, preferred_element_type=jnp.float32) + pos     # (BT, C) f32

    # ---- additive causal mask, built once and shared by both layers ----
    row = lax.broadcasted_iota(jnp.int32, (T, T), 0)
    col = lax.broadcasted_iota(jnp.int32, (T, T), 1)
    amask = jnp.where(col <= row, 0.0, -1e30).astype(jnp.float32)          # (T, T)

    # ---- transformer blocks (static unroll, N_LAYER is tiny) ----
    for l in range(N_LAYER):
        wl = w_ref[l]                                  # (C, 8C) bf16: [wqkv | wproj | w1]
        wqkv = wl[:, 0:3 * C]
        wproj = wl[:, 3 * C:4 * C]
        w1 = wl[:, 4 * C:8 * C]
        w2 = w2_ref[l]                                 # (4C, C) bf16
        bl = b_ref[l]                                  # (8, 4C) f32
        ln1w, ln1b = bl[0:1, 0:C], bl[1:2, 0:C]
        ln2w, ln2b = bl[2:3, 0:C], bl[3:4, 0:C]
        bproj, b2 = bl[4:5, 0:C], bl[5:6, 0:C]
        b1 = bl[6:7, :]                                # (1, 4C)

        # --- x = x + multi_head_attention(ln1(x)) ---
        xn = _layernorm2d(x, ln1w, ln1b)                                   # f32
        qkv = jnp.dot(xn.astype(jnp.bfloat16), wqkv,
                      preferred_element_type=jnp.float32)                  # (BT, 3C) f32
        # single head-major relayout for q|k|v together (was 3 separate transposes)
        qkv4 = qkv.reshape(B, T, 3 * H, hs).transpose(0, 2, 1, 3)          # (B, 3H, T, hs)
        q = qkv4[:, 0:H].reshape(B * H, T, hs)
        k = qkv4[:, H:2 * H].reshape(B * H, T, hs)
        v = qkv4[:, 2 * H:3 * H].reshape(B * H, T, hs)

        att = jnp.einsum('bqd,bkd->bqk', q, k,
                         preferred_element_type=jnp.float32) * scale       # (BH, T, T) f32
        att = att + amask[None]
        att = att - jnp.max(att, axis=-1, keepdims=True)
        p = jnp.exp(att)
        # approx reciprocal (EUP slot); use approx=False for tight reference checks
        p = p * pl.reciprocal(jnp.sum(p, axis=-1, keepdims=True), approx=True)
        # TODO(synk): attention / projection / MLP dropout treated as identity (eval mode).
        out = jnp.einsum('bqk,bkd->bqd',
                         p.astype(jnp.bfloat16), v.astype(jnp.bfloat16),
                         preferred_element_type=jnp.float32)               # (BH, T, hs)
        # back to (BT, C) with torch.cat head ordering along channels
        sa = out.reshape(B, H, T, hs).transpose(0, 2, 1, 3).reshape(BT, C)
        sa = jnp.dot(sa.astype(jnp.bfloat16), wproj,
                     preferred_element_type=jnp.float32) + bproj
        x = x + sa

        # --- x = x + feed_forward(ln2(x)) ---
        xn2 = _layernorm2d(x, ln2w, ln2b)
        h1 = jnp.dot(xn2.astype(jnp.bfloat16), w1,
                     preferred_element_type=jnp.float32) + b1
        h1 = jnp.maximum(h1, 0.0)                                          # ReLU
        h2 = jnp.dot(h1.astype(jnp.bfloat16), w2,
                     preferred_element_type=jnp.float32) + b2
        x = x + h2

    # ---- final LayerNorm + lm_head ----
    xn = _layernorm2d(x, lnfw, lnfb)
    logits = jnp.dot(xn.astype(jnp.bfloat16), wlm,
                     preferred_element_type=jnp.float32) + blm             # (BT, V)
    o_ref[...] = logits   # lane-dense store; (B, T, V) reshape done in the wrapper


# ---------------- pallas_call wrapper ----------------
_VMEM = pl.BlockSpec(memory_space=pltpu.MemorySpace.VMEM)


@jax.jit
def gpt_forward(idx, params):
    B, T = idx.shape
    C, V, H, hs = N_EMBD, VOCAB_SIZE, N_HEAD, HEAD_SIZE
    BT = B * T
    BT_pad = _round_up(BT, 8)

    # dynamic rows of the misc blob: pre-tiled positional embedding + token ids
    pos = jnp.tile(params['pos_emb'][:T], (B, 1))                          # (BT, C)
    pos_rows = jnp.zeros((BT_pad, MISC_W), jnp.float32).at[:BT, :C].set(pos)
    idx_rows = jnp.zeros((BT_pad, MISC_W), jnp.float32).at[:BT, 0].set(
        idx.reshape(BT).astype(jnp.float32))                               # exact for ids < 2^24
    misc = jnp.concatenate([params['misc_static'], pos_rows, idx_rows], axis=0)

    # advisory cost hint for XLA scheduling around the custom call
    misc_rows = MISC_STATIC_ROWS + 2 * BT_pad
    flops = 2 * BT * V * C + 2 * BT * C * V                 # embedding + lm_head
    flops += N_LAYER * (2 * BT * C * 3 * C                  # qkv
                        + 2 * 2 * (B * H) * T * T * hs      # scores + PV
                        + 2 * BT * C * C                    # proj
                        + 2 * 2 * BT * C * 4 * C)           # mlp up + down
    transcendentals = N_LAYER * B * H * T * T               # softmax exp
    bytes_accessed = (misc_rows * MISC_W * 4
                      + params['wblob'].size * 2
                      + params['w2blob'].size * 2
                      + params['bblob'].size * 4
                      + BT * V * 4)

    out = pl.pallas_call(
        functools.partial(gpt_kernel, B=B, T=T),
        out_shape=jax.ShapeDtypeStruct((BT, V), jnp.float32),
        in_specs=[_VMEM] * 4,
        out_specs=_VMEM,
        cost_estimate=pl.CostEstimate(flops=flops,
                                      transcendentals=transcendentals,
                                      bytes_accessed=bytes_accessed),
    )(misc, params['wblob'], params['w2blob'], params['bblob'])
    return out.reshape(B, T, V)


# ---------------- parameter init (mirrors _init_weights) + packing ----------------
def init_params(key):
    std = 0.02
    C, V, L = N_EMBD, VOCAB_SIZE, N_LAYER
    keys = iter(jax.random.split(key, 8))
    nrm = lambda shape: std * jax.random.normal(next(keys), shape, jnp.float32)

    tok_emb = nrm((V, C))
    pos_emb = nrm((BLOCK_SIZE, C))
    # per-head q/k/v fused: columns [q_h0..q_h3 | k_h0..k_h3 | v_h0..v_h3], hs-wide blocks
    wqkv = nrm((L, C, 3 * C))
    wproj = nrm((L, C, C))
    w1 = nrm((L, C, 4 * C))
    w2 = nrm((L, 4 * C, C))
    wlm = nrm((C, V))

    # per-layer matmul weights packed column-wise -> one bf16 blob (one DMA)
    wblob = jnp.concatenate([wqkv, wproj, w1], axis=2).astype(jnp.bfloat16)   # (L, C, 8C)
    w2blob = w2.astype(jnp.bfloat16)                                          # (L, 4C, C)

    # per-layer LN params + biases packed into rows of a (L, 8, 4C) f32 blob:
    # row 0 ln1.w | 1 ln1.b | 2 ln2.w | 3 ln2.b | 4 proj.b | 5 mlp-down.b | 6 mlp-up.b
    bblob = jnp.zeros((L, 8, 4 * C), jnp.float32)
    bblob = bblob.at[:, 0, :C].set(1.0)      # ln1.weight
    bblob = bblob.at[:, 2, :C].set(1.0)      # ln2.weight
    # all biases are zero-initialized per _init_weights

    # static part of the misc blob: tok_emb | lm_head W | [blm, ln_f.w, ln_f.b]
    misc_static = jnp.zeros((MISC_STATIC_ROWS, MISC_W), jnp.float32)
    misc_static = misc_static.at[0:V, 0:C].set(tok_emb)
    misc_static = misc_static.at[MISC_WLM_ROW:MISC_WLM_ROW + C, 0:V].set(wlm)
    # MISC_HEAD_ROW + 0: lm_head bias (zeros); +1: ln_f.weight; +2: ln_f.bias (zeros)
    misc_static = misc_static.at[MISC_HEAD_ROW + 1, 0:C].set(1.0)

    return {'misc_static': misc_static, 'pos_emb': pos_emb,
            'wblob': wblob, 'w2blob': w2blob, 'bblob': bblob}


if __name__ == "__main__":
    key = jax.random.PRNGKey(0)
    pkey, dkey = jax.random.split(key)
    params = init_params(pkey)

    B, T = 2, BLOCK_SIZE
    idx = jax.random.randint(dkey, (B, T), 0, VOCAB_SIZE, dtype=jnp.int32)

    logits = gpt_forward(idx, params)
    logits = jax.block_until_ready(logits)
    assert logits.shape == (B, T, VOCAB_SIZE)
    assert bool(jnp.all(jnp.isfinite(logits)))
    print("KERNEL_OK")
</pallas_src>

<mosaic_0001>
module attributes {stable_mosaic.version = 11 : i64} {
  func.func @gpt_kernel(%arg0: memref<136x64xf32, #tpu.memory_space<vmem>>, %arg1: memref<2x32x256xbf16, #tpu.memory_space<vmem>>, %arg2: memref<2x128x32xbf16, #tpu.memory_space<vmem>>, %arg3: memref<2x8x128xf32, #tpu.memory_space<vmem>>, %arg4: memref<16x64xf32, #tpu.memory_space<vmem>>) attributes {dimension_semantics = [], scalar_prefetch = 0 : i64, scratch_operands = 0 : i64, tpu.core_type = #tpu.core_type<tc>} {
    %c0 = arith.constant 0 : index
    %c0_0 = arith.constant 0 : index
    %0 = vector.load %arg0[%c0, %c0_0] : memref<136x64xf32, #tpu.memory_space<vmem>>, vector<64x32xf32>
    %1 = arith.truncf %0 : vector<64x32xf32> to vector<64x32xbf16>
    %c64 = arith.constant 64 : index
    %c0_1 = arith.constant 0 : index
    %2 = vector.load %arg0[%c64, %c0_1] : memref<136x64xf32, #tpu.memory_space<vmem>>, vector<32x64xf32>
    %3 = arith.truncf %2 : vector<32x64xf32> to vector<32x64xbf16>
    %c96 = arith.constant 96 : index
    %c0_2 = arith.constant 0 : index
    %4 = vector.load %arg0[%c96, %c0_2] : memref<136x64xf32, #tpu.memory_space<vmem>>, vector<8x64xf32>
    %5 = vector.extract_strided_slice %4 {offsets = [0, 0], sizes = [1, 64], strides = [1, 1]} : vector<8x64xf32> to vector<1x64xf32>
    %6 = vector.extract_strided_slice %4 {offsets = [1, 0], sizes = [1, 32], strides = [1, 1]} : vector<8x64xf32> to vector<1x32xf32>
    %7 = vector.extract_strided_slice %4 {offsets = [2, 0], sizes = [1, 32], strides = [1, 1]} : vector<8x64xf32> to vector<1x32xf32>
    %c104 = arith.constant 104 : index
    %c0_3 = arith.constant 0 : index
    %8 = vector.load %arg0[%c104, %c0_3] : memref<136x64xf32, #tpu.memory_space<vmem>>, vector<16x32xf32>
    %c120 = arith.constant 120 : index
    %c0_4 = arith.constant 0 : index
    %9 = vector.load %arg0[%c120, %c0_4] : memref<136x64xf32, #tpu.memory_space<vmem>>, vector<16x1xf32>
    %10 = arith.fptosi %9 : vector<16x1xf32> to vector<16x1xi32>
    %11 = tpu.iota {dimensions = array<i32: 1>} : vector<16x64xi32>
    %12 = vector.broadcast %10 : vector<16x1xi32> to vector<16x64xi32>
    %13 = arith.cmpi eq, %12, %11 : vector<16x64xi32>
    %14 = arith.extui %13 : vector<16x64xi1> to vector<16x64xi32>
    %15 = arith.sitofp %14 : vector<16x64xi32> to vector<16x64xf32>
    %16 = arith.truncf %15 : vector<16x64xf32> to vector<16x64xbf16>
    %cst = arith.constant dense<0.000000e+00> : vector<16x32xf32>
    %17 = tpu.matmul %16, %1, %cst {dimension_numbers = #tpu.dot_dimension_numbers<[1], [0], [0], [1], [0, 0, 1, 1], [], []>} : vector<16x64xbf16>, vector<64x32xbf16>, vector<16x32xf32> -> vector<16x32xf32>
    %18 = arith.addf %17, %8 : vector<16x32xf32>
    %19 = tpu.iota {dimensions = array<i32: 0>} : vector<8x8xi32>
    %20 = tpu.iota {dimensions = array<i32: 1>} : vector<8x8xi32>
    %21 = arith.cmpi sle, %20, %19 : vector<8x8xi32>
    %cst_5 = arith.constant 0.000000e+00 : f32
    %cst_6 = arith.constant -1.000000e+30 : f32
    %22 = vector.broadcast %cst_5 : f32 to vector<8x8xf32>
    %23 = vector.broadcast %cst_6 : f32 to vector<8x8xf32>
    %24 = arith.select %21, %22, %23 : vector<8x8xi1>, vector<8x8xf32>
    %c0_7 = arith.constant 0 : index
    %c0_8 = arith.constant 0 : index
    %c0_9 = arith.constant 0 : index
    %25 = vector.load %arg1[%c0_7, %c0_8, %c0_9] : memref<2x32x256xbf16, #tpu.memory_space<vmem>>, vector<1x32x256xbf16>
    %26 = vector.shape_cast %25 : vector<1x32x256xbf16> to vector<32x256xbf16>
    %27 = vector.extract_strided_slice %26 {offsets = [0, 0], sizes = [32, 96], strides = [1, 1]} : vector<32x256xbf16> to vector<32x96xbf16>
    %28 = vector.extract_strided_slice %26 {offsets = [0, 96], sizes = [32, 32], strides = [1, 1]} : vector<32x256xbf16> to vector<32x32xbf16>
    %29 = vector.extract_strided_slice %26 {offsets = [0, 128], sizes = [32, 128], strides = [1, 1]} : vector<32x256xbf16> to vector<32x128xbf16>
    %c0_10 = arith.constant 0 : index
    %c0_11 = arith.constant 0 : index
    %c0_12 = arith.constant 0 : index
    %30 = vector.load %arg2[%c0_10, %c0_11, %c0_12] : memref<2x128x32xbf16, #tpu.memory_space<vmem>>, vector<1x128x32xbf16>
    %31 = vector.shape_cast %30 : vector<1x128x32xbf16> to vector<128x32xbf16>
    %c0_13 = arith.constant 0 : index
    %c0_14 = arith.constant 0 : index
    %c0_15 = arith.constant 0 : index
    %32 = vector.load %arg3[%c0_13, %c0_14, %c0_15] : memref<2x8x128xf32, #tpu.memory_space<vmem>>, vector<1x8x128xf32>
    %33 = vector.shape_cast %32 : vector<1x8x128xf32> to vector<8x128xf32>
    %34 = vector.extract_strided_slice %33 {offsets = [0, 0], sizes = [1, 32], strides = [1, 1]} : vector<8x128xf32> to vector<1x32xf32>
    %35 = vector.extract_strided_slice %33 {offsets = [1, 0], sizes = [1, 32], strides = [1, 1]} : vector<8x128xf32> to vector<1x32xf32>
    %36 = vector.extract_strided_slice %33 {offsets = [2, 0], sizes = [1, 32], strides = [1, 1]} : vector<8x128xf32> to vector<1x32xf32>
    %37 = vector.extract_strided_slice %33 {offsets = [3, 0], sizes = [1, 32], strides = [1, 1]} : vector<8x128xf32> to vector<1x32xf32>
    %38 = vector.extract_strided_slice %33 {offsets = [4, 0], sizes = [1, 32], strides = [1, 1]} : vector<8x128xf32> to vector<1x32xf32>
    %39 = vector.extract_strided_slice %33 {offsets = [5, 0], sizes = [1, 32], strides = [1, 1]} : vector<8x128xf32> to vector<1x32xf32>
    %40 = vector.extract_strided_slice %33 {offsets = [6, 0], sizes = [1, 128], strides = [1, 1]} : vector<8x128xf32> to vector<1x128xf32>
    %cst_16 = arith.constant dense<0.000000e+00> : vector<16xf32>
    %41 = vector.multi_reduction <add>, %18, %cst_16 [1] : vector<16x32xf32> to vector<16xf32>
    %42 = vector.shape_cast %41 : vector<16xf32> to vector<16x1xf32>
    %cst_17 = arith.constant 3.200000e+01 : f32
    %43 = vector.broadcast %cst_17 : f32 to vector<16x1xf32>
    %44 = arith.divf %42, %43 : vector<16x1xf32>
    %45 = vector.broadcast %44 : vector<16x1xf32> to vector<16x32xf32>
    %46 = arith.subf %18, %45 : vector<16x32xf32>
    %47 = arith.mulf %46, %46 : vector<16x32xf32>
    %cst_18 = arith.constant dense<0.000000e+00> : vector<16xf32>
    %48 = vector.multi_reduction <add>, %47, %cst_18 [1] : vector<16x32xf32> to vector<16xf32>
    %49 = vector.shape_cast %48 : vector<16xf32> to vector<16x1xf32>
    %cst_19 = arith.constant 3.200000e+01 : f32
    %50 = vector.broadcast %cst_19 : f32 to vector<16x1xf32>
    %51 = arith.divf %49, %50 : vector<16x1xf32>
    %52 = vector.broadcast %44 : vector<16x1xf32> to vector<16x32xf32>
    %53 = arith.subf %18, %52 : vector<16x32xf32>
    %cst_20 = arith.constant 9.99999974E-6 : f32
    %54 = vector.broadcast %cst_20 : f32 to vector<16x1xf32>
    %55 = arith.addf %51, %54 : vector<16x1xf32>
    %56 = math.rsqrt %55 : vector<16x1xf32>
    %57 = vector.broadcast %56 : vector<16x1xf32> to vector<16x32xf32>
    %58 = arith.mulf %53, %57 : vector<16x32xf32>
    %59 = vector.broadcast %34 : vector<1x32xf32> to vector<16x32xf32>
    %60 = arith.mulf %58, %59 : vector<16x32xf32>
    %61 = vector.broadcast %35 : vector<1x32xf32> to vector<16x32xf32>
    %62 = arith.addf %60, %61 : vector<16x32xf32>
    %63 = arith.truncf %62 : vector<16x32xf32> to vector<16x32xbf16>
    %cst_21 = arith.constant dense<0.000000e+00> : vector<16x96xf32>
    %64 = tpu.matmul %63, %27, %cst_21 {dimension_numbers = #tpu.dot_dimension_numbers<[1], [0], [0], [1], [0, 0, 1, 1], [], []>} : vector<16x32xbf16>, vector<32x96xbf16>, vector<16x96xf32> -> vector<16x96xf32>
    %65 = vector.shape_cast %64 : vector<16x96xf32> to vector<2x8x12x8xf32>
    %66 = tpu.transpose %65, [0, 2, 1, 3] : vector<2x8x12x8xf32> -> vector<2x12x8x8xf32>
    %67 = vector.extract_strided_slice %66 {offsets = [0, 0, 0, 0], sizes = [2, 4, 8, 8], strides = [1, 1, 1, 1]} : vector<2x12x8x8xf32> to vector<2x4x8x8xf32>
    %68 = vector.shape_cast %67 : vector<2x4x8x8xf32> to vector<8x8x8xf32>
    %69 = vector.extract_strided_slice %66 {offsets = [0, 4, 0, 0], sizes = [2, 4, 8, 8], strides = [1, 1, 1, 1]} : vector<2x12x8x8xf32> to vector<2x4x8x8xf32>
    %70 = vector.shape_cast %69 : vector<2x4x8x8xf32> to vector<8x8x8xf32>
    %71 = vector.extract_strided_slice %66 {offsets = [0, 8, 0, 0], sizes = [2, 4, 8, 8], strides = [1, 1, 1, 1]} : vector<2x12x8x8xf32> to vector<2x4x8x8xf32>
    %72 = vector.shape_cast %71 : vector<2x4x8x8xf32> to vector<8x8x8xf32>
    "tpu.trace_start"() <{level = 10 : i32, message = "bqd,bkd->bqk"}> : () -> ()
    %cst_22 = arith.constant dense<0.000000e+00> : vector<8x8x8xf32>
    %73 = tpu.matmul %68, %70, %cst_22 {dimension_numbers = #tpu.dot_dimension_numbers<[2], [2], [1], [1], [0, 0, 0, 1, 1, 1], [0], [0]>} : vector<8x8x8xf32>, vector<8x8x8xf32>, vector<8x8x8xf32> -> vector<8x8x8xf32>
    "tpu.trace_stop"() : () -> ()
    %cst_23 = arith.constant 0.353553385 : f32
    %74 = vector.broadcast %cst_23 : f32 to vector<8x8x8xf32>
    %75 = arith.mulf %73, %74 : vector<8x8x8xf32>
    %76 = vector.shape_cast %24 : vector<8x8xf32> to vector<1x8x8xf32>
    %77 = vector.broadcast %76 : vector<1x8x8xf32> to vector<8x8x8xf32>
    %78 = arith.addf %75, %77 : vector<8x8x8xf32>
    %cst_24 = arith.constant dense<0xFF800000> : vector<8x8xf32>
    %79 = vector.multi_reduction <maximumf>, %78, %cst_24 [2] : vector<8x8x8xf32> to vector<8x8xf32>
    %80 = vector.shape_cast %79 : vector<8x8xf32> to vector<8x8x1xf32>
    %81 = vector.broadcast %80 : vector<8x8x1xf32> to vector<8x8x8xf32>
    %82 = arith.subf %78, %81 : vector<8x8x8xf32>
    %83 = math.exp %82 : vector<8x8x8xf32>
    %cst_25 = arith.constant dense<0.000000e+00> : vector<8x8xf32>
    %84 = vector.multi_reduction <add>, %83, %cst_25 [2] : vector<8x8x8xf32> to vector<8x8xf32>
    %85 = vector.shape_cast %84 : vector<8x8xf32> to vector<8x8x1xf32>
    %86 = tpu.reciprocal %85 {approx = true} : vector<8x8x1xf32> -> vector<8x8x1xf32>
    %87 = vector.broadcast %86 : vector<8x8x1xf32> to vector<8x8x8xf32>
    %88 = arith.mulf %83, %87 : vector<8x8x8xf32>
    %89 = arith.truncf %88 : vector<8x8x8xf32> to vector<8x8x8xbf16>
    %90 = arith.truncf %72 : vector<8x8x8xf32> to vector<8x8x8xbf16>
    "tpu.trace_start"() <{level = 10 : i32, message = "bqk,bkd->bqd"}> : () -> ()
    %cst_26 = arith.constant dense<0.000000e+00> : vector<8x8x8xf32>
    %91 = tpu.matmul %89, %90, %cst_26 {dimension_numbers = #tpu.dot_dimension_numbers<[2], [1], [1], [2], [0, 0, 0, 1, 1, 2], [0], [0]>} : vector<8x8x8xbf16>, vector<8x8x8xbf16>, vector<8x8x8xf32> -> vector<8x8x8xf32>
    "tpu.trace_stop"() : () -> ()
    %92 = vector.shape_cast %91 : vector<8x8x8xf32> to vector<2x4x8x8xf32>
    %93 = tpu.transpose %92, [0, 2, 1, 3] : vector<2x4x8x8xf32> -> vector<2x8x4x8xf32>
    %94 = vector.shape_cast %93 : vector<2x8x4x8xf32> to vector<16x32xf32>
    %95 = arith.truncf %94 : vector<16x32xf32> to vector<16x32xbf16>
    %cst_27 = arith.constant dense<0.000000e+00> : vector<16x32xf32>
    %96 = tpu.matmul %95, %28, %cst_27 {dimension_numbers = #tpu.dot_dimension_numbers<[1], [0], [0], [1], [0, 0, 1, 1], [], []>} : vector<16x32xbf16>, vector<32x32xbf16>, vector<16x32xf32> -> vector<16x32xf32>
    %97 = vector.broadcast %38 : vector<1x32xf32> to vector<16x32xf32>
    %98 = arith.addf %96, %97 : vector<16x32xf32>
    %99 = arith.addf %18, %98 : vector<16x32xf32>
    %cst_28 = arith.constant dense<0.000000e+00> : vector<16xf32>
    %100 = vector.multi_reduction <add>, %99, %cst_28 [1] : vector<16x32xf32> to vector<16xf32>
    %101 = vector.shape_cast %100 : vector<16xf32> to vector<16x1xf32>
    %cst_29 = arith.constant 3.200000e+01 : f32
    %102 = vector.broadcast %cst_29 : f32 to vector<16x1xf32>
    %103 = arith.divf %101, %102 : vector<16x1xf32>
    %104 = vector.broadcast %103 : vector<16x1xf32> to vector<16x32xf32>
    %105 = arith.subf %99, %104 : vector<16x32xf32>
    %106 = arith.mulf %105, %105 : vector<16x32xf32>
    %cst_30 = arith.constant dense<0.000000e+00> : vector<16xf32>
    %107 = vector.multi_reduction <add>, %106, %cst_30 [1] : vector<16x32xf32> to vector<16xf32>
    %108 = vector.shape_cast %107 : vector<16xf32> to vector<16x1xf32>
    %cst_31 = arith.constant 3.200000e+01 : f32
    %109 = vector.broadcast %cst_31 : f32 to vector<16x1xf32>
    %110 = arith.divf %108, %109 : vector<16x1xf32>
    %111 = vector.broadcast %103 : vector<16x1xf32> to vector<16x32xf32>
    %112 = arith.subf %99, %111 : vector<16x32xf32>
    %cst_32 = arith.constant 9.99999974E-6 : f32
    %113 = vector.broadcast %cst_32 : f32 to vector<16x1xf32>
    %114 = arith.addf %110, %113 : vector<16x1xf32>
    %115 = math.rsqrt %114 : vector<16x1xf32>
    %116 = vector.broadcast %115 : vector<16x1xf32> to vector<16x32xf32>
    %117 = arith.mulf %112, %116 : vector<16x32xf32>
    %118 = vector.broadcast %36 : vector<1x32xf32> to vector<16x32xf32>
    %119 = arith.mulf %117, %118 : vector<16x32xf32>
    %120 = vector.broadcast %37 : vector<1x32xf32> to vector<16x32xf32>
    %121 = arith.addf %119, %120 : vector<16x32xf32>
    %122 = arith.truncf %121 : vector<16x32xf32> to vector<16x32xbf16>
    %cst_33 = arith.constant dense<0.000000e+00> : vector<16x128xf32>
    %123 = tpu.matmul %122, %29, %cst_33 {dimension_numbers = #tpu.dot_dimension_numbers<[1], [0], [0], [1], [0, 0, 1, 1], [], []>} : vector<16x32xbf16>, vector<32x128xbf16>, vector<16x128xf32> -> vector<16x128xf32>
    %124 = vector.broadcast %40 : vector<1x128xf32> to vector<16x128xf32>
    %125 = arith.addf %123, %124 : vector<16x128xf32>
    %cst_34 = arith.constant 0.000000e+00 : f32
    %126 = vector.broadcast %cst_34 : f32 to vector<16x128xf32>
    %127 = arith.maximumf %125, %126 : vector<16x128xf32>
    %128 = arith.truncf %127 : vector<16x128xf32> to vector<16x128xbf16>
    %cst_35 = arith.constant dense<0.000000e+00> : vector<16x32xf32>
    %129 = tpu.matmul %128, %31, %cst_35 {dimension_numbers = #tpu.dot_dimension_numbers<[1], [0], [0], [1], [0, 0, 1, 1], [], []>} : vector<16x128xbf16>, vector<128x32xbf16>, vector<16x32xf32> -> vector<16x32xf32>
    %130 = vector.broadcast %39 : vector<1x32xf32> to vector<16x32xf32>
    %131 = arith.addf %129, %130 : vector<16x32xf32>
    %132 = arith.addf %99, %131 : vector<16x32xf32>
    %c1 = arith.constant 1 : index
    %c0_36 = arith.constant 0 : index
    %c0_37 = arith.constant 0 : index
    %133 = vector.load %arg1[%c1, %c0_36, %c0_37] : memref<2x32x256xbf16, #tpu.memory_space<vmem>>, vector<1x32x256xbf16>
    %134 = vector.shape_cast %133 : vector<1x32x256xbf16> to vector<32x256xbf16>
    %135 = vector.extract_strided_slice %134 {offsets = [0, 0], sizes = [32, 96], strides = [1, 1]} : vector<32x256xbf16> to vector<32x96xbf16>
    %136 = vector.extract_strided_slice %134 {offsets = [0, 96], sizes = [32, 32], strides = [1, 1]} : vector<32x256xbf16> to vector<32x32xbf16>
    %137 = vector.extract_strided_slice %134 {offsets = [0, 128], sizes = [32, 128], strides = [1, 1]} : vector<32x256xbf16> to vector<32x128xbf16>
    %c1_38 = arith.constant 1 : index
    %c0_39 = arith.constant 0 : index
    %c0_40 = arith.constant 0 : index
    %138 = vector.load %arg2[%c1_38, %c0_39, %c0_40] : memref<2x128x32xbf16, #tpu.memory_space<vmem>>, vector<1x128x32xbf16>
    %139 = vector.shape_cast %138 : vector<1x128x32xbf16> to vector<128x32xbf16>
    %c1_41 = arith.constant 1 : index
    %c0_42 = arith.constant 0 : index
    %c0_43 = arith.constant 0 : index
    %140 = vector.load %arg3[%c1_41, %c0_42, %c0_43] : memref<2x8x128xf32, #tpu.memory_space<vmem>>, vector<1x8x128xf32>
    %141 = vector.shape_cast %140 : vector<1x8x128xf32> to vector<8x128xf32>
    %142 = vector.extract_strided_slice %141 {offsets = [0, 0], sizes = [1, 32], strides = [1, 1]} : vector<8x128xf32> to vector<1x32xf32>
    %143 = vector.extract_strided_slice %141 {offsets = [1, 0], sizes = [1, 32], strides = [1, 1]} : vector<8x128xf32> to vector<1x32xf32>
    %144 = vector.extract_strided_slice %141 {offsets = [2, 0], sizes = [1, 32], strides = [1, 1]} : vector<8x128xf32> to vector<1x32xf32>
    %145 = vector.extract_strided_slice %141 {offsets = [3, 0], sizes = [1, 32], strides = [1, 1]} : vector<8x128xf32> to vector<1x32xf32>
    %146 = vector.extract_strided_slice %141 {offsets = [4, 0], sizes = [1, 32], strides = [1, 1]} : vector<8x128xf32> to vector<1x32xf32>
    %147 = vector.extract_strided_slice %141 {offsets = [5, 0], sizes = [1, 32], strides = [1, 1]} : vector<8x128xf32> to vector<1x32xf32>
    %148 = vector.extract_strided_slice %141 {offsets = [6, 0], sizes = [1, 128], strides = [1, 1]} : vector<8x128xf32> to vector<1x128xf32>
    %cst_44 = arith.constant dense<0.000000e+00> : vector<16xf32>
    %149 = vector.multi_reduction <add>, %132, %cst_44 [1] : vector<16x32xf32> to vector<16xf32>
    %150 = vector.shape_cast %149 : vector<16xf32> to vector<16x1xf32>
    %cst_45 = arith.constant 3.200000e+01 : f32
    %151 = vector.broadcast %cst_45 : f32 to vector<16x1xf32>
    %152 = arith.divf %150, %151 : vector<16x1xf32>
    %153 = vector.broadcast %152 : vector<16x1xf32> to vector<16x32xf32>
    %154 = arith.subf %132, %153 : vector<16x32xf32>
    %155 = arith.mulf %154, %154 : vector<16x32xf32>
    %cst_46 = arith.constant dense<0.000000e+00> : vector<16xf32>
    %156 = vector.multi_reduction <add>, %155, %cst_46 [1] : vector<16x32xf32> to vector<16xf32>
    %157 = vector.shape_cast %156 : vector<16xf32> to vector<16x1xf32>
    %cst_47 = arith.constant 3.200000e+01 : f32
    %158 = vector.broadcast %cst_47 : f32 to vector<16x1xf32>
    %159 = arith.divf %157, %158 : vector<16x1xf32>
    %160 = vector.broadcast %152 : vector<16x1xf32> to vector<16x32xf32>
    %161 = arith.subf %132, %160 : vector<16x32xf32>
    %cst_48 = arith.constant 9.99999974E-6 : f32
    %162 = vector.broadcast %cst_48 : f32 to vector<16x1xf32>
    %163 = arith.addf %159, %162 : vector<16x1xf32>
    %164 = math.rsqrt %163 : vector<16x1xf32>
    %165 = vector.broadcast %164 : vector<16x1xf32> to vector<16x32xf32>
    %166 = arith.mulf %161, %165 : vector<16x32xf32>
    %167 = vector.broadcast %142 : vector<1x32xf32> to vector<16x32xf32>
    %168 = arith.mulf %166, %167 : vector<16x32xf32>
    %169 = vector.broadcast %143 : vector<1x32xf32> to vector<16x32xf32>
    %170 = arith.addf %168, %169 : vector<16x32xf32>
    %171 = arith.truncf %170 : vector<16x32xf32> to vector<16x32xbf16>
    %cst_49 = arith.constant dense<0.000000e+00> : vector<16x96xf32>
    %172 = tpu.matmul %171, %135, %cst_49 {dimension_numbers = #tpu.dot_dimension_numbers<[1], [0], [0], [1], [0, 0, 1, 1], [], []>} : vector<16x32xbf16>, vector<32x96xbf16>, vector<16x96xf32> -> vector<16x96xf32>
    %173 = vector.shape_cast %172 : vector<16x96xf32> to vector<2x8x12x8xf32>
    %174 = tpu.transpose %173, [0, 2, 1, 3] : vector<2x8x12x8xf32> -> vector<2x12x8x8xf32>
    %175 = vector.extract_strided_slice %174 {offsets = [0, 0, 0, 0], sizes = [2, 4, 8, 8], strides = [1, 1, 1, 1]} : vector<2x12x8x8xf32> to vector<2x4x8x8xf32>
    %176 = vector.shape_cast %175 : vector<2x4x8x8xf32> to vector<8x8x8xf32>
    %177 = vector.extract_strided_slice %174 {offsets = [0, 4, 0, 0], sizes = [2, 4, 8, 8], strides = [1, 1, 1, 1]} : vector<2x12x8x8xf32> to vector<2x4x8x8xf32>
    %178 = vector.shape_cast %177 : vector<2x4x8x8xf32> to vector<8x8x8xf32>
    %179 = vector.extract_strided_slice %174 {offsets = [0, 8, 0, 0], sizes = [2, 4, 8, 8], strides = [1, 1, 1, 1]} : vector<2x12x8x8xf32> to vector<2x4x8x8xf32>
    %180 = vector.shape_cast %179 : vector<2x4x8x8xf32> to vector<8x8x8xf32>
    "tpu.trace_start"() <{level = 10 : i32, message = "bqd,bkd->bqk"}> : () -> ()
    %cst_50 = arith.constant dense<0.000000e+00> : vector<8x8x8xf32>
    %181 = tpu.matmul %176, %178, %cst_50 {dimension_numbers = #tpu.dot_dimension_numbers<[2], [2], [1], [1], [0, 0, 0, 1, 1, 1], [0], [0]>} : vector<8x8x8xf32>, vector<8x8x8xf32>, vector<8x8x8xf32> -> vector<8x8x8xf32>
    "tpu.trace_stop"() : () -> ()
    %cst_51 = arith.constant 0.353553385 : f32
    %182 = vector.broadcast %cst_51 : f32 to vector<8x8x8xf32>
    %183 = arith.mulf %181, %182 : vector<8x8x8xf32>
    %184 = vector.shape_cast %24 : vector<8x8xf32> to vector<1x8x8xf32>
    %185 = vector.broadcast %184 : vector<1x8x8xf32> to vector<8x8x8xf32>
    %186 = arith.addf %183, %185 : vector<8x8x8xf32>
    %cst_52 = arith.constant dense<0xFF800000> : vector<8x8xf32>
    %187 = vector.multi_reduction <maximumf>, %186, %cst_52 [2] : vector<8x8x8xf32> to vector<8x8xf32>
    %188 = vector.shape_cast %187 : vector<8x8xf32> to vector<8x8x1xf32>
    %189 = vector.broadcast %188 : vector<8x8x1xf32> to vector<8x8x8xf32>
    %190 = arith.subf %186, %189 : vector<8x8x8xf32>
    %191 = math.exp %190 : vector<8x8x8xf32>
    %cst_53 = arith.constant dense<0.000000e+00> : vector<8x8xf32>
    %192 = vector.multi_reduction <add>, %191, %cst_53 [2] : vector<8x8x8xf32> to vector<8x8xf32>
    %193 = vector.shape_cast %192 : vector<8x8xf32> to vector<8x8x1xf32>
    %194 = tpu.reciprocal %193 {approx = true} : vector<8x8x1xf32> -> vector<8x8x1xf32>
    %195 = vector.broadcast %194 : vector<8x8x1xf32> to vector<8x8x8xf32>
    %196 = arith.mulf %191, %195 : vector<8x8x8xf32>
    %197 = arith.truncf %196 : vector<8x8x8xf32> to vector<8x8x8xbf16>
    %198 = arith.truncf %180 : vector<8x8x8xf32> to vector<8x8x8xbf16>
    "tpu.trace_start"() <{level = 10 : i32, message = "bqk,bkd->bqd"}> : () -> ()
    %cst_54 = arith.constant dense<0.000000e+00> : vector<8x8x8xf32>
    %199 = tpu.matmul %197, %198, %cst_54 {dimension_numbers = #tpu.dot_dimension_numbers<[2], [1], [1], [2], [0, 0, 0, 1, 1, 2], [0], [0]>} : vector<8x8x8xbf16>, vector<8x8x8xbf16>, vector<8x8x8xf32> -> vector<8x8x8xf32>
    "tpu.trace_stop"() : () -> ()
    %200 = vector.shape_cast %199 : vector<8x8x8xf32> to vector<2x4x8x8xf32>
    %201 = tpu.transpose %200, [0, 2, 1, 3] : vector<2x4x8x8xf32> -> vector<2x8x4x8xf32>
    %202 = vector.shape_cast %201 : vector<2x8x4x8xf32> to vector<16x32xf32>
    %203 = arith.truncf %202 : vector<16x32xf32> to vector<16x32xbf16>
    %cst_55 = arith.constant dense<0.000000e+00> : vector<16x32xf32>
    %204 = tpu.matmul %203, %136, %cst_55 {dimension_numbers = #tpu.dot_dimension_numbers<[1], [0], [0], [1], [0, 0, 1, 1], [], []>} : vector<16x32xbf16>, vector<32x32xbf16>, vector<16x32xf32> -> vector<16x32xf32>
    %205 = vector.broadcast %146 : vector<1x32xf32> to vector<16x32xf32>
    %206 = arith.addf %204, %205 : vector<16x32xf32>
    %207 = arith.addf %132, %206 : vector<16x32xf32>
    %cst_56 = arith.constant dense<0.000000e+00> : vector<16xf32>
    %208 = vector.multi_reduction <add>, %207, %cst_56 [1] : vector<16x32xf32> to vector<16xf32>
    %209 = vector.shape_cast %208 : vector<16xf32> to vector<16x1xf32>
    %cst_57 = arith.constant 3.200000e+01 : f32
    %210 = vector.broadcast %cst_57 : f32 to vector<16x1xf32>
    %211 = arith.divf %209, %210 : vector<16x1xf32>
    %212 = vector.broadcast %211 : vector<16x1xf32> to vector<16x32xf32>
    %213 = arith.subf %207, %212 : vector<16x32xf32>
    %214 = arith.mulf %213, %213 : vector<16x32xf32>
    %cst_58 = arith.constant dense<0.000000e+00> : vector<16xf32>
    %215 = vector.multi_reduction <add>, %214, %cst_58 [1] : vector<16x32xf32> to vector<16xf32>
    %216 = vector.shape_cast %215 : vector<16xf32> to vector<16x1xf32>
    %cst_59 = arith.constant 3.200000e+01 : f32
    %217 = vector.broadcast %cst_59 : f32 to vector<16x1xf32>
    %218 = arith.divf %216, %217 : vector<16x1xf32>
    %219 = vector.broadcast %211 : vector<16x1xf32> to vector<16x32xf32>
    %220 = arith.subf %207, %219 : vector<16x32xf32>
    %cst_60 = arith.constant 9.99999974E-6 : f32
    %221 = vector.broadcast %cst_60 : f32 to vector<16x1xf32>
    %222 = arith.addf %218, %221 : vector<16x1xf32>
    %223 = math.rsqrt %222 : vector<16x1xf32>
    %224 = vector.broadcast %223 : vector<16x1xf32> to vector<16x32xf32>
    %225 = arith.mulf %220, %224 : vector<16x32xf32>
    %226 = vector.broadcast %144 : vector<1x32xf32> to vector<16x32xf32>
    %227 = arith.mulf %225, %226 : vector<16x32xf32>
    %228 = vector.broadcast %145 : vector<1x32xf32> to vector<16x32xf32>
    %229 = arith.addf %227, %228 : vector<16x32xf32>
    %230 = arith.truncf %229 : vector<16x32xf32> to vector<16x32xbf16>
    %cst_61 = arith.constant dense<0.000000e+00> : vector<16x128xf32>
    %231 = tpu.matmul %230, %137, %cst_61 {dimension_numbers = #tpu.dot_dimension_numbers<[1], [0], [0], [1], [0, 0, 1, 1], [], []>} : vector<16x32xbf16>, vector<32x128xbf16>, vector<16x128xf32> -> vector<16x128xf32>
    %232 = vector.broadcast %148 : vector<1x128xf32> to vector<16x128xf32>
    %233 = arith.addf %231, %232 : vector<16x128xf32>
    %cst_62 = arith.constant 0.000000e+00 : f32
    %234 = vector.broadcast %cst_62 : f32 to vector<16x128xf32>
    %235 = arith.maximumf %233, %234 : vector<16x128xf32>
    %236 = arith.truncf %235 : vector<16x128xf32> to vector<16x128xbf16>
    %cst_63 = arith.constant dense<0.000000e+00> : vector<16x32xf32>
    %237 = tpu.matmul %236, %139, %cst_63 {dimension_numbers = #tpu.dot_dimension_numbers<[1], [0], [0], [1], [0, 0, 1, 1], [], []>} : vector<16x128xbf16>, vector<128x32xbf16>, vector<16x32xf32> -> vector<16x32xf32>
    %238 = vector.broadcast %147 : vector<1x32xf32> to vector<16x32xf32>
    %239 = arith.addf %237, %238 : vector<16x32xf32>
    %240 = arith.addf %207, %239 : vector<16x32xf32>
    %cst_64 = arith.constant dense<0.000000e+00> : vector<16xf32>
    %241 = vector.multi_reduction <add>, %240, %cst_64 [1] : vector<16x32xf32> to vector<16xf32>
    %242 = vector.shape_cast %241 : vector<16xf32> to vector<16x1xf32>
    %cst_65 = arith.constant 3.200000e+01 : f32
    %243 = vector.broadcast %cst_65 : f32 to vector<16x1xf32>
    %244 = arith.divf %242, %243 : vector<16x1xf32>
    %245 = vector.broadcast %244 : vector<16x1xf32> to vector<16x32xf32>
    %246 = arith.subf %240, %245 : vector<16x32xf32>
    %247 = arith.mulf %246, %246 : vector<16x32xf32>
    %cst_66 = arith.constant dense<0.000000e+00> : vector<16xf32>
    %248 = vector.multi_reduction <add>, %247, %cst_66 [1] : vector<16x32xf32> to vector<16xf32>
    %249 = vector.shape_cast %248 : vector<16xf32> to vector<16x1xf32>
    %cst_67 = arith.constant 3.200000e+01 : f32
    %250 = vector.broadcast %cst_67 : f32 to vector<16x1xf32>
    %251 = arith.divf %249, %250 : vector<16x1xf32>
    %252 = vector.broadcast %244 : vector<16x1xf32> to vector<16x32xf32>
    %253 = arith.subf %240, %252 : vector<16x32xf32>
    %cst_68 = arith.constant 9.99999974E-6 : f32
    %254 = vector.broadcast %cst_68 : f32 to vector<16x1xf32>
    %255 = arith.addf %251, %254 : vector<16x1xf32>
    %256 = math.rsqrt %255 : vector<16x1xf32>
    %257 = vector.broadcast %256 : vector<16x1xf32> to vector<16x32xf32>
    %258 = arith.mulf %253, %257 : vector<16x32xf32>
    %259 = vector.broadcast %6 : vector<1x32xf32> to vector<16x32xf32>
    %260 = arith.mulf %258, %259 : vector<16x32xf32>
    %261 = vector.broadcast %7 : vector<1x32xf32> to vector<16x32xf32>
    %262 = arith.addf %260, %261 : vector<16x32xf32>
    %263 = arith.truncf %262 : vector<16x32xf32> to vector<16x32xbf16>
    %cst_69 = arith.constant dense<0.000000e+00> : vector<16x64xf32>
    %264 = tpu.matmul %263, %3, %cst_69 {dimension_numbers = #tpu.dot_dimension_numbers<[1], [0], [0], [1], [0, 0, 1, 1], [], []>} : vector<16x32xbf16>, vector<32x64xbf16>, vector<16x64xf32> -> vector<16x64xf32>
    %265 = vector.broadcast %5 : vector<1x64xf32> to vector<16x64xf32>
    %266 = arith.addf %264, %265 : vector<16x64xf32>
    %c0_70 = arith.constant 0 : index
    %c0_71 = arith.constant 0 : index
    %267 = vector.load %arg4[%c0_70, %c0_71] : memref<16x64xf32, #tpu.memory_space<vmem>>, vector<16x64xf32>
    tpu.vector_store %arg4[%c0_70, %c0_71], %266 {strides = array<i32>} : memref<16x64xf32, #tpu.memory_space<vmem>>, vector<16x64xf32>,
    return
  }
}

</mosaic_0001>

<bundles_post_ra>
// kernel: gpt_forward.1
= control target key start
LH: loop header
LB: loop body
LE: loop exit
PB: predicated region body
PF: predicated region fallthrough
CT: control target
= control target key end

     0   :  { %v6260_v3 = vmov 0   ;;  %v6261_v6 = vmov 0.0   ;;  %vm6262_vm0 = vmmov 0   ;;  %s7420_s0 = inlined_call_operand.vmem [shape: f32[136,64], index: 0, kind: input, shape index: {}]   ;;  %s7421_s1 = inlined_call_operand.vmem [shape: bf16[2,32,256], index: 1, kind: input, shape index: {}]   ;;  %s7422_s2 = inlined_call_operand.vmem [shape: bf16[2,128,32], index: 2, kind: input, shape index: {}]   ;;  %s7423_s3 = inlined_call_operand.vmem [shape: f32[2,8,128], index: 3, kind: input, shape index: {}]   ;;  %s7424_s4 = inlined_call_operand.hbm [shape: f32[16,64], index: 4, kind: output, shape index: {}]  }
   0x1   :  { %v40_v0 = vld [vmem:[%s7420_s0 + $0x78] sm:$0xff]  ;;  %v41_v1 = vld [vmem:[%s7420_s0 + $0x80] sm:$0xff]  ;;  %6088 = vset.pattern.permute.xlu0 %v6260_v3  ;;  %5777 = vmatprep.subr.bf16.mxu1 %v6261_v6  ;;  %v20_v7 = vld [vmem:[%s7420_s0 + $0x8] sm:$0xff] }
   0x2   :  { %v19_v2 = vld [vmem:[%s7420_s0] sm:$0xff]  ;;  %v6061_v4 = vtrunc.f32 %v40_v0  ;;  %v6063_v5 = vtrunc.f32 %v41_v1  ;;  %v21_v8 = vld [vmem:[%s7420_s0 + $0x10] sm:$0xff]  ;;  %v22_v9 = vld [vmem:[%s7420_s0 + $0x18] sm:$0xff]  ;;  %5797 = vmatprep.subr.mxu0 %v6261_v6  ;;  %5785 = vmatprep.mubr.msk.bf16.mxu1 %vm6262_vm0, %v6261_v6 }
   0x3   :  { %v27_v10 = vpack.c.bf16 %v20_v7, %v19_v2  ;;  %v23_v12 = vld [vmem:[%s7420_s0 + $0x20] sm:$0xff]  ;;  %v24_v13 = vld [vmem:[%s7420_s0 + $0x28] sm:$0xff]  ;;  %v28_v14 = vpack.c.bf16 %v22_v9, %v21_v8  ;;  %v25_v16 = vld [vmem:[%s7420_s0 + $0x30] sm:$0xff]  ;;  %5799 = vmatprep.mubr.msk.f32.mxu0 %vm6262_vm0, %v6261_v6 }
   0x4   :  { %v6062_v11 = vcvt.f32.s32 %v6061_v4  ;;  %v6064_v15 = vcvt.f32.s32 %v6063_v5  ;;  %v26_v17 = vld [vmem:[%s7420_s0 + $0x38] sm:$0xff]  ;;  %v29_v18 = vpack.c.bf16 %v24_v13, %v23_v12 }
   0x5   :  { %5778 = vmatpush3.bf16.msra.mxu1 %v27_v10  ;;  %v30_v19 = vpack.c.bf16 %v26_v17, %v25_v16 }
   0x6   :  { %47 = vperm.xlu0 %6088, %v6062_v11   ;;  %5779 = vmatprep.subr.bf16.mxu1 %v6261_v6 }
   0x9   :  { %5780 = vmatpush3.bf16.msra.mxu1 %v28_v14 }
   0xa   :  { %50 = vperm.xlu0 %6088, %v6064_v15   ;;  %5781 = vmatprep.subr.bf16.mxu1 %v6261_v6 }
   0xd   :  { %5782 = vmatpush3.bf16.msra.mxu1 %v29_v18 }
   0xe   :  { %5783 = vmatprep.subr.bf16.mxu1 %v6261_v6 }
  0x11   :  { %5784 = vmatpush3.bf16.msra.mxu1 %v30_v19 }
  0x12   :  { %5789 = vmatprep.subr.bf16.mxu1 %v6261_v6 }
  0x13   :  { %9 = vsyncpa [#allocation3], 0  ;;  %v44_v20 = vlaneseq  ;;  %vm59_vm3 = vcmask 523264   ;;  %v38_v27 = vld [vmem:[%s7420_s0 + $0x68] sm:$0xff]  ;;  %v39_v29 = vld [vmem:[%s7420_s0 + $0x70] sm:$0xff]  ;;  %vm129_vm4 = vcmask 261120  }
  0x14   :  { %v6119_v47 = vld [vmem:[%s7421_s1] ss:$8 sps:$4 sm:$0xff]   ;;  %v6121_v48 = vld [vmem:[%s7421_s1 + $0x10] ss:$8 sps:$4 sm:$0xff]   ;;  %s6263_s19 = smov 120   ;;  %s6264_s20 = smov 96  }
  0x15   :  { %v6348_v21 = vand.u32 127, %v44_v20  ;;  %v6383_v55 = vshrl.u32 %v44_v20, 7  ;;  %v128_v57 = vld [vmem:[%s7423_s3] sm:$0xff]  ;;  %s6265_s21 = smov 88   ;;  %s6266_s22 = smov 72   ;;  %vm1110_vm5 = vcmask 64512  }
  0x16   :  { %s6267_s23 = smov 80   ;;  %s6268_s24 = smov 112   ;;  %v6271_v12 = vmov 1983009808   ;;  %v6272_v15 = vmov 1934713408  }
  0x17   :  { %v6386_v56 = vsub.s32 0, %v6383_v55  ;;  %v6393_v61 = vsub.s32 1, %v6383_v55  ;;  %s6269_s25 = smov 104   ;;  %s6270_s26 = smov 64   ;;  %v297_v13 = vunpack.c.l.s4 %v6271_v12  ;;  %v361_v16 = vunpack.c.l.s4 %v6272_v15 }
  0x18   :  { %vm106_vm6 = vcmp.le.s32.totalorder %v6348_v21, %v6383_v55  ;;  %s6274_s27 = smov 48   ;;  %s6275_s28 = smov 40   ;;  %vm1842_vm7 = vcmask 1043456   ;;  %vm2506_vm8 = vcmask 130048   ;;  %vm2509_vm9 = vcmask 195584  }
  0x19   :  { %v160_v59 = vrot.slane %v128_v57, %v6386_v56  ;;  %v166_v1 = vrot.slane %v128_v57, %v6393_v61  ;;  %v298_v17 = vunpack.c.0.s8 %v297_v13  ;;  %v362_v19 = vunpack.c.0.s8 %v361_v16  ;;  %s6276_s29 = smov 56   ;;  %s6277_s6 = smov 32  }
  0x1a   :  { %s6278_s7 = smov 16   ;;  %s6279_s8 = smov 8  }
  0x1b   :  { %v6434_v20 = vsub.s32 %v298_v17, %v6383_v55  ;;  %s6280_s9 = smov 24  }
  0x85   :  { %v48_v22 = vpop.permute.xlu0 %47 }
  0x86   :  { %vm52_vm1 = vcmp.eq.s32.totalorder %v48_v22, %v6348_v21 }
  0x87   :  { %v5518_v24 = vsel %vm52_vm1, 1.0, %v6261_v6 }
  0x89   :  { %v51_v23 = vpop.permute.xlu0 %50 }
  0x8a   :  { %vm53_vm2 = vcmp.eq.s32.totalorder %v51_v23, %v6348_v21 }
  0x8b   :  { %v5519_v25 = vsel %vm53_vm2, 1.0, %v6261_v6 }
  0x8c   :  { %v58_v26 = vpack.c.bf16 %v5519_v25, %v5518_v24 }
  0x8e   :  { %5786 = vmatmul.mubr.msk.bf16.vlgmr.msra.gmra.mrb[0].mxu1 %vm59_vm3, %v58_v26 }
  0x8f   :  { %5793 = vmatprep.mubr.msk.bf16.mxu1 %vm6262_vm0, %v6261_v6  ;;  %5790 = vmatpush3.bf16.msra.mxu1 %v6119_v47 }
  0x90   :  { %5791 = vmatprep.subr.bf16.mxu1 %v6261_v6 }
  0x93   :  { %5792 = vmatpush3.bf16.msra.mxu1 %v6121_v48 }
  0x94   :  { %5802 = vmatprep.subr.mxu1 %v6261_v6 }
 0x161   :  { %v97_v28 = vpop.f32.mrb[0].mxu1 }
 0x162   :  { %v6363_v30 = vadd.f32 %v97_v28, %v38_v27  ;;  %v5787_v31 = vpop.f32.mrb[1].mxu1  ;;  %v6437_v27 = vsub.s32 %v362_v19, %v6383_v55 }
 0x163   :  { %v100_v32 = vpop.f32.mrb[2].mxu1 }
 0x164   :  { %v6365_v33 = vadd.f32 %v100_v32, %v39_v29  ;;  %v5788_v34 = vpop.f32.mrb[3].mxu1  ;;  %v130_v35 = vsel %vm129_vm4, %v6363_v30, 0.0 }
 0x165   :  { %131 = vadd.xlane.f32.xlu1 %v130_v35 }
 0x166   :  { %v133_v36 = vsel %vm129_vm4, %v6365_v33, 0.0 }
 0x169   :  { %134 = vadd.xlane.f32.xlu1 %v133_v36 }
 0x1f2   :  { %v132_v37 = vpop.xlane.xlu1 %131 }
 0x1f3   :  { %v137_v38 = vmul.f32 0.03125, %v132_v37 }
 0x1f5   :  { %v139_v39 = vsub.f32 %v6363_v30, %v137_v38 }
 0x1f6   :  { %v135_v40 = vpop.xlane.xlu1 %134 }
 0x1f7   :  { %v138_v41 = vmul.f32 0.03125, %v135_v40  ;;  %v141_v42 = vmul.f32 %v139_v39, %v139_v39 }
 0x1f9   :  { %v140_v43 = vsub.f32 %v6365_v33, %v138_v41  ;;  %v143_v44 = vsel %vm129_vm4, %v141_v42, 0.0 }
 0x1fa   :  { %144 = vadd.xlane.f32.xlu0 %v143_v44 }
 0x1fb   :  { %v142_v45 = vmul.f32 %v140_v43, %v140_v43 }
 0x1fd   :  { %v146_v46 = vsel %vm129_vm4, %v142_v45, 0.0 }
 0x1fe   :  { %147 = vadd.xlane.f32.xlu1 %v146_v46 }
 0x287   :  { %v145_v49 = vpop.xlane.xlu0 %144 }
 0x288   :  { %v149_v50 = vmul.f32 0.03125, %v145_v49 }
 0x28a   :  { %v151_v51 = vadd.f32 1e-05, %v149_v50 }
 0x28b   :  { %v148_v52 = vpop.xlane.xlu1 %147 }
 0x28c   :  { %6147 = vrsqrt.f32 %v151_v51  ;;  %v150_v53 = vmul.f32 0.03125, %v148_v52 }
 0x28e   :  { %v152_v54 = vadd.f32 1e-05, %v150_v53 }
 0x290   :  { %6149 = vrsqrt.f32 %v152_v54 }
 0x296   :  { %v6148_v58 = vpop.eup %6147 }
 0x297   :  { %v155_v60 = vmul.f32 %v6148_v58, %v139_v39 }
 0x299   :  { %v161_v63 = vmul.f32 %v160_v59, %v155_v60 }
 0x29a   :  { %v6150_v62 = vpop.eup %6149 }
 0x29b   :  { %v156_v0 = vmul.f32 %v6150_v62, %v140_v43  ;;  %v167_v3 = vadd.f32 %v166_v1, %v161_v63 }
 0x29d   :  { %v162_v2 = vmul.f32 %v160_v59, %v156_v0 }
 0x29f   :  { %v168_v4 = vadd.f32 %v166_v1, %v162_v2 }
 0x2a1   :  { %v169_v5 = vpack.c.bf16 %v168_v4, %v167_v3 }
 0x2a3   :  { %5794 = vmatmul.mubr.msk.bf16.vlgmr.msra.gmra.mrb[4].mxu1 %vm129_vm4, %v169_v5 }
 0x2a4   :  { %5804 = vmatprep.mubr.msk.f32.mxu1 %vm6262_vm0, %v6261_v6 }
 0x376   :  { %v6399_v7 = vpop.f32.mrb[4].mxu1 }
 0x377   :  { %228 = vrot.lane.b32.xlu0 %v6399_v7, %s6263_s19  ;;  %246 = vrot.lane.b32.xlu1 %v6399_v7, %s6264_s20  ;;  %v5795_v8 = vpop.f32.mrb[5].mxu1 }
 0x378   :  { %v6405_v9 = vpop.f32.mrb[6].mxu1 }
 0x379   :  { %v5796_v10 = vpop.f32.mrb[7].mxu1 }
 0x37b   :  { %252 = vrot.lane.b32.xlu1 %v6399_v7, %s6265_s21  ;;  %266 = vrot.lane.b32.xlu0 %v6405_v9, %s6266_s22 }
 0x37f   :  { %258 = vrot.lane.b32.xlu1 %v6399_v7, %s6267_s23  ;;  %236 = vrot.lane.b32.xlu0 %v6405_v9, %s6268_s24 }
 0x383   :  { %264 = vrot.lane.b32.xlu1 %v6399_v7, %s6266_s22 }
 0x387   :  { %234 = vrot.lane.b32.xlu1 %v6399_v7, %s6268_s24 }
 0x38b   :  { %240 = vrot.lane.b32.xlu1 %v6399_v7, %s6269_s25 }
 0x38f   :  { %248 = vrot.lane.b32.xlu1 %v6405_v9, %s6264_s20 }
 0x393   :  { %254 = vrot.lane.b32.xlu1 %v6405_v9, %s6265_s21 }
 0x397   :  { %260 = vrot.lane.b32.xlu1 %v6405_v9, %s6267_s23 }
 0x39b   :  { %230 = vrot.lane.b32.xlu1 %v6405_v9, %s6263_s19 }
 0x39f   :  { %242 = vrot.lane.b32.xlu1 %v6405_v9, %s6269_s25 }
 0x3a3   :  { %270 = vrot.lane.b32.xlu1 %v6399_v7, %s6270_s26 }
 0x3e9   :  { %v247_v11 = vpop.permute.xlu1 %246  ;;  %v229_v34 = vpop.permute.xlu0 %228 }
 0x3ed   :  { %v253_v14 = vpop.permute.xlu1 %252  ;;  %v267_v51 = vpop.permute.xlu0 %266 }
 0x3f1   :  { %v259_v18 = vpop.permute.xlu1 %258  ;;  %v6459_v13 = vpop.permute.xlu0 %236 }
 0x3f2   :  { %v326_v22 = vcombine.low %v247_v11, %v259_v18  ;;  %v327_v23 = vcombine.high %v247_v11, %v259_v18 }
 0x3f4   :  { %v334_v28 = vrot.slane %v326_v22, %v6434_v20  ;;  %v341_v29 = vrot.slane %v327_v23, %v6434_v20 }
 0x3f5   :  { %v265_v24 = vpop.permute.xlu1 %264 }
 0x3f6   :  { %v342_v25 = vcombine.low %v253_v14, %v265_v24  ;;  %v343_v26 = vcombine.high %v253_v14, %v265_v24 }
 0x3f8   :  { %v350_v31 = vrot.slane %v342_v25, %v6434_v20  ;;  %v357_v32 = vrot.slane %v343_v26, %v6434_v20 }
 0x3f9   :  { %v235_v35 = vpop.permute.xlu1 %234 }
 0x3fa   :  { %v390_v36 = vcombine.low %v334_v28, %v350_v31  ;;  %v391_v37 = vcombine.high %v334_v28, %v350_v31  ;;  %v406_v38 = vcombine.low %v341_v29, %v357_v32  ;;  %v407_v39 = vcombine.high %v341_v29, %v357_v32 }
 0x3fb   :  { %v294_v44 = vcombine.low %v6399_v7, %v235_v35  ;;  %v295_v45 = vcombine.high %v6399_v7, %v235_v35  ;;  %v498_v31 = vcombine.low %v6405_v9, %v6459_v13 }
 0x3fc   :  { %v398_v40 = vrot.slane %v390_v36, %v6437_v27  ;;  %v405_v41 = vrot.slane %v391_v37, %v6437_v27  ;;  %v414_v42 = vrot.slane %v406_v38, %v6437_v27  ;;  %v421_v43 = vrot.slane %v407_v39, %v6437_v27 }
 0x3fd   :  { %v241_v46 = vpop.permute.xlu1 %240  ;;  %v302_v60 = vrot.slane %v294_v44, %v6434_v20  ;;  %v309_v62 = vrot.slane %v295_v45, %v6434_v20 }
 0x3fe   :  { %v5525_v47 = vcombine.low %v398_v40, %v405_v41  ;;  %v5527_v48 = vcombine.high %v398_v40, %v405_v41  ;;  %v5529_v49 = vcombine.low %v414_v42, %v421_v43  ;;  %v5531_v50 = vcombine.high %v414_v42, %v421_v43 }
 0x3ff   :  { %v310_v52 = vcombine.low %v229_v34, %v241_v46  ;;  %v311_v53 = vcombine.high %v229_v34, %v241_v46 }
 0x400   :  { %v717_v54 = vrot.slane %v5525_v47, %v6434_v20  ;;  %v733_v57 = vrot.slane %v5527_v48, %v6434_v20  ;;  %v749_v58 = vrot.slane %v5529_v49, %v6434_v20  ;;  %v765_v59 = vrot.slane %v5531_v50, %v6434_v20 }
 0x401   :  { %v318_v63 = vrot.slane %v310_v52, %v6434_v20  ;;  %v325_v0 = vrot.slane %v311_v53, %v6434_v20  ;;  %v249_v1 = vpop.permute.xlu1 %248 }
 0x402   :  { %v782_v2 = vcombine.low %v717_v54, %v733_v57  ;;  %v814_v3 = vcombine.low %v749_v58, %v765_v59  ;;  %v783_v19 = vcombine.high %v717_v54, %v733_v57  ;;  %v815_v22 = vcombine.high %v749_v58, %v765_v59 }
 0x403   :  { %v358_v4 = vcombine.low %v302_v60, %v318_v63  ;;  %v359_v5 = vcombine.high %v302_v60, %v318_v63  ;;  %v374_v8 = vcombine.low %v309_v62, %v325_v0  ;;  %v375_v10 = vcombine.high %v309_v62, %v325_v0 }
 0x404   :  { %v790_v11 = vrot.slane %v782_v2, %v6437_v27  ;;  %v822_v12 = vrot.slane %v814_v3, %v6437_v27  ;;  %v797_v42 = vrot.slane %v783_v19, %v6437_v27  ;;  %v829_v43 = vrot.slane %v815_v22, %v6437_v27 }
 0x405   :  { %v366_v14 = vrot.slane %v358_v4, %v6437_v27  ;;  %v373_v15 = vrot.slane %v359_v5, %v6437_v27  ;;  %v382_v16 = vrot.slane %v374_v8, %v6437_v27  ;;  %v389_v17 = vrot.slane %v375_v10, %v6437_v27  ;;  %v255_v18 = vpop.permute.xlu1 %254 }
 0x406   :  { %v834_v23 = vcombine.low %v790_v11, %v822_v12  ;;  %v835_v24 = vcombine.high %v790_v11, %v822_v12  ;;  %v546_v32 = vcombine.low %v255_v18, %v267_v51  ;;  %v547_v34 = vcombine.high %v255_v18, %v267_v51 }
 0x407   :  { %v5524_v25 = vcombine.low %v366_v14, %v373_v15  ;;  %v5526_v26 = vcombine.high %v366_v14, %v373_v15  ;;  %v5528_v28 = vcombine.low %v382_v16, %v389_v17  ;;  %v5530_v29 = vcombine.high %v382_v16, %v389_v17 }
 0x408   :  { %5798 = vmatpush3.xpose.msk.msra.mxu0 %vm1110_vm5, %v834_v23  ;;  %5803 = vmatpush3.xpose.msk.msra.mxu1 %vm1110_vm5, %v835_v24  ;;  %v554_v48 = vrot.slane %v546_v32, %v6434_v20  ;;  %v561_v49 = vrot.slane %v547_v34, %v6434_v20  ;;  %v499_v0 = vcombine.high %v6405_v9, %v6459_v13 }
 0x409   :  { %v710_v35 = vrot.slane %v5524_v25, %v6434_v20  ;;  %v726_v36 = vrot.slane %v5526_v26, %v6434_v20  ;;  %v742_v37 = vrot.slane %v5528_v28, %v6434_v20  ;;  %v758_v38 = vrot.slane %v5530_v29, %v6434_v20  ;;  %v261_v39 = vpop.permute.xlu1 %260  ;;  %5807 = vmatprep.subr.mxu0 %v6261_v6 }
 0x40a   :  { %v530_v40 = vcombine.low %v249_v1, %v261_v39  ;;  %v531_v41 = vcombine.high %v249_v1, %v261_v39  ;;  %5812 = vmatprep.subr.mxu1 %v6261_v6  ;;  %v836_v3 = vcombine.low %v797_v42, %v829_v43  ;;  %v506_v11 = vrot.slane %v498_v31, %v6434_v20 }
 0x40b   :  { %v767_v44 = vcombine.high %v710_v35, %v726_v36  ;;  %v799_v45 = vcombine.high %v742_v37, %v758_v38  ;;  %v766_v46 = vcombine.low %v710_v35, %v726_v36  ;;  %v798_v47 = vcombine.low %v742_v37, %v758_v38 }
 0x40c   :  { %v538_v50 = vrot.slane %v530_v40, %v6434_v20  ;;  %v545_v51 = vrot.slane %v531_v41, %v6434_v20  ;;  %v837_v12 = vcombine.high %v797_v42, %v829_v43  ;;  %v513_v29 = vrot.slane %v499_v0, %v6434_v20 }
 0x40d   :  { %v231_v52 = vpop.permute.xlu1 %230  ;;  %v774_v53 = vrot.slane %v766_v46, %v6437_v27  ;;  %v806_v54 = vrot.slane %v798_v47, %v6437_v27  ;;  %v781_v57 = vrot.slane %v767_v44, %v6437_v27  ;;  %v813_v58 = vrot.slane %v799_v45, %v6437_v27 }
 0x40e   :  { %v594_v59 = vcombine.low %v538_v50, %v554_v48  ;;  %v595_v60 = vcombine.high %v538_v50, %v554_v48  ;;  %v610_v62 = vcombine.low %v545_v51, %v561_v49  ;;  %v611_v63 = vcombine.high %v545_v51, %v561_v49 }
 0x40f   :  { %v830_v1 = vcombine.low %v774_v53, %v806_v54  ;;  %v831_v2 = vcombine.high %v774_v53, %v806_v54  ;;  %v832_v13 = vcombine.low %v781_v57, %v813_v58  ;;  %v833_v23 = vcombine.high %v781_v57, %v813_v58 }
 0x410   :  { %v602_v4 = vrot.slane %v594_v59, %v6437_v27  ;;  %v609_v5 = vrot.slane %v595_v60, %v6437_v27  ;;  %v618_v8 = vrot.slane %v610_v62, %v6437_v27  ;;  %v625_v10 = vrot.slane %v611_v63, %v6437_v27 }
 0x411   :  { %5800 = vmatmul.mubr.msk.f32.vlgmr.msra.gmra.mrb[0].mxu0 %vm1110_vm5, %v830_v1  ;;  %5805 = vmatmul.mubr.msk.f32.vlgmr.msra.gmra.mrb[8].mxu1 %vm1110_vm5, %v831_v2  ;;  %v243_v14 = vpop.permute.xlu1 %242 }
 0x412   :  { %v5535_v15 = vcombine.low %v602_v4, %v609_v5  ;;  %v5537_v16 = vcombine.high %v602_v4, %v609_v5  ;;  %v5539_v17 = vcombine.low %v618_v8, %v625_v10  ;;  %v5541_v18 = vcombine.high %v618_v8, %v625_v10  ;;  %5808 = vmatpush3.xpose.msk.msra.mxu0 %vm1110_vm5, %v836_v3 }
 0x413   :  { %5813 = vmatpush3.xpose.msk.msra.mxu1 %vm1110_vm5, %v837_v12  ;;  %v514_v19 = vcombine.low %v231_v52, %v243_v14  ;;  %v515_v22 = vcombine.high %v231_v52, %v243_v14  ;;  %5809 = vmatprep.mubr.msk.f32.mxu0 %vm6262_vm0, %v6261_v6 }
 0x414   :  { %v921_v24 = vrot.slane %v5535_v15, %v6434_v20  ;;  %v937_v25 = vrot.slane %v5537_v16, %v6434_v20  ;;  %v953_v26 = vrot.slane %v5539_v17, %v6434_v20  ;;  %v969_v28 = vrot.slane %v5541_v18, %v6434_v20  ;;  %5814 = vmatprep.mubr.msk.f32.mxu1 %vm6262_vm0, %v6261_v6 }
 0x415   :  { %v522_v31 = vrot.slane %v514_v19, %v6434_v20  ;;  %v529_v32 = vrot.slane %v515_v22, %v6434_v20  ;;  %5810 = vmatmul.mubr.msk.f32.vlgmr.msra.gmra.mrb[2].mxu0 %vm1110_vm5, %v832_v13  ;;  %5817 = vmatprep.subr.mxu0 %v6261_v6  ;;  %v6273_v16 = vmov -1e+30  }
 0x416   :  { %v986_v34 = vcombine.low %v921_v24, %v937_v25  ;;  %v1018_v35 = vcombine.low %v953_v26, %v969_v28  ;;  %5815 = vmatmul.mubr.msk.f32.vlgmr.msra.gmra.mrb[10].mxu1 %vm1110_vm5, %v833_v23  ;;  %5822 = vmatprep.subr.mxu1 %v6261_v6  ;;  %v987_v52 = vcombine.high %v921_v24, %v937_v25  ;;  %v6553_v17 = vsel %vm106_vm6, 0.0, %v6273_v16 }
 0x417   :  { %v562_v36 = vcombine.low %v506_v11, %v522_v31  ;;  %v563_v37 = vcombine.high %v506_v11, %v522_v31  ;;  %v578_v38 = vcombine.low %v513_v29, %v529_v32  ;;  %v579_v39 = vcombine.high %v513_v29, %v529_v32  ;;  %5819 = vmatprep.mubr.msk.f32.mxu0 %vm6262_vm0, %v6261_v6 }
 0x418   :  { %v994_v40 = vrot.slane %v986_v34, %v6437_v27  ;;  %v1026_v41 = vrot.slane %v1018_v35, %v6437_v27  ;;  %5824 = vmatprep.mubr.msk.f32.mxu1 %vm6262_vm0, %v6261_v6  ;;  %v1019_v53 = vcombine.high %v953_v26, %v969_v28  ;;  %v1001_v1 = vrot.slane %v987_v52, %v6437_v27 }
 0x419   :  { %v570_v42 = vrot.slane %v562_v36, %v6437_v27  ;;  %v577_v43 = vrot.slane %v563_v37, %v6437_v27  ;;  %v586_v44 = vrot.slane %v578_v38, %v6437_v27  ;;  %v593_v45 = vrot.slane %v579_v39, %v6437_v27 }
 0x41a   :  { %v1038_v46 = vcombine.low %v994_v40, %v1026_v41  ;;  %v1039_v47 = vcombine.high %v994_v40, %v1026_v41  ;;  %v1033_v2 = vrot.slane %v1019_v53, %v6437_v27 }
 0x41b   :  { %v5534_v48 = vcombine.low %v570_v42, %v577_v43  ;;  %v5536_v49 = vcombine.high %v570_v42, %v577_v43  ;;  %v5538_v50 = vcombine.low %v586_v44, %v593_v45  ;;  %v5540_v51 = vcombine.high %v586_v44, %v593_v45 }
 0x41c   :  { %5818 = vmatpush3.xpose.msk.msra.mxu0 %vm1110_vm5, %v1038_v46  ;;  %5823 = vmatpush3.xpose.msk.msra.mxu1 %vm1110_vm5, %v1039_v47  ;;  %v1040_v12 = vcombine.low %v1001_v1, %v1033_v2  ;;  %v1041_v14 = vcombine.high %v1001_v1, %v1033_v2  ;;  %v271_v1 = vpop.permute.xlu1 %270 }
 0x41d   :  { %v914_v54 = vrot.slane %v5534_v48, %v6434_v20  ;;  %v930_v57 = vrot.slane %v5536_v49, %v6434_v20  ;;  %v946_v58 = vrot.slane %v5538_v50, %v6434_v20  ;;  %v962_v59 = vrot.slane %v5540_v51, %v6434_v20  ;;  %5827 = vmatprep.subr.mxu0 %v6261_v6 }
 0x41e   :  { %5832 = vmatprep.subr.mxu1 %v6261_v6 }
 0x41f   :  { %v970_v60 = vcombine.low %v914_v54, %v930_v57  ;;  %v971_v62 = vcombine.high %v914_v54, %v930_v57  ;;  %v1002_v63 = vcombine.low %v946_v58, %v962_v59  ;;  %v1003_v0 = vcombine.high %v946_v58, %v962_v59 }
 0x421   :  { %v978_v3 = vrot.slane %v970_v60, %v6437_v27  ;;  %v1010_v4 = vrot.slane %v1002_v63, %v6437_v27  ;;  %v985_v10 = vrot.slane %v971_v62, %v6437_v27  ;;  %v1017_v11 = vrot.slane %v1003_v0, %v6437_v27 }
 0x423   :  { %v1034_v5 = vcombine.low %v978_v3, %v1010_v4  ;;  %v1035_v8 = vcombine.high %v978_v3, %v1010_v4  ;;  %v1036_v13 = vcombine.low %v985_v10, %v1017_v11  ;;  %v1037_v15 = vcombine.high %v985_v10, %v1017_v11 }
 0x425   :  { %5820 = vmatmul.mubr.msk.f32.vlgmr.msra.gmra.mrb[4].mxu0 %vm1110_vm5, %v1034_v5  ;;  %5825 = vmatmul.mubr.msk.f32.vlgmr.msra.gmra.mrb[12].mxu1 %vm1110_vm5, %v1035_v8 }
 0x426   :  { %5828 = vmatpush3.xpose.msk.msra.mxu0 %vm1110_vm5, %v1040_v12  ;;  %5833 = vmatpush3.xpose.msk.msra.mxu1 %vm1110_vm5, %v1041_v14 }
 0x427   :  { %5829 = vmatprep.mubr.msk.f32.mxu0 %vm6262_vm0, %v6261_v6  ;;  %5834 = vmatprep.mubr.msk.f32.mxu1 %vm6262_vm0, %v6261_v6 }
 0x428   :  { %5837 = vmatprep.subr.bf16.mxu0 %v6261_v6  ;;  %5843 = vmatprep.subr.bf16.mxu1 %v6261_v6 }
 0x429   :  { %5830 = vmatmul.mubr.msk.f32.vlgmr.msra.gmra.mrb[6].mxu0 %vm1110_vm5, %v1036_v13  ;;  %5835 = vmatmul.mubr.msk.f32.vlgmr.msra.gmra.mrb[14].mxu1 %vm1110_vm5, %v1037_v15 }
 0x42a   :  { %5839 = vmatprep.mubr.msk.bf16.mxu0 %vm6262_vm0, %v6261_v6  ;;  %5845 = vmatprep.mubr.msk.bf16.mxu1 %vm6262_vm0, %v6261_v6 }
 0x4e4   :  { %v1183_v18 = vpop.f32.mrb[0].mxu0  ;;  %v1259_v19 = vpop.f32.mrb[8].mxu1 }
 0x4e5   :  { %v1719_v22 = vmul.f32 0.35355338, %v1183_v18  ;;  %v1720_v23 = vmul.f32 0.35355338, %v1259_v19  ;;  %v5801_v24 = vpop.f32.mrb[1].mxu0  ;;  %v5806_v25 = vpop.f32.mrb[9].mxu1 }
 0x4e7   :  { %v1727_v26 = vadd.f32 %v1719_v22, %v6553_v17  ;;  %v1728_v28 = vadd.f32 %v1720_v23, %v6553_v17 }
 0x4e8   :  { %v1335_v29 = vpop.f32.mrb[2].mxu0 }
 0x4e9   :  { %v1721_v31 = vmul.f32 0.35355338, %v1335_v29  ;;  %v1411_v32 = vpop.f32.mrb[10].mxu1  ;;  %v5811_v34 = vpop.f32.mrb[3].mxu0  ;;  %v1735_v35 = vsel %vm1110_vm5, %v1727_v26, -inf  ;;  %v1738_v21 = vsel %vm1110_vm5, %v1728_v28, -inf }
 0x4ea   :  { %v1722_v36 = vmul.f32 0.35355338, %v1411_v32  ;;  %v5816_v37 = vpop.f32.mrb[11].mxu1  ;;  %1736 = vmax.xlane.f32.xlu0 %v1735_v35  ;;  %1739 = vmax.xlane.f32.xlu1 %v1738_v21 }
 0x4eb   :  { %v1729_v38 = vadd.f32 %v1721_v31, %v6553_v17 }
 0x4ec   :  { %v1730_v40 = vadd.f32 %v1722_v36, %v6553_v17 }
 0x4ed   :  { %v1741_v39 = vsel %vm1110_vm5, %v1729_v38, -inf }
 0x4ee   :  { %1742 = vmax.xlane.f32.xlu0 %v1741_v39  ;;  %v1744_v41 = vsel %vm1110_vm5, %v1730_v40, -inf }
 0x4f2   :  { %1745 = vmax.xlane.f32.xlu0 %v1744_v41 }
 0x4f8   :  { %v1487_v42 = vpop.f32.mrb[4].mxu0  ;;  %v1563_v43 = vpop.f32.mrb[12].mxu1 }
 0x4f9   :  { %v1723_v44 = vmul.f32 0.35355338, %v1487_v42  ;;  %v1724_v45 = vmul.f32 0.35355338, %v1563_v43  ;;  %v5821_v46 = vpop.f32.mrb[5].mxu0  ;;  %v5826_v47 = vpop.f32.mrb[13].mxu1 }
 0x4fb   :  { %v1731_v48 = vadd.f32 %v1723_v44, %v6553_v17  ;;  %v1732_v49 = vadd.f32 %v1724_v45, %v6553_v17 }
 0x4fc   :  { %v1639_v50 = vpop.f32.mrb[6].mxu0  ;;  %v1715_v51 = vpop.f32.mrb[14].mxu1 }
 0x4fd   :  { %v1725_v52 = vmul.f32 0.35355338, %v1639_v50  ;;  %v1726_v53 = vmul.f32 0.35355338, %v1715_v51  ;;  %v5831_v54 = vpop.f32.mrb[7].mxu0  ;;  %v5836_v57 = vpop.f32.mrb[15].mxu1 }
 0x4fe   :  { %v1747_v58 = vsel %vm1110_vm5, %v1731_v48, -inf  ;;  %v1750_v59 = vsel %vm1110_vm5, %v1732_v49, -inf }
 0x4ff   :  { %1748 = vmax.xlane.f32.xlu1 %v1747_v58  ;;  %1751 = vmax.xlane.f32.xlu0 %v1750_v59  ;;  %v6568_v60 = vadd.f32 %v1725_v52, %v6553_v17  ;;  %v6571_v62 = vadd.f32 %v1726_v53, %v6553_v17 }
 0x501   :  { %v1753_v63 = vsel %vm1110_vm5, %v6568_v60, -inf  ;;  %v1756_v0 = vsel %vm1110_vm5, %v6571_v62, -inf }
 0x503   :  { %1754 = vmax.xlane.f32.xlu1 %v1753_v63  ;;  %1757 = vmax.xlane.f32.xlu0 %v1756_v0 }
 0x514   :  { %282 = vrot.lane.b32.xlu1 %v6399_v7, %s6274_s27 }
 0x518   :  { %288 = vrot.lane.b32.xlu1 %v6399_v7, %s6275_s28 }
 0x519   :  { %276 = vrot.lane.b32.xlu0 %v6399_v7, %s6276_s29 }
 0x51c   :  { %272 = vrot.lane.b32.xlu1 %v6405_v9, %s6270_s26 }
 0x577   :  { %v1737_v2 = vpop.xlane.xlu0 %1736  ;;  %v1740_v3 = vpop.xlane.xlu1 %1739 }
 0x578   :  { %v1759_v4 = vsub.f32 %v1727_v26, %v1737_v2  ;;  %v1760_v5 = vsub.f32 %v1728_v28, %v1740_v3 }
 0x57a   :  { %v1767_v8 = vmul.f32 1.442695, %v1759_v4  ;;  %v1769_v10 = vmul.f32 1.442695, %v1760_v5 }
 0x57b   :  { %v1743_v11 = vpop.xlane.xlu0 %1742 }
 0x57c   :  { %6151 = vpow2.f32 %v1767_v8  ;;  %v1761_v12 = vsub.f32 %v1729_v38, %v1743_v11 }
 0x57d   :  { %6153 = vpow2.f32 %v1769_v10 }
 0x57e   :  { %v1771_v14 = vmul.f32 1.442695, %v1761_v12 }
 0x57f   :  { %v1746_v13 = vpop.xlane.xlu0 %1745 }
 0x580   :  { %6155 = vpow2.f32 %v1771_v14  ;;  %v1762_v15 = vsub.f32 %v1730_v40, %v1746_v13 }
 0x582   :  { %v1773_v16 = vmul.f32 1.442695, %v1762_v15 }
 0x584   :  { %6157 = vpow2.f32 %v1773_v16 }
 0x586   :  { %v6585_v7 = vpop.eup %6151 }
 0x587   :  { %v6587_v18 = vpop.eup %6153  ;;  %v1783_v19 = vsel %vm1110_vm5, %v6585_v7, 0.0 }
 0x588   :  { %1784 = vadd.xlane.f32.xlu1 %v1783_v19  ;;  %v1786_v22 = vsel %vm1110_vm5, %v6587_v18, 0.0 }
 0x589   :  { %1787 = vadd.xlane.f32.xlu0 %v1786_v22 }
 0x58a   :  { %v6593_v23 = vpop.eup %6155 }
 0x58b   :  { %v1789_v24 = vsel %vm1110_vm5, %v6593_v23, 0.0 }
 0x58c   :  { %v1749_v25 = vpop.xlane.xlu1 %1748  ;;  %v1752_v26 = vpop.xlane.xlu0 %1751 }
 0x58d   :  { %v1763_v28 = vsub.f32 %v1731_v48, %v1749_v25  ;;  %v1764_v29 = vsub.f32 %v1732_v49, %v1752_v26  ;;  %1790 = vadd.xlane.f32.xlu0 %v1789_v24 }
 0x58e   :  { %v6597_v31 = vpop.eup %6157 }
 0x58f   :  { %v1775_v32 = vmul.f32 1.442695, %v1763_v28  ;;  %v1777_v34 = vmul.f32 1.442695, %v1764_v29  ;;  %v1792_v35 = vsel %vm1110_vm5, %v6597_v31, 0.0 }
 0x590   :  { %v6601_v21 = vpop.xlane.xlu1 %1754  ;;  %1793 = vadd.xlane.f32.xlu1 %v1792_v35  ;;  %v1758_v36 = vpop.xlane.xlu0 %1757 }
 0x591   :  { %6159 = vpow2.f32 %v1775_v32 }
 0x592   :  { %6161 = vpow2.f32 %v1777_v34 }
 0x594   :  { %v283_v37 = vpop.permute.xlu1 %282  ;;  %v277_v40 = vpop.permute.xlu0 %276 }
 0x595   :  { %v430_v38 = vcombine.low %v271_v1, %v283_v37  ;;  %v431_v39 = vcombine.high %v271_v1, %v283_v37 }
 0x597   :  { %v438_v45 = vrot.slane %v430_v38, %v6434_v20  ;;  %v445_v46 = vrot.slane %v431_v39, %v6434_v20  ;;  %v1766_v38 = vsub.f32 %v6571_v62, %v1758_v36 }
 0x598   :  { %v289_v41 = vpop.permute.xlu1 %288 }
 0x599   :  { %v446_v42 = vcombine.low %v277_v40, %v289_v41  ;;  %v447_v43 = vcombine.high %v277_v40, %v289_v41  ;;  %v1781_v39 = vmul.f32 1.442695, %v1766_v38  ;;  %v1765_v40 = vsub.f32 %v6568_v60, %v6601_v21 }
 0x59b   :  { %v6603_v44 = vpop.eup %6159  ;;  %v454_v47 = vrot.slane %v446_v42, %v6434_v20  ;;  %v461_v48 = vrot.slane %v447_v43, %v6434_v20  ;;  %6163 = vpow2.f32 %v1781_v39  ;;  %v1779_v41 = vmul.f32 1.442695, %v1765_v40 }
 0x59c   :  { %v1795_v49 = vsel %vm1110_vm5, %v6603_v44, 0.0  ;;  %v6611_v50 = vpop.eup %6161 }
 0x59d   :  { %v462_v51 = vcombine.low %v438_v45, %v454_v47  ;;  %v463_v52 = vcombine.high %v438_v45, %v454_v47  ;;  %v478_v53 = vcombine.low %v445_v46, %v461_v48  ;;  %v479_v54 = vcombine.high %v445_v46, %v461_v48  ;;  %1796 = vadd.xlane.f32.xlu0 %v1795_v49 }
 0x59e   :  { %v1798_v0 = vsel %vm1110_vm5, %v6611_v50, 0.0  ;;  %6165 = vpow2.f32 %v1779_v41 }
 0x59f   :  { %v470_v57 = vrot.slane %v462_v51, %v6437_v27  ;;  %v477_v58 = vrot.slane %v463_v52, %v6437_v27  ;;  %v486_v59 = vrot.slane %v478_v53, %v6437_v27  ;;  %v493_v63 = vrot.slane %v479_v54, %v6437_v27 }
 0x5a1   :  { %v838_v1 = vcombine.low %v470_v57, %v477_v58  ;;  %v5532_v2 = vcombine.high %v470_v57, %v477_v58  ;;  %v854_v3 = vcombine.low %v486_v59, %v493_v63  ;;  %v5533_v4 = vcombine.high %v486_v59, %v493_v63  ;;  %1799 = vadd.xlane.f32.xlu0 %v1798_v0 }
 0x5a2   :  { %284 = vrot.lane.b32.xlu1 %v6405_v9, %s6274_s27 }
 0x5a3   :  { %v845_v5 = vrot.slane %v838_v1, %v6434_v20  ;;  %v853_v8 = vrot.slane %v5532_v2, %v6434_v20  ;;  %v861_v10 = vrot.slane %v854_v3, %v6434_v20  ;;  %v869_v11 = vrot.slane %v5533_v4, %v6434_v20 }
 0x5a5   :  { %v870_v12 = vcombine.low %v845_v5, %v853_v8  ;;  %v886_v14 = vcombine.low %v861_v10, %v869_v11  ;;  %v871_v13 = vcombine.high %v845_v5, %v853_v8  ;;  %v887_v15 = vcombine.high %v861_v10, %v869_v11  ;;  %v6640_v42 = vpop.eup %6163 }
 0x5a6   :  { %290 = vrot.lane.b32.xlu1 %v6405_v9, %s6275_s28  ;;  %v1804_v43 = vsel %vm1110_vm5, %v6640_v42, 0.0 }
 0x5a7   :  { %v878_v16 = vrot.slane %v870_v12, %v6437_v27  ;;  %v894_v19 = vrot.slane %v886_v14, %v6437_v27  ;;  %v885_v22 = vrot.slane %v871_v13, %v6437_v27  ;;  %v901_v24 = vrot.slane %v887_v15, %v6437_v27 }
 0x5a8   :  { %v6644_v45 = vpop.eup %6165 }
 0x5a9   :  { %v902_v25 = vcombine.low %v878_v16, %v894_v19  ;;  %v903_v26 = vcombine.high %v878_v16, %v894_v19  ;;  %v904_v28 = vcombine.low %v885_v22, %v901_v24  ;;  %v905_v29 = vcombine.high %v885_v22, %v901_v24 }
 0x5aa   :  { %v1801_v62 = vsel %vm1110_vm5, %v6644_v45, 0.0 }
 0x5ab   :  { %v1831_v32 = vpack.c.bf16 %v902_v25, %v902_v25  ;;  %v1832_v34 = vpack.c.bf16 %v903_v26, %v903_v26  ;;  %v1833_v51 = vpack.c.bf16 %v904_v28, %v904_v28  ;;  %v1834_v53 = vpack.c.bf16 %v905_v29, %v905_v29 }
 0x5ad   :  { %v1844_v35 = vsel %vm1842_vm7, %v1831_v32, 0  ;;  %v1890_v37 = vsel %vm1842_vm7, %v1832_v34, 0  ;;  %v1936_v59 = vsel %vm1842_vm7, %v1833_v51, 0  ;;  %v1982_v63 = vsel %vm1842_vm7, %v1834_v53, 0 }
 0x5ae   :  { %5838 = vmatpush3.bf16.msra.mxu0 %v1844_v35  ;;  %5844 = vmatpush3.bf16.msra.mxu1 %v1890_v37 }
 0x5af   :  { %5849 = vmatprep.subr.bf16.mxu0 %v6261_v6  ;;  %5855 = vmatprep.subr.bf16.mxu1 %v6261_v6 }
 0x5b7   :  { %278 = vrot.lane.b32.xlu0 %v6405_v9, %s6276_s29  ;;  %v273_v9 = vpop.permute.xlu1 %272 }
 0x5ca   :  { %1805 = vadd.xlane.f32.xlu1 %v1804_v43 }
 0x5d6   :  { %1802 = vadd.xlane.f32.xlu0 %v1801_v62 }
 0x615   :  { %v1785_v36 = vpop.xlane.xlu1 %1784 }
 0x616   :  { %6167 = vrcp.f32 %v1785_v36  ;;  %v1788_v46 = vpop.xlane.xlu0 %1787 }
 0x617   :  { %6169 = vrcp.f32 %v1788_v46 }
 0x61a   :  { %v1791_v60 = vpop.xlane.xlu0 %1790 }
 0x61b   :  { %6171 = vrcp.f32 %v1791_v60 }
 0x61d   :  { %v1794_v21 = vpop.xlane.xlu1 %1793 }
 0x61e   :  { %6173 = vrcp.f32 %v1794_v21 }
 0x620   :  { %v6168_v47 = vpop.eup %6167 }
 0x621   :  { %v6170_v48 = vpop.eup %6169  ;;  %v1815_v49 = vmul.f32 %v6168_v47, %v6585_v7  ;;  %v285_v4 = vpop.permute.xlu1 %284 }
 0x622   :  { %v1816_v52 = vmul.f32 %v6170_v48, %v6587_v18  ;;  %v634_v5 = vcombine.low %v273_v9, %v285_v4  ;;  %v635_v8 = vcombine.high %v273_v9, %v285_v4 }
 0x623   :  { %v1823_v54 = vpack.c.bf16 %v1815_v49, %v1815_v49 }
 0x624   :  { %v1824_v57 = vpack.c.bf16 %v1816_v52, %v1816_v52  ;;  %v642_v14 = vrot.slane %v634_v5, %v6434_v20  ;;  %v649_v13 = vrot.slane %v635_v8, %v6434_v20 }
 0x625   :  { %v6172_v58 = vpop.eup %6171  ;;  %5840 = vmatmul.mubr.msk.bf16.vlgmr.msra.gmra.mrb[8].mxu0 %vm1110_vm5, %v1823_v54 }
 0x626   :  { %5846 = vmatmul.mubr.msk.bf16.vlgmr.msra.gmra.mrb[16].mxu1 %vm1110_vm5, %v1824_v57  ;;  %5850 = vmatpush3.bf16.msra.mxu0 %v1936_v59  ;;  %v1817_v0 = vmul.f32 %v6172_v58, %v6593_v23 }
 0x627   :  { %5856 = vmatpush3.bf16.msra.mxu1 %v1982_v63  ;;  %5851 = vmatprep.mubr.msk.bf16.mxu0 %vm6262_vm0, %v6261_v6 }
 0x628   :  { %v6174_v7 = vpop.eup %6173  ;;  %5857 = vmatprep.mubr.msk.bf16.mxu1 %vm6262_vm0, %v6261_v6  ;;  %5861 = vmatprep.subr.bf16.mxu0 %v6261_v6  ;;  %v1825_v2 = vpack.c.bf16 %v1817_v0, %v1817_v0 }
 0x629   :  { %v1818_v18 = vmul.f32 %v6174_v7, %v6597_v31  ;;  %5867 = vmatprep.subr.bf16.mxu1 %v6261_v6  ;;  %v291_v31 = vpop.permute.xlu1 %290 }
 0x62a   :  { %v1797_v1 = vpop.xlane.xlu0 %1796 }
 0x62b   :  { %v1826_v3 = vpack.c.bf16 %v1818_v18, %v1818_v18  ;;  %6175 = vrcp.f32 %v1797_v1 }
 0x62d   :  { %5852 = vmatmul.mubr.msk.bf16.vlgmr.msra.gmra.mrb[12].mxu0 %vm1110_vm5, %v1825_v2 }
 0x62e   :  { %5858 = vmatmul.mubr.msk.bf16.vlgmr.msra.gmra.mrb[20].mxu1 %vm1110_vm5, %v1826_v3  ;;  %v1800_v23 = vpop.xlane.xlu0 %1799  ;;  %5863 = vmatprep.mubr.msk.bf16.mxu0 %vm6262_vm0, %v6261_v6 }
 0x62f   :  { %5869 = vmatprep.mubr.msk.bf16.mxu1 %vm6262_vm0, %v6261_v6  ;;  %6177 = vrcp.f32 %v1800_v23 }
 0x632   :  { %v279_v10 = vpop.permute.xlu0 %278 }
 0x633   :  { %v650_v11 = vcombine.low %v279_v10, %v291_v31  ;;  %v651_v12 = vcombine.high %v279_v10, %v291_v31 }
 0x635   :  { %v658_v15 = vrot.slane %v650_v11, %v6434_v20  ;;  %v665_v16 = vrot.slane %v651_v12, %v6434_v20  ;;  %v6176_v60 = vpop.eup %6175 }
 0x636   :  { %v1819_v58 = vmul.f32 %v6176_v60, %v6603_v44 }
 0x637   :  { %v666_v19 = vcombine.low %v642_v14, %v658_v15  ;;  %v667_v22 = vcombine.high %v642_v14, %v658_v15  ;;  %v682_v24 = vcombine.low %v649_v13, %v665_v16  ;;  %v683_v25 = vcombine.high %v649_v13, %v665_v16 }
 0x638   :  { %v1827_v3 = vpack.c.bf16 %v1819_v58, %v1819_v58 }
 0x639   :  { %v674_v26 = vrot.slane %v666_v19, %v6437_v27  ;;  %v681_v28 = vrot.slane %v667_v22, %v6437_v27  ;;  %v690_v29 = vrot.slane %v682_v24, %v6437_v27  ;;  %v697_v32 = vrot.slane %v683_v25, %v6437_v27  ;;  %v6178_v51 = vpop.eup %6177 }
 0x63a   :  { %v1820_v59 = vmul.f32 %v6178_v51, %v6611_v50 }
 0x63b   :  { %v1042_v34 = vcombine.low %v674_v26, %v681_v28  ;;  %v5542_v35 = vcombine.high %v674_v26, %v681_v28  ;;  %v1058_v37 = vcombine.low %v690_v29, %v697_v32  ;;  %v5543_v38 = vcombine.high %v690_v29, %v697_v32 }
 0x63c   :  { %v1828_v4 = vpack.c.bf16 %v1820_v59, %v1820_v59 }
 0x63d   :  { %v1049_v39 = vrot.slane %v1042_v34, %v6434_v20  ;;  %v1057_v40 = vrot.slane %v5542_v35, %v6434_v20  ;;  %v1065_v41 = vrot.slane %v1058_v37, %v6434_v20  ;;  %v1073_v43 = vrot.slane %v5543_v38, %v6434_v20 }
 0x63f   :  { %v1074_v62 = vcombine.low %v1049_v39, %v1057_v40  ;;  %v1090_v9 = vcombine.low %v1065_v41, %v1073_v43  ;;  %v1075_v36 = vcombine.high %v1049_v39, %v1057_v40  ;;  %v1091_v46 = vcombine.high %v1065_v41, %v1073_v43 }
 0x641   :  { %v1082_v21 = vrot.slane %v1074_v62, %v6437_v27  ;;  %v1098_v47 = vrot.slane %v1090_v9, %v6437_v27  ;;  %v1089_v48 = vrot.slane %v1075_v36, %v6437_v27  ;;  %v1105_v49 = vrot.slane %v1091_v46, %v6437_v27 }
 0x643   :  { %v1106_v52 = vcombine.low %v1082_v21, %v1098_v47  ;;  %v1107_v53 = vcombine.high %v1082_v21, %v1098_v47  ;;  %v1108_v54 = vcombine.low %v1089_v48, %v1105_v49  ;;  %v1109_v57 = vcombine.high %v1089_v48, %v1105_v49 }
 0x645   :  { %v1835_v63 = vpack.c.bf16 %v1106_v52, %v1106_v52  ;;  %v1836_v0 = vpack.c.bf16 %v1107_v53, %v1107_v53  ;;  %v1837_v1 = vpack.c.bf16 %v1108_v54, %v1108_v54  ;;  %v1838_v2 = vpack.c.bf16 %v1109_v57, %v1109_v57 }
 0x647   :  { %v2028_v7 = vsel %vm1842_vm7, %v1835_v63, 0  ;;  %v2074_v18 = vsel %vm1842_vm7, %v1836_v0, 0  ;;  %v2120_v44 = vsel %vm1842_vm7, %v1837_v1, 0  ;;  %v2166_v50 = vsel %vm1842_vm7, %v1838_v2, 0 }
 0x648   :  { %5862 = vmatpush3.bf16.msra.mxu0 %v2028_v7  ;;  %5868 = vmatpush3.bf16.msra.mxu1 %v2074_v18 }
 0x649   :  { %5873 = vmatprep.subr.bf16.mxu0 %v6261_v6  ;;  %5879 = vmatprep.subr.bf16.mxu1 %v6261_v6 }
 0x64b   :  { %5864 = vmatmul.mubr.msk.bf16.vlgmr.msra.gmra.mrb[16].mxu0 %vm1110_vm5, %v1827_v3  ;;  %5870 = vmatmul.mubr.msk.bf16.vlgmr.msra.gmra.mrb[24].mxu1 %vm1110_vm5, %v1828_v4 }
 0x64c   :  { %5874 = vmatpush3.bf16.msra.mxu0 %v2120_v44  ;;  %5880 = vmatpush3.bf16.msra.mxu1 %v2166_v50 }
 0x64d   :  { %5881 = vmatprep.mubr.msk.bf16.mxu1 %vm6262_vm0, %v6261_v6  ;;  %5875 = vmatprep.mubr.msk.bf16.mxu0 %vm6262_vm0, %v6261_v6 }
 0x64e   :  { %5885 = vmatprep.subr.bf16.mxu0 %v6261_v6  ;;  %5893 = vmatprep.subr.bf16.mxu1 %v6261_v6 }
 0x657   :  { %v1806_v23 = vpop.xlane.xlu1 %1805 }
 0x658   :  { %6179 = vrcp.f32 %v1806_v23 }
 0x662   :  { %v6180_v5 = vpop.eup %6179 }
 0x663   :  { %v1822_v8 = vmul.f32 %v6180_v5, %v6640_v42  ;;  %v1803_v31 = vpop.xlane.xlu0 %1802  ;;  %v6231_v42 = vld [vmem:[%s7421_s1] ss:$8 sps:$4 sm:$0xff]  }
 0x664   :  { %6181 = vrcp.f32 %v1803_v31  ;;  %2517 = vrot.lane.b32.xlu0 %v6231_v42, %s6277_s6 }
 0x665   :  { %v1830_v10 = vpack.c.bf16 %v1822_v8, %v1822_v8 }
 0x667   :  { %5882 = vmatmul.mubr.msk.bf16.vlgmr.msra.gmra.mrb[28].mxu1 %vm1110_vm5, %v1830_v10 }
 0x668   :  { %5897 = vmatprep.mubr.msk.bf16.mxu1 %vm6262_vm0, %v6261_v6 }
 0x66e   :  { %v6182_v11 = vpop.eup %6181 }
 0x66f   :  { %v1821_v12 = vmul.f32 %v6182_v11, %v6644_v45 }
 0x671   :  { %v1829_v14 = vpack.c.bf16 %v1821_v12, %v1821_v12 }
 0x673   :  { %5876 = vmatmul.mubr.msk.bf16.vlgmr.msra.gmra.mrb[20].mxu0 %vm1110_vm5, %v1829_v14 }
 0x674   :  { %5889 = vmatprep.mubr.msk.bf16.mxu0 %vm6262_vm0, %v6261_v6 }
 0x6f8   :  { %v1880_v13 = vpop.f32.mrb[8].mxu0 }
 0x6f9   :  { %v1926_v15 = vpop.f32.mrb[16].mxu1  ;;  %v5841_v16 = vpop.f32.mrb[9].mxu0 }
 0x6fa   :  { %v5847_v19 = vpop.f32.mrb[17].mxu1  ;;  %v1883_v22 = vpop.f32.mrb[10].mxu0 }
 0x6fb   :  { %v1929_v24 = vpop.f32.mrb[18].mxu1  ;;  %v5842_v45 = vpop.f32.mrb[11].mxu0 }
 0x6fc   :  { %v5848_v25 = vpop.f32.mrb[19].mxu1 }
 0x700   :  { %v1972_v26 = vpop.f32.mrb[12].mxu0 }
 0x701   :  { %v2208_v28 = vcombine.low %v1880_v13, %v1972_v26  ;;  %v2209_v29 = vcombine.high %v1880_v13, %v1972_v26  ;;  %v2018_v32 = vpop.f32.mrb[20].mxu1  ;;  %v5853_v34 = vpop.f32.mrb[13].mxu0 }
 0x702   :  { %v2224_v35 = vcombine.low %v1926_v15, %v2018_v32  ;;  %v2225_v37 = vcombine.high %v1926_v15, %v2018_v32  ;;  %v5859_v38 = vpop.f32.mrb[21].mxu1  ;;  %v1975_v39 = vpop.f32.mrb[14].mxu0 }
 0x703   :  { %v2216_v40 = vrot.slane %v2208_v28, %v6434_v20  ;;  %v2223_v41 = vrot.slane %v2209_v29, %v6434_v20  ;;  %v2021_v43 = vpop.f32.mrb[22].mxu1  ;;  %v5854_v62 = vpop.f32.mrb[15].mxu0 }
 0x704   :  { %v2232_v9 = vrot.slane %v2224_v35, %v6434_v20  ;;  %v2239_v36 = vrot.slane %v2225_v37, %v6434_v20  ;;  %v5860_v46 = vpop.f32.mrb[23].mxu1  ;;  %v2518_v32 = vpop.permute.xlu0 %2517 }
 0x705   :  { %5886 = vmatpush3.bf16.msra.mxu0 %v2518_v32 }
 0x706   :  { %v2240_v60 = vcombine.low %v2216_v40, %v2232_v9  ;;  %v2241_v21 = vcombine.high %v2216_v40, %v2232_v9  ;;  %v2256_v47 = vcombine.low %v2223_v41, %v2239_v36  ;;  %v2257_v48 = vcombine.high %v2223_v41, %v2239_v36  ;;  %5887 = vmatprep.subr.bf16.mxu0 %v6261_v6 }
 0x708   :  { %v2248_v49 = vrot.slane %v2240_v60, %v6437_v27  ;;  %v2255_v51 = vrot.slane %v2241_v21, %v6437_v27  ;;  %v2264_v52 = vrot.slane %v2256_v47, %v6437_v27  ;;  %v2271_v53 = vrot.slane %v2257_v48, %v6437_v27 }
 0x70a   :  { %v2344_v54 = vcombine.low %v2248_v49, %v2255_v51  ;;  %v5568_v57 = vcombine.high %v2248_v49, %v2255_v51  ;;  %v2360_v58 = vcombine.low %v2264_v52, %v2271_v53  ;;  %v5569_v59 = vcombine.high %v2264_v52, %v2271_v53 }
 0x70c   :  { %v2351_v63 = vrot.slane %v2344_v54, %v6434_v20  ;;  %v2359_v0 = vrot.slane %v5568_v57, %v6434_v20  ;;  %v2367_v7 = vrot.slane %v2360_v58, %v6434_v20  ;;  %v2375_v18 = vrot.slane %v5569_v59, %v6434_v20 }
 0x70e   :  { %v2377_v1 = vcombine.high %v2351_v63, %v2359_v0  ;;  %v2393_v2 = vcombine.high %v2367_v7, %v2375_v18  ;;  %v2376_v3 = vcombine.low %v2351_v63, %v2359_v0  ;;  %v2392_v4 = vcombine.low %v2367_v7, %v2375_v18 }
 0x710   :  { %v6725_v44 = vrot.slane %v2377_v1, %v6437_v27  ;;  %v6728_v50 = vrot.slane %v2393_v2, %v6437_v27  ;;  %v6731_v23 = vrot.slane %v2376_v3, %v6437_v27  ;;  %v6734_v5 = vrot.slane %v2392_v4, %v6437_v27 }
 0x712   :  { %v2410_v8 = vcombine.low %v6725_v44, %v6728_v50  ;;  %v2408_v31 = vcombine.low %v6731_v23, %v6734_v5  ;;  %v2409_v10 = vcombine.high %v6731_v23, %v6734_v5  ;;  %v2411_v11 = vcombine.high %v6725_v44, %v6728_v50 }
 0x71e   :  { %v2064_v12 = vpop.f32.mrb[16].mxu0  ;;  %v2110_v14 = vpop.f32.mrb[24].mxu1 }
 0x71f   :  { %v5865_v42 = vpop.f32.mrb[17].mxu0  ;;  %v5871_v13 = vpop.f32.mrb[25].mxu1 }
 0x720   :  { %v2067_v15 = vpop.f32.mrb[18].mxu0  ;;  %v2113_v16 = vpop.f32.mrb[26].mxu1 }
 0x721   :  { %v5866_v19 = vpop.f32.mrb[19].mxu0  ;;  %v5872_v22 = vpop.f32.mrb[27].mxu1 }
 0x722   :  { %v6232_v22 = vld [vmem:[%s7421_s1 + $0x10] ss:$8 sps:$4 sm:$0xff]  }
 0x73a   :  { %v2202_v24 = vpop.f32.mrb[28].mxu1 }
 0x73b   :  { %v2292_v45 = vcombine.low %v2110_v14, %v2202_v24  ;;  %v2293_v25 = vcombine.high %v2110_v14, %v2202_v24  ;;  %v5883_v26 = vpop.f32.mrb[29].mxu1 }
 0x73c   :  { %v2205_v28 = vpop.f32.mrb[30].mxu1 }
 0x73d   :  { %v5884_v29 = vpop.f32.mrb[31].mxu1  ;;  %v2300_v40 = vrot.slane %v2292_v45, %v6434_v20  ;;  %v2307_v41 = vrot.slane %v2293_v25, %v6434_v20 }
 0x746   :  { %v2156_v34 = vpop.f32.mrb[20].mxu0 }
 0x747   :  { %v2276_v35 = vcombine.low %v2064_v12, %v2156_v34  ;;  %v2277_v37 = vcombine.high %v2064_v12, %v2156_v34  ;;  %v5877_v38 = vpop.f32.mrb[21].mxu0 }
 0x748   :  { %v2159_v39 = vpop.f32.mrb[22].mxu0 }
 0x749   :  { %v2284_v43 = vrot.slane %v2276_v35, %v6434_v20  ;;  %v2291_v62 = vrot.slane %v2277_v37, %v6434_v20  ;;  %v5878_v9 = vpop.f32.mrb[23].mxu0 }
 0x74b   :  { %v2308_v36 = vcombine.low %v2284_v43, %v2300_v40  ;;  %v2309_v46 = vcombine.high %v2284_v43, %v2300_v40  ;;  %v2324_v60 = vcombine.low %v2291_v62, %v2307_v41  ;;  %v2325_v21 = vcombine.high %v2291_v62, %v2307_v41  ;;  %v6785_v40 = vld [vmem:[%s7423_s3] sm:$0xff] }
 0x74d   :  { %v2316_v47 = vrot.slane %v2308_v36, %v6437_v27  ;;  %v2323_v48 = vrot.slane %v2309_v46, %v6437_v27  ;;  %v2332_v49 = vrot.slane %v2324_v60, %v6437_v27  ;;  %v2339_v51 = vrot.slane %v2325_v21, %v6437_v27 }
 0x74f   :  { %v2412_v52 = vcombine.low %v2316_v47, %v2323_v48  ;;  %v5570_v53 = vcombine.high %v2316_v47, %v2323_v48  ;;  %v2428_v54 = vcombine.low %v2332_v49, %v2339_v51  ;;  %v5571_v57 = vcombine.high %v2332_v49, %v2339_v51 }
 0x751   :  { %v2419_v58 = vrot.slane %v2412_v52, %v6434_v20  ;;  %v2427_v59 = vrot.slane %v5570_v53, %v6434_v20  ;;  %v2435_v63 = vrot.slane %v2428_v54, %v6434_v20  ;;  %v2443_v0 = vrot.slane %v5571_v57, %v6434_v20 }
 0x753   :  { %v2445_v7 = vcombine.high %v2419_v58, %v2427_v59  ;;  %v2461_v18 = vcombine.high %v2435_v63, %v2443_v0  ;;  %v2444_v1 = vcombine.low %v2419_v58, %v2427_v59  ;;  %v2460_v2 = vcombine.low %v2435_v63, %v2443_v0  ;;  %v6123_v0 = vld [vmem:[%s7421_s1 + $0x4] ss:$8 sps:$4 sm:$0xff]  }
 0x754   :  { %5894 = vmatpush3.bf16.msra.mxu1 %v6123_v0 }
 0x755   :  { %v2459_v3 = vrot.slane %v2445_v7, %v6437_v27  ;;  %v2475_v4 = vrot.slane %v2461_v18, %v6437_v27  ;;  %v2452_v44 = vrot.slane %v2444_v1, %v6437_v27  ;;  %v2468_v50 = vrot.slane %v2460_v2, %v6437_v27  ;;  %v6124_v7 = vld [vmem:[%s7421_s1 + $0x14] ss:$8 sps:$4 sm:$0xff]   ;;  %5895 = vmatprep.subr.bf16.mxu1 %v6261_v6  ;;  %v6125_v18 = vld [vmem:[%s7422_s2] sm:$0xff]   ;;  %v6126_v1 = vld [vmem:[%s7422_s2 + $0x8] sm:$0xff]  }
 0x756   :  { %v6127_v2 = vld [vmem:[%s7422_s2 + $0x10] sm:$0xff]  }
 0x757   :  { %v2478_v12 = vcombine.low %v2459_v3, %v2475_v4  ;;  %v2477_v14 = vcombine.high %v2452_v44, %v2468_v50  ;;  %v2476_v42 = vcombine.low %v2452_v44, %v2468_v50  ;;  %v2479_v13 = vcombine.high %v2459_v3, %v2475_v4  ;;  %v6128_v3 = vld [vmem:[%s7422_s2 + $0x18] sm:$0xff]   ;;  %v6129_v4 = vld [vmem:[%s7422_s2 + $0x20] sm:$0xff]   ;;  %v6130_v44 = vld [vmem:[%s7422_s2 + $0x28] sm:$0xff]  }
 0x758   :  { %5896 = vmatpush3.bf16.msra.mxu1 %v6124_v7 }
 0x759   :  { %v6094_v15 = vpack.i.bf16 %v2478_v12, %v2410_v8  ;;  %v6089_v16 = vpack.i.bf16 %v2477_v14, %v2409_v10  ;;  %v6099_v19 = vpack.i.bf16 %v2479_v13, %v2411_v11  ;;  %5921 = vmatprep.subr.bf16.mxu1 %v6261_v6 }
 0x75b   :  { %6095 = vrot.lane.b32.xlu0 %v6094_v15, %s6278_s7  ;;  %6090 = vrot.lane.b32.xlu1 %v6089_v16, %s6279_s8  ;;  %v6837_v16 = vsub.s32 2, %v6383_v55 }
 0x75f   :  { %6100 = vrot.lane.b32.xlu1 %v6099_v19, %s6280_s9  ;;  %2519 = vrot.lane.b32.xlu0 %v6232_v22, %s6277_s6  ;;  %v2598_v19 = vrot.slane %v6785_v40, %v6837_v16  ;;  %v2603_v22 = vsub.s32 3, %v6383_v55 }
 0x7cd   :  { %v6096_v24 = vpop.permute.xlu0 %6095  ;;  %v6091_v45 = vpop.permute.xlu1 %6090 }
 0x7ce   :  { %v6093_v8 = vunpack.i.h.bf16 %v6091_v45  ;;  %v6092_v10 = vunpack.i.l.bf16 %v6091_v45  ;;  %v6098_v11 = vunpack.i.h.bf16 %v6096_v24  ;;  %v6097_v25 = vunpack.i.l.bf16 %v6096_v24 }
 0x7d0   :  { %v2504_v26 = vsel %vm1110_vm5, %v2408_v31, %v6092_v10  ;;  %v2505_v28 = vsel %vm1110_vm5, %v2476_v42, %v6093_v8  ;;  %v2515_v31 = vsub.s32 4, %v6383_v55 }
 0x7d1   :  { %v6101_v29 = vpop.permute.xlu1 %6100  ;;  %v2520_v32 = vpop.permute.xlu0 %2519  ;;  %v2507_v37 = vsel %vm2506_vm8, %v2504_v26, %v6097_v25  ;;  %v2508_v38 = vsel %vm2506_vm8, %v2505_v28, %v6098_v11  ;;  %v2604_v25 = vrot.slane %v6785_v40, %v2603_v22 }
 0x7d2   :  { %v6103_v34 = vunpack.i.h.bf16 %v6101_v29  ;;  %v6102_v35 = vunpack.i.l.bf16 %v6101_v29  ;;  %5888 = vmatpush3.bf16.msra.mxu0 %v2520_v32  ;;  %v2516_v41 = vrot.slane %v6785_v40, %v2515_v31 }
 0x7d3   :  { %5901 = vmatprep.subr.bf16.mxu0 %v6261_v6 }
 0x7d4   :  { %v2510_v39 = vsel %vm2509_vm9, %v2507_v37, %v6102_v35  ;;  %v2511_v23 = vsel %vm2509_vm9, %v2508_v38, %v6103_v34  ;;  %v6131_v34 = vld [vmem:[%s7422_s2 + $0x30] sm:$0xff]   ;;  %v6132_v35 = vld [vmem:[%s7422_s2 + $0x38] sm:$0xff]   ;;  %v2610_v37 = vsub.s32 6, %v6383_v55 }
 0x7d5   :  { %v2512_v5 = vpack.c.bf16 %v2511_v23, %v2510_v39 }
 0x7d6   :  { %v2611_v38 = vrot.slane %v6785_v40, %v2610_v37 }
 0x7d7   :  { %5890 = vmatmul.mubr.msk.bf16.vlgmr.msra.gmra.mrb[24].mxu0 %vm129_vm4, %v2512_v5 }
 0x7d8   :  { %5917 = vmatprep.mubr.msk.bf16.mxu0 %vm6262_vm0, %v6261_v6  ;;  %5902 = vmatpush3.bf16.msra.mxu0 %v6125_v18 }
 0x7d9   :  { %5903 = vmatprep.subr.bf16.mxu0 %v6261_v6 }
 0x7dc   :  { %5904 = vmatpush3.bf16.msra.mxu0 %v6126_v1 }
 0x7dd   :  { %5905 = vmatprep.subr.bf16.mxu0 %v6261_v6 }
 0x7e0   :  { %5906 = vmatpush3.bf16.msra.mxu0 %v6127_v2 }
 0x7e1   :  { %5907 = vmatprep.subr.bf16.mxu0 %v6261_v6 }
 0x7e4   :  { %5908 = vmatpush3.bf16.msra.mxu0 %v6128_v3 }
 0x7e5   :  { %5909 = vmatprep.subr.bf16.mxu0 %v6261_v6 }
 0x7e8   :  { %5910 = vmatpush3.bf16.msra.mxu0 %v6129_v4  ;;  %v6883_v4 = vld [vmem:[%s7421_s1 + $0x20] ss:$8 sps:$4 sm:$0xff]  }
 0x7e9   :  { %5911 = vmatprep.subr.bf16.mxu0 %v6261_v6 }
 0x7ec   :  { %5912 = vmatpush3.bf16.msra.mxu0 %v6130_v44  ;;  %v6135_v44 = vld [vmem:[%s7421_s1 + $0x30] ss:$8 sps:$4 sm:$0xff]  }
 0x7ed   :  { %5913 = vmatprep.subr.bf16.mxu0 %v6261_v6 }
 0x7f0   :  { %5914 = vmatpush3.bf16.msra.mxu0 %v6131_v34 }
 0x7f1   :  { %5915 = vmatprep.subr.bf16.mxu0 %v6261_v6 }
 0x7f4   :  { %5916 = vmatpush3.bf16.msra.mxu0 %v6132_v35 }
 0x7f5   :  { %5959 = vmatprep.subr.mxu0 %v6261_v6 }
 0x8aa   :  { %v2560_v43 = vpop.f32.mrb[24].mxu0 }
 0x8ab   :  { %v2561_v62 = vadd.f32 %v2560_v43, %v2516_v41  ;;  %v5891_v9 = vpop.f32.mrb[25].mxu0 }
 0x8ac   :  { %v2563_v36 = vpop.f32.mrb[26].mxu0 }
 0x8ad   :  { %v6791_v46 = vadd.f32 %v2561_v62, %v6363_v30  ;;  %v2564_v60 = vadd.f32 %v2563_v36, %v2516_v41  ;;  %v5892_v21 = vpop.f32.mrb[27].mxu0 }
 0x8ae   :  { %v2669_v21 = vsub.s32 5, %v6383_v55 }
 0x8af   :  { %v6794_v47 = vadd.f32 %v2564_v60, %v6365_v33  ;;  %v2569_v48 = vsel %vm129_vm4, %v6791_v46, 0.0 }
 0x8b0   :  { %2570 = vadd.xlane.f32.xlu1 %v2569_v48  ;;  %v2670_v48 = vrot.slane %v6785_v40, %v2669_v21 }
 0x8b1   :  { %v2572_v49 = vsel %vm129_vm4, %v6794_v47, 0.0 }
 0x8b2   :  { %2573 = vadd.xlane.f32.xlu0 %v2572_v49 }
 0x93d   :  { %v2571_v51 = vpop.xlane.xlu1 %2570 }
 0x93e   :  { %v2575_v52 = vmul.f32 0.03125, %v2571_v51 }
 0x93f   :  { %v2574_v53 = vpop.xlane.xlu0 %2573 }
 0x940   :  { %v2577_v54 = vsub.f32 %v6791_v46, %v2575_v52  ;;  %v2576_v30 = vmul.f32 0.03125, %v2574_v53 }
 0x942   :  { %v2578_v57 = vsub.f32 %v6794_v47, %v2576_v30  ;;  %v2579_v58 = vmul.f32 %v2577_v54, %v2577_v54 }
 0x944   :  { %v2581_v33 = vsel %vm129_vm4, %v2579_v58, 0.0  ;;  %v2580_v59 = vmul.f32 %v2578_v57, %v2578_v57 }
 0x945   :  { %2582 = vadd.xlane.f32.xlu0 %v2581_v33 }
 0x946   :  { %v2584_v63 = vsel %vm129_vm4, %v2580_v59, 0.0 }
 0x947   :  { %2585 = vadd.xlane.f32.xlu1 %v2584_v63 }
 0x9d2   :  { %v2583_v50 = vpop.xlane.xlu0 %2582 }
 0x9d3   :  { %v2587_v12 = vmul.f32 0.03125, %v2583_v50 }
 0x9d4   :  { %v2586_v14 = vpop.xlane.xlu1 %2585 }
 0x9d5   :  { %v2589_v42 = vadd.f32 1e-05, %v2587_v12  ;;  %v2588_v13 = vmul.f32 0.03125, %v2586_v14 }
 0x9d7   :  { %6183 = vrsqrt.f32 %v2589_v42  ;;  %v2590_v15 = vadd.f32 1e-05, %v2588_v13 }
 0x9d9   :  { %6185 = vrsqrt.f32 %v2590_v15 }
 0x9e1   :  { %v6184_v24 = vpop.eup %6183 }
 0x9e2   :  { %v2593_v45 = vmul.f32 %v6184_v24, %v2577_v54 }
 0x9e3   :  { %v6186_v8 = vpop.eup %6185 }
 0x9e4   :  { %v2599_v10 = vmul.f32 %v2598_v19, %v2593_v45  ;;  %v2594_v11 = vmul.f32 %v6186_v8, %v2578_v57 }
 0x9e6   :  { %v2600_v26 = vmul.f32 %v2598_v19, %v2594_v11  ;;  %v2605_v28 = vadd.f32 %v2604_v25, %v2599_v10  ;;  %v5604_v19 = vld [vmem:[%s7423_s3 + $0x8] sm:$0xff] }
 0x9e7   :  { %v2815_v24 = vrot.slane %v5604_v19, %v6386_v56 }
 0x9e8   :  { %v2606_v29 = vadd.f32 %v2604_v25, %v2600_v26  ;;  %v2821_v26 = vrot.slane %v5604_v19, %v6393_v61 }
 0x9ea   :  { %v2607_v32 = vpack.c.bf16 %v2606_v29, %v2605_v28 }
 0x9ec   :  { %5898 = vmatmul.mubr.msk.bf16.vlgmr.msra.gmra.mrb[32].mxu1 %vm129_vm4, %v2607_v32 }
 0x9ed   :  { %5925 = vmatprep.mubr.msk.bf16.mxu1 %vm6262_vm0, %v6261_v6  ;;  %5922 = vmatpush3.bf16.msra.mxu1 %v6883_v4 }
 0x9ee   :  { %5923 = vmatprep.subr.bf16.mxu1 %v6261_v6 }
 0x9f1   :  { %5924 = vmatpush3.bf16.msra.mxu1 %v6135_v44 }
 0x9f2   :  { %5929 = vmatprep.subr.mxu1 %v6261_v6 }
 0xabf   :  { %v2657_v39 = vpop.f32.mrb[32].mxu1 }
 0xac0   :  { %v2658_v23 = vadd.f32 %v2657_v39, %v2611_v38  ;;  %v5899_v5 = vpop.f32.mrb[33].mxu1 }
 0xac1   :  { %v2660_v41 = vpop.f32.mrb[34].mxu1 }
 0xac2   :  { %v2661_v43 = vadd.f32 %v2660_v41, %v2611_v38  ;;  %v5900_v62 = vpop.f32.mrb[35].mxu1  ;;  %v2664_v9 = vmax.f32 %v2658_v23, 0.0 }
 0xac4   :  { %v2665_v36 = vmax.f32 %v2661_v43, 0.0 }
 0xac6   :  { %v2666_v60 = vpack.c.bf16 %v2665_v36, %v2664_v9 }
 0xac8   :  { %5918 = vmatmul.mubr.bf16.vlgmr.msra.gmra.mrb[28].mxu0 %v2666_v60 }
 0xac9   :  { %5961 = vmatprep.mubr.msk.f32.mxu0 %vm6262_vm0, %v6261_v6 }
 0xb9b   :  { %v2753_v49 = vpop.f32.mrb[28].mxu0 }
 0xb9c   :  { %v2754_v51 = vadd.f32 %v2753_v49, %v2670_v48  ;;  %v5919_v52 = vpop.f32.mrb[29].mxu0 }
 0xb9d   :  { %v2756_v53 = vpop.f32.mrb[30].mxu0 }
 0xb9e   :  { %v6867_v54 = vadd.f32 %v2754_v51, %v6791_v46  ;;  %v2757_v30 = vadd.f32 %v2756_v53, %v2670_v48  ;;  %v5920_v57 = vpop.f32.mrb[31].mxu0 }
 0xba0   :  { %v6870_v58 = vadd.f32 %v2757_v30, %v6794_v47  ;;  %v2786_v33 = vsel %vm129_vm4, %v6867_v54, 0.0 }
 0xba1   :  { %2787 = vadd.xlane.f32.xlu0 %v2786_v33 }
 0xba2   :  { %v2789_v59 = vsel %vm129_vm4, %v6870_v58, 0.0 }
 0xba3   :  { %2790 = vadd.xlane.f32.xlu1 %v2789_v59 }
 0xc2e   :  { %v2788_v40 = vpop.xlane.xlu0 %2787 }
 0xc2f   :  { %v2792_v63 = vmul.f32 0.03125, %v2788_v40 }
 0xc30   :  { %v2791_v0 = vpop.xlane.xlu1 %2790 }
 0xc31   :  { %v2794_v7 = vsub.f32 %v6867_v54, %v2792_v63  ;;  %v2793_v46 = vmul.f32 0.03125, %v2791_v0 }
 0xc33   :  { %v2795_v18 = vsub.f32 %v6870_v58, %v2793_v46  ;;  %v2796_v1 = vmul.f32 %v2794_v7, %v2794_v7 }
 0xc35   :  { %v2798_v47 = vsel %vm129_vm4, %v2796_v1, 0.0  ;;  %v2797_v2 = vmul.f32 %v2795_v18, %v2795_v18 }
 0xc36   :  { %2799 = vadd.xlane.f32.xlu0 %v2798_v47 }
 0xc37   :  { %v2801_v3 = vsel %vm129_vm4, %v2797_v2, 0.0 }
 0xc38   :  { %2802 = vadd.xlane.f32.xlu1 %v2801_v3 }
 0xcc3   :  { %v2800_v50 = vpop.xlane.xlu0 %2799 }
 0xcc4   :  { %v2804_v12 = vmul.f32 0.03125, %v2800_v50 }
 0xcc5   :  { %v2803_v14 = vpop.xlane.xlu1 %2802 }
 0xcc6   :  { %v2806_v42 = vadd.f32 1e-05, %v2804_v12  ;;  %v2805_v13 = vmul.f32 0.03125, %v2803_v14 }
 0xcc8   :  { %6187 = vrsqrt.f32 %v2806_v42  ;;  %v2807_v15 = vadd.f32 1e-05, %v2805_v13 }
 0xcca   :  { %6189 = vrsqrt.f32 %v2807_v15 }
 0xcd2   :  { %v6188_v45 = vpop.eup %6187 }
 0xcd3   :  { %v2810_v8 = vmul.f32 %v6188_v45, %v2794_v7 }
 0xcd4   :  { %v6190_v10 = vpop.eup %6189 }
 0xcd5   :  { %v2816_v11 = vmul.f32 %v2815_v24, %v2810_v8  ;;  %v2811_v25 = vmul.f32 %v6190_v10, %v2795_v18 }
 0xcd7   :  { %v2817_v28 = vmul.f32 %v2815_v24, %v2811_v25  ;;  %v2822_v29 = vadd.f32 %v2821_v26, %v2816_v11 }
 0xcd9   :  { %v2823_v32 = vadd.f32 %v2821_v26, %v2817_v28 }
 0xcdb   :  { %v2824_v34 = vpack.c.bf16 %v2823_v32, %v2822_v29 }
 0xcdd   :  { %5926 = vmatmul.mubr.msk.bf16.vlgmr.msra.gmra.mrb[36].mxu1 %vm129_vm4, %v2824_v34 }
 0xcde   :  { %5931 = vmatprep.mubr.msk.f32.mxu1 %vm6262_vm0, %v6261_v6 }
 0xdb0   :  { %v2874_v35 = vpop.f32.mrb[36].mxu1 }
 0xdb1   :  { %2907 = vrot.lane.b32.xlu1 %v2874_v35, %s6265_s21  ;;  %2901 = vrot.lane.b32.xlu0 %v2874_v35, %s6264_s20  ;;  %v5927_v38 = vpop.f32.mrb[37].mxu1 }
 0xdb2   :  { %v6901_v39 = vpop.f32.mrb[38].mxu1 }
 0xdb3   :  { %v5928_v23 = vpop.f32.mrb[39].mxu1 }
 0xdb5   :  { %2913 = vrot.lane.b32.xlu1 %v2874_v35, %s6267_s23  ;;  %2919 = vrot.lane.b32.xlu0 %v2874_v35, %s6266_s22 }
 0xdb9   :  { %2883 = vrot.lane.b32.xlu1 %v2874_v35, %s6263_s19  ;;  %2889 = vrot.lane.b32.xlu0 %v2874_v35, %s6268_s24 }
 0xdbd   :  { %2895 = vrot.lane.b32.xlu1 %v2874_v35, %s6269_s25  ;;  %2903 = vrot.lane.b32.xlu0 %v6901_v39, %s6264_s20 }
 0xdc1   :  { %2909 = vrot.lane.b32.xlu1 %v6901_v39, %s6265_s21  ;;  %2915 = vrot.lane.b32.xlu0 %v6901_v39, %s6267_s23 }
 0xdc5   :  { %2921 = vrot.lane.b32.xlu1 %v6901_v39, %s6266_s22  ;;  %2885 = vrot.lane.b32.xlu0 %v6901_v39, %s6263_s19 }
 0xdc9   :  { %2891 = vrot.lane.b32.xlu1 %v6901_v39, %s6268_s24  ;;  %2897 = vrot.lane.b32.xlu0 %v6901_v39, %s6269_s25  ;;  %s6281_s24 = smov [#allocation2]  }
 0xdcd   :  { %2931 = vrot.lane.b32.xlu1 %v2874_v35, %s6276_s29  ;;  %2925 = vrot.lane.b32.xlu0 %v2874_v35, %s6270_s26 }
 0xdd1   :  { %2937 = vrot.lane.b32.xlu1 %v2874_v35, %s6274_s27  ;;  %2943 = vrot.lane.b32.xlu0 %v2874_v35, %s6275_s28 }
 0xe23   :  { %v2908_v5 = vpop.permute.xlu1 %2907  ;;  %v2902_v41 = vpop.permute.xlu0 %2901 }
 0xe27   :  { %v2914_v43 = vpop.permute.xlu1 %2913  ;;  %v2920_v62 = vpop.permute.xlu0 %2919 }
 0xe28   :  { %v2981_v9 = vcombine.low %v2902_v41, %v2914_v43  ;;  %v2982_v36 = vcombine.high %v2902_v41, %v2914_v43  ;;  %v2997_v60 = vcombine.low %v2908_v5, %v2920_v62  ;;  %v2998_v48 = vcombine.high %v2908_v5, %v2920_v62 }
 0xe2a   :  { %v2989_v49 = vrot.slane %v2981_v9, %v6434_v20  ;;  %v2996_v51 = vrot.slane %v2982_v36, %v6434_v20  ;;  %v3005_v52 = vrot.slane %v2997_v60, %v6434_v20  ;;  %v3012_v53 = vrot.slane %v2998_v48, %v6434_v20 }
 0xe2b   :  { %v2884_v30 = vpop.permute.xlu1 %2883  ;;  %v2890_v57 = vpop.permute.xlu0 %2889 }
 0xe2c   :  { %v3045_v33 = vcombine.low %v2989_v49, %v3005_v52  ;;  %v3046_v59 = vcombine.high %v2989_v49, %v3005_v52  ;;  %v3061_v40 = vcombine.low %v2996_v51, %v3012_v53  ;;  %v3062_v63 = vcombine.high %v2996_v51, %v3012_v53 }
 0xe2d   :  { %v2949_v1 = vcombine.low %v2874_v35, %v2890_v57  ;;  %v2950_v47 = vcombine.high %v2874_v35, %v2890_v57 }
 0xe2e   :  { %v3053_v0 = vrot.slane %v3045_v33, %v6437_v27  ;;  %v3060_v7 = vrot.slane %v3046_v59, %v6437_v27  ;;  %v3069_v46 = vrot.slane %v3061_v40, %v6437_v27  ;;  %v3076_v18 = vrot.slane %v3062_v63, %v6437_v27 }
 0xe2f   :  { %v2896_v2 = vpop.permute.xlu1 %2895  ;;  %v2904_v3 = vpop.permute.xlu0 %2903  ;;  %v2957_v8 = vrot.slane %v2949_v1, %v6434_v20  ;;  %v2964_v10 = vrot.slane %v2950_v47, %v6434_v20 }
 0xe30   :  { %v5609_v44 = vcombine.low %v3053_v0, %v3060_v7  ;;  %v5611_v50 = vcombine.high %v3053_v0, %v3060_v7  ;;  %v5613_v12 = vcombine.low %v3069_v46, %v3076_v18  ;;  %v5615_v14 = vcombine.high %v3069_v46, %v3076_v18 }
 0xe31   :  { %v2965_v42 = vcombine.low %v2884_v30, %v2896_v2  ;;  %v2966_v13 = vcombine.high %v2884_v30, %v2896_v2 }
 0xe32   :  { %v6935_v15 = vrot.slane %v5609_v44, %v6434_v20  ;;  %v6938_v19 = vrot.slane %v5611_v50, %v6434_v20  ;;  %v6941_v24 = vrot.slane %v5613_v12, %v6434_v20  ;;  %v6944_v45 = vrot.slane %v5615_v14, %v6434_v20 }
 0xe33   :  { %v2973_v11 = vrot.slane %v2965_v42, %v6434_v20  ;;  %v2980_v25 = vrot.slane %v2966_v13, %v6434_v20  ;;  %v2910_v26 = vpop.permute.xlu1 %2909  ;;  %v2916_v28 = vpop.permute.xlu0 %2915 }
 0xe34   :  { %v3437_v29 = vcombine.low %v6935_v15, %v6938_v19  ;;  %v3469_v32 = vcombine.low %v6941_v24, %v6944_v45  ;;  %v3185_v5 = vcombine.low %v2904_v3, %v2916_v28  ;;  %v3186_v41 = vcombine.high %v2904_v3, %v2916_v28 }
 0xe35   :  { %v3013_v34 = vcombine.low %v2957_v8, %v2973_v11  ;;  %v3014_v35 = vcombine.high %v2957_v8, %v2973_v11  ;;  %v3029_v38 = vcombine.low %v2964_v10, %v2980_v25  ;;  %v3030_v23 = vcombine.high %v2964_v10, %v2980_v25 }
 0xe36   :  { %v6955_v43 = vrot.slane %v3437_v29, %v6437_v27  ;;  %v6958_v62 = vrot.slane %v3469_v32, %v6437_v27  ;;  %v3193_v52 = vrot.slane %v3185_v5, %v6434_v20  ;;  %v3200_v63 = vrot.slane %v3186_v41, %v6434_v20 }
 0xe37   :  { %v3021_v9 = vrot.slane %v3013_v34, %v6437_v27  ;;  %v3028_v36 = vrot.slane %v3014_v35, %v6437_v27  ;;  %v3037_v60 = vrot.slane %v3029_v38, %v6437_v27  ;;  %v3044_v48 = vrot.slane %v3030_v23, %v6437_v27  ;;  %v2922_v49 = vpop.permute.xlu1 %2921  ;;  %v2886_v51 = vpop.permute.xlu0 %2885 }
 0xe38   :  { %v3201_v53 = vcombine.low %v2910_v26, %v2922_v49  ;;  %v3202_v30 = vcombine.high %v2910_v26, %v2922_v49  ;;  %v3489_v46 = vcombine.low %v6955_v43, %v6958_v62  ;;  %v3438_v18 = vcombine.high %v6935_v15, %v6938_v19 }
 0xe39   :  { %v5608_v57 = vcombine.low %v3021_v9, %v3028_v36  ;;  %v5610_v33 = vcombine.high %v3021_v9, %v3028_v36  ;;  %v5612_v59 = vcombine.low %v3037_v60, %v3044_v48  ;;  %v5614_v40 = vcombine.high %v3037_v60, %v3044_v48 }
 0xe3a   :  { %v3209_v0 = vrot.slane %v3201_v53, %v6434_v20  ;;  %v3216_v7 = vrot.slane %v3202_v30, %v6434_v20  ;;  %v3470_v1 = vcombine.high %v6941_v24, %v6944_v45  ;;  %5930 = vmatpush3.xpose.msk.msra.mxu1 %vm1110_vm5, %v3489_v46  ;;  %v3490_v11 = vcombine.high %v6955_v43, %v6958_v62 }
 0xe3b   :  { %v6975_v47 = vrot.slane %v5608_v57, %v6434_v20  ;;  %v6978_v2 = vrot.slane %v5610_v33, %v6434_v20  ;;  %v2892_v3 = vpop.permute.xlu1 %2891  ;;  %v2898_v44 = vpop.permute.xlu0 %2897  ;;  %v6982_v13 = vrot.slane %v5612_v59, %v6434_v20  ;;  %v6985_v8 = vrot.slane %v5614_v40, %v6434_v20  ;;  %5934 = vmatprep.subr.mxu1 %v6261_v6 }
 0xe3c   :  { %v3249_v50 = vcombine.low %v3193_v52, %v3209_v0  ;;  %v3250_v12 = vcombine.high %v3193_v52, %v3209_v0  ;;  %v3265_v14 = vcombine.low %v3200_v63, %v3216_v7  ;;  %v3266_v42 = vcombine.high %v3200_v63, %v3216_v7 }
 0xe3d   :  { %v3421_v10 = vcombine.low %v6975_v47, %v6978_v2  ;;  %v3153_v32 = vcombine.low %v6901_v39, %v2892_v3  ;;  %v3154_v34 = vcombine.high %v6901_v39, %v2892_v3  ;;  %v3169_v35 = vcombine.low %v2886_v51, %v2898_v44 }
 0xe3e   :  { %v3257_v25 = vrot.slane %v3249_v50, %v6437_v27  ;;  %v3264_v26 = vrot.slane %v3250_v12, %v6437_v27  ;;  %v3273_v28 = vrot.slane %v3265_v14, %v6437_v27  ;;  %v3280_v29 = vrot.slane %v3266_v42, %v6437_v27 }
 0xe3f   :  { %v3170_v38 = vcombine.high %v2886_v51, %v2898_v44  ;;  %v2932_v23 = vpop.permute.xlu1 %2931  ;;  %v2926_v5 = vpop.permute.xlu0 %2925  ;;  %v3161_v62 = vrot.slane %v3153_v32, %v6434_v20  ;;  %v3168_v60 = vrot.slane %v3154_v34, %v6434_v20  ;;  %v3177_v48 = vrot.slane %v3169_v35, %v6434_v20 }
 0xe40   :  { %v5619_v41 = vcombine.low %v3257_v25, %v3264_v26  ;;  %v5621_v9 = vcombine.high %v3257_v25, %v3264_v26  ;;  %v5623_v36 = vcombine.low %v3273_v28, %v3280_v29  ;;  %v5625_v43 = vcombine.high %v3273_v28, %v3280_v29 }
 0xe41   :  { %v3184_v49 = vrot.slane %v3170_v38, %v6434_v20  ;;  %v3422_v52 = vcombine.high %v6975_v47, %v6978_v2  ;;  %v3453_v51 = vcombine.low %v6982_v13, %v6985_v8  ;;  %v3217_v57 = vcombine.low %v3161_v62, %v3177_v48 }
 0xe42   :  { %v7007_v53 = vrot.slane %v5619_v41, %v6434_v20  ;;  %v7010_v30 = vrot.slane %v5621_v9, %v6434_v20  ;;  %v3218_v33 = vcombine.high %v3161_v62, %v3177_v48  ;;  %v3454_v0 = vcombine.high %v6982_v13, %v6985_v8 }
 0xe43   :  { %v3233_v59 = vcombine.low %v3168_v60, %v3184_v49  ;;  %v3234_v40 = vcombine.high %v3168_v60, %v3184_v49  ;;  %v2938_v63 = vpop.permute.xlu1 %2937  ;;  %v7015_v7 = vrot.slane %v5623_v36, %v6434_v20  ;;  %v7018_v46 = vrot.slane %v5625_v43, %v6434_v20  ;;  %v2944_v12 = vpop.permute.xlu0 %2943 }
 0xe44   :  { %v3641_v47 = vcombine.low %v7007_v53, %v7010_v30  ;;  %v3225_v2 = vrot.slane %v3217_v57, %v6437_v27  ;;  %v3232_v3 = vrot.slane %v3218_v33, %v6437_v27  ;;  %v3429_v14 = vrot.slane %v3421_v10, %v6437_v27 }
 0xe45   :  { %v3241_v44 = vrot.slane %v3233_v59, %v6437_v27  ;;  %v3248_v50 = vrot.slane %v3234_v40, %v6437_v27  ;;  %v3461_v42 = vrot.slane %v3453_v51, %v6437_v27  ;;  %v3085_v13 = vcombine.low %v2926_v5, %v2938_v63 }
 0xe46   :  { %v3086_v8 = vcombine.high %v2926_v5, %v2938_v63  ;;  %v5618_v25 = vcombine.low %v3225_v2, %v3232_v3  ;;  %v5620_v26 = vcombine.high %v3225_v2, %v3232_v3  ;;  %v3642_v32 = vcombine.high %v7007_v53, %v7010_v30 }
 0xe47   :  { %v5622_v28 = vcombine.low %v3241_v44, %v3248_v50  ;;  %v5624_v29 = vcombine.high %v3241_v44, %v3248_v50  ;;  %v3485_v34 = vcombine.low %v3429_v14, %v3461_v42  ;;  %v3093_v35 = vrot.slane %v3085_v13, %v6434_v20 }
 0xe48   :  { %v3101_v38 = vcombine.low %v2932_v23, %v2944_v12  ;;  %v3673_v41 = vcombine.low %v7015_v7, %v7018_v46  ;;  %v3674_v10 = vcombine.high %v7015_v7, %v7018_v46  ;;  %v3569_v9 = vrot.slane %v5618_v25, %v6434_v20 }
 0xe49   :  { %v3585_v5 = vrot.slane %v5620_v26, %v6434_v20  ;;  %v3601_v36 = vrot.slane %v5622_v28, %v6434_v20  ;;  %5932 = vmatmul.mubr.msk.f32.vlgmr.msra.gmra.mrb[40].mxu1 %vm1110_vm5, %v3485_v34  ;;  %v3100_v43 = vrot.slane %v3086_v8, %v6434_v20  ;;  %v3102_v62 = vcombine.high %v2932_v23, %v2944_v12 }
 0xe4a   :  { %v3109_v60 = vrot.slane %v3101_v38, %v6434_v20  ;;  %v3617_v48 = vrot.slane %v5624_v29, %v6434_v20  ;;  %5935 = vmatpush3.xpose.msk.msra.mxu1 %vm1110_vm5, %v3490_v11  ;;  %v3486_v51 = vcombine.high %v3429_v14, %v3461_v42  ;;  %v3452_v57 = vrot.slane %v3438_v18, %v6437_v27 }
 0xe4b   :  { %v3625_v49 = vcombine.low %v3569_v9, %v3585_v5  ;;  %v3116_v33 = vrot.slane %v3102_v62, %v6434_v20  ;;  %5936 = vmatprep.mubr.msk.f32.mxu1 %vm6262_vm0, %v6261_v6  ;;  %5939 = vmatprep.subr.mxu1 %v6261_v6  ;;  %v3484_v11 = vrot.slane %v3470_v1, %v6437_v27 }
 0xe4c   :  { %v3117_v59 = vcombine.low %v3093_v35, %v3109_v60  ;;  %v3118_v40 = vcombine.high %v3093_v35, %v3109_v60  ;;  %v3436_v23 = vrot.slane %v3422_v52, %v6437_v27  ;;  %v3468_v63 = vrot.slane %v3454_v0, %v6437_v27 }
 0xe4d   :  { %v7058_v15 = vrot.slane %v3642_v32, %v6437_v27  ;;  %v3133_v7 = vcombine.low %v3100_v43, %v3116_v33  ;;  %v3134_v46 = vcombine.high %v3100_v43, %v3116_v33  ;;  %5937 = vmatmul.mubr.msk.f32.vlgmr.msra.gmra.mrb[42].mxu1 %vm1110_vm5, %v3486_v51  ;;  %v3626_v2 = vcombine.high %v3569_v9, %v3585_v5 }
 0xe4e   :  { %v3125_v19 = vrot.slane %v3117_v59, %v6437_v27  ;;  %v3132_v18 = vrot.slane %v3118_v40, %v6437_v27  ;;  %v3658_v3 = vcombine.high %v3601_v36, %v3617_v48  ;;  %v3491_v44 = vcombine.low %v3452_v57, %v3484_v11  ;;  %5941 = vmatprep.mubr.msk.f32.mxu1 %vm6262_vm0, %v6261_v6 }
 0xe4f   :  { %v7066_v24 = vrot.slane %v3674_v10, %v6437_v27  ;;  %v3141_v45 = vrot.slane %v3133_v7, %v6437_v27  ;;  %v3148_v1 = vrot.slane %v3134_v46, %v6437_v27  ;;  %v3657_v50 = vcombine.low %v3601_v36, %v3617_v48 }
 0xe50   :  { %v3493_v52 = vcombine.low %v3125_v19, %v3132_v18  ;;  %v5616_v0 = vcombine.high %v3125_v19, %v3132_v18  ;;  %5940 = vmatpush3.xpose.msk.msra.mxu1 %vm1110_vm5, %v3491_v44  ;;  %v3487_v12 = vcombine.low %v3436_v23, %v3468_v63  ;;  %v3492_v14 = vcombine.high %v3452_v57, %v3484_v11 }
 0xe51   :  { %v3695_v42 = vcombine.low %v7058_v15, %v7066_v24  ;;  %v3509_v25 = vcombine.low %v3141_v45, %v3148_v1  ;;  %v5617_v26 = vcombine.high %v3141_v45, %v3148_v1  ;;  %5944 = vmatprep.subr.mxu1 %v6261_v6  ;;  %v3649_v28 = vrot.slane %v3641_v47, %v6437_v27 }
 0xe52   :  { %v3500_v13 = vrot.slane %v3493_v52, %v6434_v20  ;;  %v3508_v8 = vrot.slane %v5616_v0, %v6434_v20  ;;  %v3681_v29 = vrot.slane %v3673_v41, %v6437_v27  ;;  %v3640_v32 = vrot.slane %v3626_v2, %v6437_v27 }
 0xe53   :  { %5960 = vmatpush3.xpose.msk.msra.mxu0 %vm1110_vm5, %v3695_v42  ;;  %v3672_v34 = vrot.slane %v3658_v3, %v6437_v27  ;;  %v3516_v35 = vrot.slane %v3509_v25, %v6434_v20  ;;  %v3524_v38 = vrot.slane %v5617_v26, %v6434_v20  ;;  %5942 = vmatmul.mubr.msk.f32.vlgmr.msra.gmra.mrb[44].mxu1 %vm1110_vm5, %v3487_v12 }
 0xe54   :  { %5945 = vmatpush3.xpose.msk.msra.mxu1 %vm1110_vm5, %v3492_v14  ;;  %5946 = vmatprep.mubr.msk.f32.mxu1 %vm6262_vm0, %v6261_v6  ;;  %v3488_v10 = vcombine.high %v3436_v23, %v3468_v63  ;;  %v3525_v30 = vcombine.low %v3500_v13, %v3508_v8  ;;  %v3633_v47 = vrot.slane %v3625_v49, %v6437_v27 }
 0xe55   :  { %v3691_v53 = vcombine.low %v3640_v32, %v3672_v34  ;;  %5949 = vmatprep.subr.mxu1 %v6261_v6  ;;  %v3665_v41 = vrot.slane %v3657_v50, %v6437_v27  ;;  %5969 = vmatprep.subr.bf16.mxu0 %v6261_v6  ;;  %v3541_v9 = vcombine.low %v3516_v35, %v3524_v38 }
 0xe56   :  { %v3693_v5 = vcombine.low %v3649_v28, %v3681_v29  ;;  %v3533_v36 = vrot.slane %v3525_v30, %v6437_v27  ;;  %v3526_v43 = vcombine.high %v3500_v13, %v3508_v8  ;;  %v3542_v62 = vcombine.high %v3516_v35, %v3524_v38 }
 0xe57   :  { %5962 = vmatmul.mubr.msk.f32.vlgmr.msra.gmra.mrb[32].mxu0 %vm1110_vm5, %v3691_v53  ;;  %5947 = vmatmul.mubr.msk.f32.vlgmr.msra.gmra.mrb[46].mxu1 %vm1110_vm5, %v3488_v10  ;;  %v3549_v60 = vrot.slane %v3541_v9, %v6437_v27  ;;  %v3689_v51 = vcombine.low %v3633_v47, %v3665_v41  ;;  %v3694_v59 = vcombine.high %v3649_v28, %v3681_v29 }
 0xe58   :  { %5971 = vmatprep.mubr.msk.bf16.mxu0 %vm6262_vm0, %v6261_v6  ;;  %5950 = vmatpush3.xpose.msk.msra.mxu1 %vm1110_vm5, %v3693_v5  ;;  %v3540_v48 = vrot.slane %v3526_v43, %v6437_v27  ;;  %v3556_v49 = vrot.slane %v3542_v62, %v6437_v27  ;;  %v3690_v63 = vcombine.high %v3633_v47, %v3665_v41 }
 0xe59   :  { %5951 = vmatprep.mubr.msk.f32.mxu1 %vm6262_vm0, %v6261_v6  ;;  %5954 = vmatprep.subr.mxu1 %v6261_v6  ;;  %v3557_v57 = vcombine.low %v3533_v36, %v3549_v60  ;;  %v3558_v33 = vcombine.high %v3533_v36, %v3549_v60  ;;  %v3696_v7 = vcombine.high %v7058_v15, %v7066_v24 }
 0xe5a   :  { %v7106_v40 = vcombine.low %v3540_v48, %v3556_v49  ;;  %v7108_v11 = vcombine.high %v3540_v48, %v3556_v49  ;;  %v3692_v46 = vcombine.high %v3640_v32, %v3672_v34 }
 0xe5b   :  { %5952 = vmatmul.mubr.msk.f32.vlgmr.msra.gmra.mrb[48].mxu1 %vm1110_vm5, %v3689_v51  ;;  %v4485_v23 = vpack.c.bf16 %v3557_v57, %v3557_v57  ;;  %v4486_v18 = vpack.c.bf16 %v3558_v33, %v3558_v33 }
 0xe5c   :  { %5955 = vmatpush3.xpose.msk.msra.mxu1 %vm1110_vm5, %v3694_v59  ;;  %5956 = vmatprep.mubr.msk.f32.mxu1 %vm6262_vm0, %v6261_v6 }
 0xe5d   :  { %5964 = vmatprep.subr.mxu1 %v6261_v6  ;;  %v4497_v19 = vsel %vm1842_vm7, %v4485_v23, 0  ;;  %v4543_v2 = vsel %vm1842_vm7, %v4486_v18, 0 }
 0xe5e   :  { %5970 = vmatpush3.bf16.msra.mxu0 %v4497_v19 }
 0xe5f   :  { %5957 = vmatmul.mubr.msk.f32.vlgmr.msra.gmra.mrb[50].mxu1 %vm1110_vm5, %v3690_v63  ;;  %5981 = vmatprep.subr.bf16.mxu0 %v6261_v6 }
 0xe60   :  { %5965 = vmatpush3.xpose.msk.msra.mxu1 %vm1110_vm5, %v3696_v7  ;;  %5966 = vmatprep.mubr.msk.f32.mxu1 %vm6262_vm0, %v6261_v6 }
 0xe61   :  { %5975 = vmatprep.subr.bf16.mxu1 %v6261_v6 }
 0xe63   :  { %5967 = vmatmul.mubr.msk.f32.vlgmr.msra.gmra.mrb[52].mxu1 %vm1110_vm5, %v3692_v46 }
 0xe64   :  { %5976 = vmatpush3.bf16.msra.mxu1 %v4543_v2  ;;  %5977 = vmatprep.mubr.msk.bf16.mxu1 %vm6262_vm0, %v6261_v6 }
 0xe65   :  { %5987 = vmatprep.subr.bf16.mxu1 %v6261_v6 }
 0xf1c   :  { %v3837_v15 = vpop.f32.mrb[40].mxu1 }
 0xf1d   :  { %v4373_v3 = vmul.f32 0.35355338, %v3837_v15  ;;  %v5933_v44 = vpop.f32.mrb[41].mxu1 }
 0xf1f   :  { %v4381_v24 = vadd.f32 %v4373_v3, %v6553_v17 }
 0xf20   :  { %v3913_v45 = vpop.f32.mrb[42].mxu1 }
 0xf21   :  { %v5938_v1 = vpop.f32.mrb[43].mxu1  ;;  %v4389_v52 = vsel %vm1110_vm5, %v4381_v24, -inf  ;;  %v4374_v14 = vmul.f32 0.35355338, %v3913_v45 }
 0xf22   :  { %4390 = vmax.xlane.f32.xlu1 %v4389_v52 }
 0xf23   :  { %v4382_v38 = vadd.f32 %v4374_v14, %v6553_v17 }
 0xf25   :  { %v4392_v41 = vsel %vm1110_vm5, %v4382_v38, -inf }
 0xf26   :  { %v3989_v0 = vpop.f32.mrb[44].mxu1 }
 0xf27   :  { %v5943_v50 = vpop.f32.mrb[45].mxu1  ;;  %v4375_v32 = vmul.f32 0.35355338, %v3989_v0 }
 0xf29   :  { %v4383_v9 = vadd.f32 %v4375_v32, %v6553_v17 }
 0xf2a   :  { %v4293_v12 = vpop.f32.mrb[32].mxu0  ;;  %v4065_v42 = vpop.f32.mrb[46].mxu1 }
 0xf2b   :  { %v4379_v13 = vmul.f32 0.35355338, %v4293_v12  ;;  %v5963_v8 = vpop.f32.mrb[33].mxu0  ;;  %v4376_v25 = vmul.f32 0.35355338, %v4065_v42  ;;  %v5948_v26 = vpop.f32.mrb[47].mxu1 }
 0xf2c   :  { %v4395_v60 = vsel %vm1110_vm5, %v4383_v9, -inf }
 0xf2d   :  { %v7132_v28 = vadd.f32 %v4379_v13, %v6553_v17  ;;  %v4384_v29 = vadd.f32 %v4376_v25, %v6553_v17 }
 0xf2e   :  { %v4141_v34 = vpop.f32.mrb[48].mxu1 }
 0xf2f   :  { %v4407_v35 = vsel %vm1110_vm5, %v7132_v28, -inf  ;;  %v5953_v10 = vpop.f32.mrb[49].mxu1  ;;  %v4398_v53 = vsel %vm1110_vm5, %v4384_v29, -inf  ;;  %v4377_v30 = vmul.f32 0.35355338, %v4141_v34 }
 0xf30   :  { %4408 = vmax.xlane.f32.xlu0 %v4407_v35  ;;  %4399 = vmax.xlane.f32.xlu1 %v4398_v53 }
 0xf31   :  { %v4385_v48 = vadd.f32 %v4377_v30, %v6553_v17 }
 0xf32   :  { %v4217_v47 = vpop.f32.mrb[50].mxu1 }
 0xf33   :  { %v4378_v5 = vmul.f32 0.35355338, %v4217_v47  ;;  %v5958_v36 = vpop.f32.mrb[51].mxu1  ;;  %v4401_v59 = vsel %vm1110_vm5, %v4385_v48, -inf }
 0xf34   :  { %4393 = vmax.xlane.f32.xlu0 %v4392_v41 }
 0xf35   :  { %v4386_v43 = vadd.f32 %v4378_v5, %v6553_v17 }
 0xf36   :  { %v4369_v62 = vpop.f32.mrb[52].mxu1 }
 0xf37   :  { %v4380_v49 = vmul.f32 0.35355338, %v4369_v62  ;;  %v5968_v51 = vpop.f32.mrb[53].mxu1  ;;  %v4404_v57 = vsel %vm1110_vm5, %v4386_v43, -inf }
 0xf38   :  { %4396 = vmax.xlane.f32.xlu0 %v4395_v60  ;;  %4405 = vmax.xlane.f32.xlu1 %v4404_v57  ;;  %v4487_v57 = vpack.c.bf16 %v7106_v40, %v7106_v40 }
 0xf39   :  { %v4388_v33 = vadd.f32 %v4380_v49, %v6553_v17 }
 0xf3b   :  { %v4410_v23 = vsel %vm1110_vm5, %v4388_v33, -inf }
 0xf3c   :  { %4402 = vmax.xlane.f32.xlu0 %v4401_v59  ;;  %4411 = vmax.xlane.f32.xlu1 %v4410_v23  ;;  %v4589_v23 = vsel %vm1842_vm7, %v4487_v57, 0 }
 0xf4d   :  { %2933 = vrot.lane.b32.xlu1 %v6901_v39, %s6276_s29 }
 0xf52   :  { %2927 = vrot.lane.b32.xlu0 %v6901_v39, %s6270_s26 }
 0xfaf   :  { %v4391_v63 = vpop.xlane.xlu1 %4390 }
 0xfb0   :  { %v4413_v19 = vsub.f32 %v4381_v24, %v4391_v63 }
 0xfb2   :  { %v4421_v18 = vmul.f32 1.442695, %v4413_v19 }
 0xfb4   :  { %6191 = vpow2.f32 %v4421_v18 }
 0xfbd   :  { %v4409_v7 = vpop.xlane.xlu0 %4408  ;;  %v4400_v46 = vpop.xlane.xlu1 %4399 }
 0xfbe   :  { %v6192_v2 = vpop.eup %6191  ;;  %v4416_v17 = vsub.f32 %v4384_v29, %v4400_v46  ;;  %v4419_v41 = vsub.f32 %v7132_v28, %v4409_v7 }
 0xfbf   :  { %v4437_v15 = vsel %vm1110_vm5, %v6192_v2, 0.0 }
 0xfc0   :  { %v4427_v3 = vmul.f32 1.442695, %v4416_v17  ;;  %4438 = vadd.xlane.f32.xlu0 %v4437_v15  ;;  %v4433_v5 = vmul.f32 1.442695, %v4419_v41  ;;  %v4488_v15 = vpack.c.bf16 %v7108_v11, %v7108_v11 }
 0xfc1   :  { %v4394_v44 = vpop.xlane.xlu0 %4393 }
 0xfc2   :  { %v4414_v45 = vsub.f32 %v4382_v38, %v4394_v44  ;;  %6193 = vpow2.f32 %v4427_v3  ;;  %v4635_v11 = vsel %vm1842_vm7, %v4488_v15, 0 }
 0xfc4   :  { %v4423_v1 = vmul.f32 1.442695, %v4414_v45 }
 0xfc5   :  { %v4397_v52 = vpop.xlane.xlu0 %4396  ;;  %v4406_v50 = vpop.xlane.xlu1 %4405 }
 0xfc6   :  { %6195 = vpow2.f32 %v4423_v1  ;;  %v4415_v0 = vsub.f32 %v4383_v9, %v4397_v52  ;;  %v4418_v12 = vsub.f32 %v4386_v43, %v4406_v50 }
 0xfc8   :  { %v4425_v24 = vmul.f32 1.442695, %v4415_v0  ;;  %v4431_v14 = vmul.f32 1.442695, %v4418_v12 }
 0xfc9   :  { %v4403_v42 = vpop.xlane.xlu0 %4402  ;;  %v4412_v47 = vpop.xlane.xlu1 %4411 }
 0xfca   :  { %6197 = vpow2.f32 %v4425_v24  ;;  %v4417_v13 = vsub.f32 %v4385_v48, %v4403_v42  ;;  %v4420_v9 = vsub.f32 %v4388_v33, %v4412_v47 }
 0xfcb   :  { %6199 = vpow2.f32 %v4431_v14 }
 0xfcc   :  { %v4429_v8 = vmul.f32 1.442695, %v4417_v13  ;;  %v7153_v25 = vpop.eup %6193  ;;  %v4435_v36 = vmul.f32 1.442695, %v4420_v9 }
 0xfcd   :  { %v4446_v26 = vsel %vm1110_vm5, %v7153_v25, 0.0  ;;  %v2934_v33 = vpop.permute.xlu1 %2933 }
 0xfce   :  { %6201 = vpow2.f32 %v4429_v8  ;;  %4447 = vadd.xlane.f32.xlu0 %v4446_v26 }
 0xfcf   :  { %6203 = vpow2.f32 %v4433_v5 }
 0xfd0   :  { %v6196_v29 = vpop.eup %6195  ;;  %6205 = vpow2.f32 %v4435_v36 }
 0xfd1   :  { %v4440_v32 = vsel %vm1110_vm5, %v6196_v29, 0.0 }
 0xfd2   :  { %4441 = vadd.xlane.f32.xlu1 %v4440_v32 }
 0xfd4   :  { %v6198_v34 = vpop.eup %6197 }
 0xfd5   :  { %v4443_v35 = vsel %vm1110_vm5, %v6198_v34, 0.0  ;;  %v7159_v38 = vpop.eup %6199 }
 0xfd6   :  { %4444 = vadd.xlane.f32.xlu1 %v4443_v35  ;;  %v4452_v30 = vsel %vm1110_vm5, %v7159_v38, 0.0 }
 0xfd8   :  { %v7161_v10 = vpop.eup %6201 }
 0xfd9   :  { %v4449_v53 = vsel %vm1110_vm5, %v7161_v10, 0.0  ;;  %v7172_v43 = vpop.eup %6203 }
 0xfda   :  { %4450 = vadd.xlane.f32.xlu0 %v4449_v53  ;;  %4453 = vadd.xlane.f32.xlu1 %v4452_v30  ;;  %v7174_v62 = vpop.eup %6205  ;;  %v4455_v60 = vsel %vm1110_vm5, %v7172_v43, 0.0 }
 0xfdb   :  { %v4458_v48 = vsel %vm1110_vm5, %v7174_v62, 0.0 }
 0xfeb   :  { %2939 = vrot.lane.b32.xlu1 %v6901_v39, %s6274_s27 }
 0xff0   :  { %2945 = vrot.lane.b32.xlu0 %v6901_v39, %s6275_s28  ;;  %v2928_v39 = vpop.permute.xlu0 %2927 }
0x100f   :  { %4456 = vadd.xlane.f32.xlu1 %v4455_v60  ;;  %4459 = vadd.xlane.f32.xlu0 %v4458_v48 }
0x1025   :  { %5168 = vrot.lane.b32.xlu0 %v6883_v4, %s6277_s6 }
0x104d   :  { %v4439_v28 = vpop.xlane.xlu0 %4438 }
0x104e   :  { %6207 = vrcp.f32 %v4439_v28 }
0x1058   :  { %v6208_v49 = vpop.eup %6207 }
0x1059   :  { %v4469_v51 = vmul.f32 %v6208_v49, %v6192_v2 }
0x105b   :  { %v4477_v59 = vpack.c.bf16 %v4469_v51, %v4469_v51  ;;  %v4448_v4 = vpop.xlane.xlu0 %4447 }
0x105d   :  { %5972 = vmatmul.mubr.msk.bf16.vlgmr.msra.gmra.mrb[36].mxu0 %vm1110_vm5, %v4477_v59 }
0x105e   :  { %5982 = vmatpush3.bf16.msra.mxu0 %v4589_v23  ;;  %5983 = vmatprep.mubr.msk.bf16.mxu0 %vm6262_vm0, %v6261_v6 }
0x105f   :  { %v4442_v63 = vpop.xlane.xlu1 %4441  ;;  %5993 = vmatprep.subr.bf16.mxu0 %v6261_v6 }
0x1060   :  { %6209 = vrcp.f32 %v4442_v63 }
0x1061   :  { %6211 = vrcp.f32 %v4448_v4 }
0x1063   :  { %v4445_v19 = vpop.xlane.xlu1 %4444 }
0x1064   :  { %6213 = vrcp.f32 %v4445_v19 }
0x1067   :  { %v4451_v18 = vpop.xlane.xlu0 %4450  ;;  %v4454_v40 = vpop.xlane.xlu1 %4453 }
0x1068   :  { %6215 = vrcp.f32 %v4451_v18 }
0x1069   :  { %6217 = vrcp.f32 %v4454_v40 }
0x106a   :  { %v6210_v7 = vpop.eup %6209 }
0x106b   :  { %v4470_v46 = vmul.f32 %v6210_v7, %v6196_v29  ;;  %v2946_v2 = vpop.permute.xlu0 %2945  ;;  %v2940_v17 = vpop.permute.xlu1 %2939 }
0x106c   :  { %v3305_v3 = vcombine.low %v2934_v33, %v2946_v2  ;;  %v3306_v44 = vcombine.high %v2934_v33, %v2946_v2  ;;  %v3289_v45 = vcombine.low %v2928_v39, %v2940_v17  ;;  %v3290_v1 = vcombine.high %v2928_v39, %v2940_v17  ;;  %v6212_v52 = vpop.eup %6211 }
0x106d   :  { %v4478_v0 = vpack.c.bf16 %v4470_v46, %v4470_v46  ;;  %v4472_v35 = vmul.f32 %v6212_v52, %v7153_v25 }
0x106e   :  { %v6214_v50 = vpop.eup %6213  ;;  %v3313_v12 = vrot.slane %v3305_v3, %v6434_v20  ;;  %v3320_v24 = vrot.slane %v3306_v44, %v6434_v20  ;;  %v3297_v14 = vrot.slane %v3289_v45, %v6434_v20  ;;  %v3304_v42 = vrot.slane %v3290_v1, %v6434_v20 }
0x106f   :  { %v4471_v13 = vmul.f32 %v6214_v50, %v6198_v34  ;;  %5978 = vmatmul.mubr.msk.bf16.vlgmr.msra.gmra.mrb[56].mxu1 %vm1110_vm5, %v4478_v0  ;;  %v4480_v60 = vpack.c.bf16 %v4472_v35, %v4472_v35 }
0x1070   :  { %v3321_v8 = vcombine.low %v3297_v14, %v3313_v12  ;;  %v3322_v26 = vcombine.high %v3297_v14, %v3313_v12  ;;  %v3337_v29 = vcombine.low %v3304_v42, %v3320_v24  ;;  %v3338_v32 = vcombine.high %v3304_v42, %v3320_v24  ;;  %5988 = vmatpush3.bf16.msra.mxu1 %v4635_v11 }
0x1071   :  { %v4479_v53 = vpack.c.bf16 %v4471_v13, %v4471_v13  ;;  %5989 = vmatprep.mubr.msk.bf16.mxu1 %vm6262_vm0, %v6261_v6  ;;  %5999 = vmatprep.subr.bf16.mxu1 %v6261_v6 }
0x1072   :  { %v3329_v34 = vrot.slane %v3321_v8, %v6437_v27  ;;  %v3336_v30 = vrot.slane %v3322_v26, %v6437_v27  ;;  %v3345_v47 = vrot.slane %v3337_v29, %v6437_v27  ;;  %v3352_v41 = vrot.slane %v3338_v32, %v6437_v27  ;;  %v6216_v33 = vpop.eup %6215 }
0x1073   :  { %5984 = vmatmul.mubr.msk.bf16.vlgmr.msra.gmra.mrb[40].mxu0 %vm1110_vm5, %v4479_v53  ;;  %v6218_v19 = vpop.eup %6217  ;;  %v4473_v15 = vmul.f32 %v6216_v33, %v7161_v10 }
0x1074   :  { %v3697_v9 = vcombine.low %v3329_v34, %v3336_v30  ;;  %v5626_v5 = vcombine.high %v3329_v34, %v3336_v30  ;;  %v3713_v25 = vcombine.low %v3345_v47, %v3352_v41  ;;  %5995 = vmatprep.mubr.msk.bf16.mxu0 %vm6262_vm0, %v6261_v6  ;;  %v5627_v36 = vcombine.high %v3345_v47, %v3352_v41 }
0x1075   :  { %v4474_v3 = vmul.f32 %v6218_v19, %v7159_v38  ;;  %v4481_v12 = vpack.c.bf16 %v4473_v15, %v4473_v15 }
0x1076   :  { %v3704_v48 = vrot.slane %v3697_v9, %v6434_v20  ;;  %v3712_v39 = vrot.slane %v5626_v5, %v6434_v20  ;;  %v3720_v28 = vrot.slane %v3713_v25, %v6434_v20  ;;  %v3728_v49 = vrot.slane %v5627_v36, %v6434_v20 }
0x1077   :  { %5990 = vmatmul.mubr.msk.bf16.vlgmr.msra.gmra.mrb[60].mxu1 %vm1110_vm5, %v4480_v60  ;;  %v4482_v24 = vpack.c.bf16 %v4474_v3, %v4474_v3 }
0x1078   :  { %v3729_v51 = vcombine.low %v3704_v48, %v3712_v39  ;;  %6001 = vmatprep.mubr.msk.bf16.mxu1 %vm6262_vm0, %v6261_v6  ;;  %v3730_v57 = vcombine.high %v3704_v48, %v3712_v39  ;;  %v3745_v59 = vcombine.low %v3720_v28, %v3728_v49  ;;  %v3746_v23 = vcombine.high %v3720_v28, %v3728_v49 }
0x107a   :  { %v3737_v63 = vrot.slane %v3729_v51, %v6437_v27  ;;  %v3744_v4 = vrot.slane %v3730_v57, %v6437_v27  ;;  %v3753_v18 = vrot.slane %v3745_v59, %v6437_v27  ;;  %v3760_v40 = vrot.slane %v3746_v23, %v6437_v27 }
0x107c   :  { %v3761_v7 = vcombine.low %v3737_v63, %v3753_v18  ;;  %v3762_v46 = vcombine.high %v3737_v63, %v3753_v18  ;;  %v3763_v2 = vcombine.low %v3744_v4, %v3760_v40  ;;  %v3764_v17 = vcombine.high %v3744_v4, %v3760_v40 }
0x107e   :  { %v4489_v44 = vpack.c.bf16 %v3761_v7, %v3761_v7  ;;  %v4490_v45 = vpack.c.bf16 %v3762_v46, %v3762_v46  ;;  %v4491_v0 = vpack.c.bf16 %v3763_v2, %v3763_v2  ;;  %v4492_v50 = vpack.c.bf16 %v3764_v17, %v3764_v17 }
0x1080   :  { %v4681_v1 = vsel %vm1842_vm7, %v4489_v44, 0  ;;  %v4727_v52 = vsel %vm1842_vm7, %v4490_v45, 0  ;;  %v4773_v38 = vsel %vm1842_vm7, %v4491_v0, 0  ;;  %v4819_v10 = vsel %vm1842_vm7, %v4492_v50, 0 }
0x1081   :  { %5994 = vmatpush3.bf16.msra.mxu0 %v4681_v1  ;;  %6000 = vmatpush3.bf16.msra.mxu1 %v4727_v52 }
0x1082   :  { %6005 = vmatprep.subr.bf16.mxu0 %v6261_v6  ;;  %6011 = vmatprep.subr.bf16.mxu1 %v6261_v6 }
0x1084   :  { %5996 = vmatmul.mubr.msk.bf16.vlgmr.msra.gmra.mrb[44].mxu0 %vm1110_vm5, %v4481_v12  ;;  %6002 = vmatmul.mubr.msk.bf16.vlgmr.msra.gmra.mrb[64].mxu1 %vm1110_vm5, %v4482_v24 }
0x1085   :  { %6006 = vmatpush3.bf16.msra.mxu0 %v4773_v38  ;;  %6012 = vmatpush3.bf16.msra.mxu1 %v4819_v10 }
0x1086   :  { %6007 = vmatprep.mubr.msk.bf16.mxu0 %vm6262_vm0, %v6261_v6  ;;  %6013 = vmatprep.mubr.msk.bf16.mxu1 %vm6262_vm0, %v6261_v6 }
0x1087   :  { %6017 = vmatprep.subr.bf16.mxu0 %v6261_v6  ;;  %6025 = vmatprep.subr.bf16.mxu1 %v6261_v6 }
0x109c   :  { %v4460_v14 = vpop.xlane.xlu0 %4459  ;;  %v4457_v42 = vpop.xlane.xlu1 %4456 }
0x109d   :  { %6219 = vrcp.f32 %v4460_v14 }
0x109e   :  { %6221 = vrcp.f32 %v4457_v42 }
0x10a0   :  { %v5169_v35 = vpop.permute.xlu0 %5168 }
0x10a7   :  { %v6220_v13 = vpop.eup %6219 }
0x10a8   :  { %v6222_v11 = vpop.eup %6221  ;;  %v4476_v8 = vmul.f32 %v6220_v13, %v7174_v62 }
0x10a9   :  { %v4475_v26 = vmul.f32 %v6222_v11, %v7172_v43 }
0x10aa   :  { %v4484_v29 = vpack.c.bf16 %v4476_v8, %v4476_v8 }
0x10ab   :  { %v4483_v32 = vpack.c.bf16 %v4475_v26, %v4475_v26 }
0x10ac   :  { %6014 = vmatmul.mubr.msk.bf16.vlgmr.msra.gmra.mrb[68].mxu1 %vm1110_vm5, %v4484_v29 }
0x10ad   :  { %6008 = vmatmul.mubr.msk.bf16.vlgmr.msra.gmra.mrb[48].mxu0 %vm1110_vm5, %v4483_v32  ;;  %6029 = vmatprep.mubr.msk.bf16.mxu1 %vm6262_vm0, %v6261_v6 }
0x10ae   :  { %6021 = vmatprep.mubr.msk.bf16.mxu0 %vm6262_vm0, %v6261_v6  ;;  %6018 = vmatpush3.bf16.msra.mxu0 %v5169_v35 }
0x10af   :  { %6019 = vmatprep.subr.bf16.mxu0 %v6261_v6 }
0x1130   :  { %v4533_v53 = vpop.f32.mrb[36].mxu0 }
0x1131   :  { %v5973_v62 = vpop.f32.mrb[37].mxu0 }
0x1132   :  { %v4536_v34 = vpop.f32.mrb[38].mxu0 }
0x1133   :  { %v5974_v43 = vpop.f32.mrb[39].mxu0 }
0x1142   :  { %v4579_v30 = vpop.f32.mrb[56].mxu1 }
0x1143   :  { %v5979_v47 = vpop.f32.mrb[57].mxu1 }
0x1144   :  { %v4582_v41 = vpop.f32.mrb[58].mxu1 }
0x1145   :  { %v5980_v9 = vpop.f32.mrb[59].mxu1 }
0x1146   :  { %v4625_v5 = vpop.f32.mrb[40].mxu0 }
0x1147   :  { %v4861_v25 = vcombine.low %v4533_v53, %v4625_v5  ;;  %v4862_v36 = vcombine.high %v4533_v53, %v4625_v5  ;;  %v5985_v60 = vpop.f32.mrb[41].mxu0 }
0x1148   :  { %v4628_v48 = vpop.f32.mrb[42].mxu0 }
0x1149   :  { %v5986_v39 = vpop.f32.mrb[43].mxu0  ;;  %v4869_v59 = vrot.slane %v4861_v25, %v6434_v20  ;;  %v4876_v23 = vrot.slane %v4862_v36, %v6434_v20 }
0x114a   :  { %v4671_v28 = vpop.f32.mrb[60].mxu1 }
0x114b   :  { %v4877_v49 = vcombine.low %v4579_v30, %v4671_v28  ;;  %v4878_v51 = vcombine.high %v4579_v30, %v4671_v28  ;;  %v5991_v57 = vpop.f32.mrb[61].mxu1 }
0x114c   :  { %v4674_v33 = vpop.f32.mrb[62].mxu1 }
0x114d   :  { %v4885_v63 = vrot.slane %v4877_v49, %v6434_v20  ;;  %v4892_v4 = vrot.slane %v4878_v51, %v6434_v20  ;;  %v5992_v19 = vpop.f32.mrb[63].mxu1 }
0x114f   :  { %v4893_v18 = vcombine.low %v4869_v59, %v4885_v63  ;;  %v4894_v40 = vcombine.high %v4869_v59, %v4885_v63  ;;  %v4909_v7 = vcombine.low %v4876_v23, %v4892_v4  ;;  %v4910_v46 = vcombine.high %v4876_v23, %v4892_v4 }
0x1151   :  { %v4901_v2 = vrot.slane %v4893_v18, %v6437_v27  ;;  %v4908_v17 = vrot.slane %v4894_v40, %v6437_v27  ;;  %v4917_v15 = vrot.slane %v4909_v7, %v6437_v27  ;;  %v4924_v3 = vrot.slane %v4910_v46, %v6437_v27 }
0x1153   :  { %v4997_v44 = vcombine.low %v4901_v2, %v4908_v17  ;;  %v5652_v45 = vcombine.high %v4901_v2, %v4908_v17  ;;  %v5013_v1 = vcombine.low %v4917_v15, %v4924_v3  ;;  %v5653_v52 = vcombine.high %v4917_v15, %v4924_v3 }
0x1155   :  { %v5004_v0 = vrot.slane %v4997_v44, %v6434_v20  ;;  %v5012_v50 = vrot.slane %v5652_v45, %v6434_v20  ;;  %v5020_v12 = vrot.slane %v5013_v1, %v6434_v20  ;;  %v5028_v24 = vrot.slane %v5653_v52, %v6434_v20 }
0x1157   :  { %v5030_v38 = vcombine.high %v5004_v0, %v5012_v50  ;;  %v5046_v10 = vcombine.high %v5020_v12, %v5028_v24  ;;  %v5029_v14 = vcombine.low %v5004_v0, %v5012_v50  ;;  %v5045_v42 = vcombine.low %v5020_v12, %v5028_v24  ;;  %v4717_v13 = vpop.f32.mrb[44].mxu0  ;;  %v4763_v11 = vpop.f32.mrb[64].mxu1 }
0x1158   :  { %v5997_v8 = vpop.f32.mrb[45].mxu0  ;;  %v6003_v26 = vpop.f32.mrb[65].mxu1 }
0x1159   :  { %v5044_v29 = vrot.slane %v5030_v38, %v6437_v27  ;;  %v5060_v32 = vrot.slane %v5046_v10, %v6437_v27  ;;  %v7259_v35 = vrot.slane %v5029_v14, %v6437_v27  ;;  %v7262_v53 = vrot.slane %v5045_v42, %v6437_v27  ;;  %v4720_v62 = vpop.f32.mrb[46].mxu0  ;;  %v4766_v34 = vpop.f32.mrb[66].mxu1 }
0x115a   :  { %v5998_v43 = vpop.f32.mrb[47].mxu0  ;;  %v6004_v30 = vpop.f32.mrb[67].mxu1 }
0x115b   :  { %v5064_v47 = vcombine.high %v5044_v29, %v5060_v32  ;;  %v5062_v41 = vcombine.high %v7259_v35, %v7262_v53  ;;  %v5063_v9 = vcombine.low %v5044_v29, %v5060_v32  ;;  %v5061_v5 = vcombine.low %v7259_v35, %v7262_v53  ;;  %v7307_v35 = vld [vmem:[%s7423_s3 + $0x8] sm:$0xff] }
0x115c   :  { %v5167_v53 = vrot.slane %v7307_v35, %v2515_v31 }
0x117f   :  { %v4855_v25 = vpop.f32.mrb[68].mxu1 }
0x1180   :  { %v4809_v36 = vpop.f32.mrb[48].mxu0  ;;  %v4945_v60 = vcombine.low %v4763_v11, %v4855_v25  ;;  %v4946_v48 = vcombine.high %v4763_v11, %v4855_v25  ;;  %v6015_v39 = vpop.f32.mrb[69].mxu1 }
0x1181   :  { %v4929_v28 = vcombine.low %v4717_v13, %v4809_v36  ;;  %v4930_v49 = vcombine.high %v4717_v13, %v4809_v36  ;;  %v6009_v51 = vpop.f32.mrb[49].mxu0  ;;  %v4858_v57 = vpop.f32.mrb[70].mxu1 }
0x1182   :  { %v4953_v33 = vrot.slane %v4945_v60, %v6434_v20  ;;  %v4960_v59 = vrot.slane %v4946_v48, %v6434_v20  ;;  %v4812_v23 = vpop.f32.mrb[50].mxu0  ;;  %v6016_v63 = vpop.f32.mrb[71].mxu1 }
0x1183   :  { %v4937_v4 = vrot.slane %v4929_v28, %v6434_v20  ;;  %v4944_v19 = vrot.slane %v4930_v49, %v6434_v20  ;;  %v6010_v18 = vpop.f32.mrb[51].mxu0 }
0x1185   :  { %v4961_v40 = vcombine.low %v4937_v4, %v4953_v33  ;;  %v4962_v7 = vcombine.high %v4937_v4, %v4953_v33  ;;  %v4977_v46 = vcombine.low %v4944_v19, %v4960_v59  ;;  %v4978_v2 = vcombine.high %v4944_v19, %v4960_v59 }
0x1187   :  { %v4969_v17 = vrot.slane %v4961_v40, %v6437_v27  ;;  %v4976_v15 = vrot.slane %v4962_v7, %v6437_v27  ;;  %v4985_v3 = vrot.slane %v4977_v46, %v6437_v27  ;;  %v4992_v44 = vrot.slane %v4978_v2, %v6437_v27 }
0x1189   :  { %v5065_v45 = vcombine.low %v4969_v17, %v4976_v15  ;;  %v5654_v1 = vcombine.high %v4969_v17, %v4976_v15  ;;  %v5081_v52 = vcombine.low %v4985_v3, %v4992_v44  ;;  %v5655_v0 = vcombine.high %v4985_v3, %v4992_v44 }
0x118b   :  { %v5072_v50 = vrot.slane %v5065_v45, %v6434_v20  ;;  %v5080_v12 = vrot.slane %v5654_v1, %v6434_v20  ;;  %v5088_v24 = vrot.slane %v5081_v52, %v6434_v20  ;;  %v5096_v38 = vrot.slane %v5655_v0, %v6434_v20  ;;  %v6234_v20 = vld [vmem:[%s7421_s1 + $0x30] ss:$8 sps:$4 sm:$0xff]  }
0x118d   :  { %v5098_v10 = vcombine.high %v5072_v50, %v5080_v12  ;;  %v5114_v14 = vcombine.high %v5088_v24, %v5096_v38  ;;  %v5097_v42 = vcombine.low %v5072_v50, %v5080_v12  ;;  %v5113_v13 = vcombine.low %v5088_v24, %v5096_v38  ;;  %v6137_v38 = vld [vmem:[%s7421_s1 + $0x24] ss:$8 sps:$4 sm:$0xff]  }
0x118e   :  { %6026 = vmatpush3.bf16.msra.mxu1 %v6137_v38  ;;  %v33_v38 = vld [vmem:[%s7420_s0 + $0x50] sm:$0xff] }
0x118f   :  { %v5112_v11 = vrot.slane %v5098_v10, %v6437_v27  ;;  %v5128_v8 = vrot.slane %v5114_v14, %v6437_v27  ;;  %v5105_v26 = vrot.slane %v5097_v42, %v6437_v27  ;;  %v5121_v29 = vrot.slane %v5113_v13, %v6437_v27  ;;  %v6138_v10 = vld [vmem:[%s7421_s1 + $0x34] ss:$8 sps:$4 sm:$0xff]   ;;  %6027 = vmatprep.subr.bf16.mxu1 %v6261_v6  ;;  %v6139_v14 = vld [vmem:[%s7422_s2 + $0x40] sm:$0xff]   ;;  %v6140_v42 = vld [vmem:[%s7422_s2 + $0x48] sm:$0xff]  }
0x1190   :  { %v6141_v13 = vld [vmem:[%s7422_s2 + $0x50] sm:$0xff]  }
0x1191   :  { %v5132_v32 = vcombine.high %v5112_v11, %v5128_v8  ;;  %v5130_v62 = vcombine.high %v5105_v26, %v5121_v29  ;;  %v5131_v34 = vcombine.low %v5112_v11, %v5128_v8  ;;  %v5129_v43 = vcombine.low %v5105_v26, %v5121_v29  ;;  %v6142_v11 = vld [vmem:[%s7422_s2 + $0x58] sm:$0xff]   ;;  %v6143_v8 = vld [vmem:[%s7422_s2 + $0x60] sm:$0xff]   ;;  %v6144_v26 = vld [vmem:[%s7422_s2 + $0x68] sm:$0xff]  }
0x1192   :  { %6028 = vmatpush3.bf16.msra.mxu1 %v6138_v10 }
0x1193   :  { %v6114_v30 = vpack.i.bf16 %v5132_v32, %v5064_v47  ;;  %v6104_v25 = vpack.i.bf16 %v5130_v62, %v5062_v41  ;;  %v6109_v36 = vpack.i.bf16 %v5131_v34, %v5063_v9  ;;  %6053 = vmatprep.subr.bf16.mxu1 %v6261_v6 }
0x1195   :  { %6115 = vrot.lane.b32.xlu0 %v6114_v30, %s6280_s9  ;;  %6105 = vrot.lane.b32.xlu1 %v6104_v25, %s6279_s8 }
0x1199   :  { %6110 = vrot.lane.b32.xlu1 %v6109_v36, %s6278_s7  ;;  %v5249_v36 = vrot.slane %v7307_v35, %v6837_v16 }
0x119d   :  { %5170 = vrot.lane.b32.xlu1 %v6234_v20, %s6277_s6 }
0x1207   :  { %v6106_v27 = vpop.permute.xlu1 %6105  ;;  %v6116_v39 = vpop.permute.xlu0 %6115 }
0x1208   :  { %v6108_v60 = vunpack.i.h.bf16 %v6106_v27  ;;  %v6107_v48 = vunpack.i.l.bf16 %v6106_v27  ;;  %v6118_v9 = vunpack.i.h.bf16 %v6116_v39  ;;  %v6117_v49 = vunpack.i.l.bf16 %v6116_v39 }
0x1209   :  { %v5255_v39 = vrot.slane %v7307_v35, %v2603_v22  ;;  %v5262_v22 = vrot.slane %v7307_v35, %v2610_v37 }
0x120a   :  { %v5157_v51 = vsel %vm1110_vm5, %v5061_v5, %v6107_v48  ;;  %v5158_v57 = vsel %vm1110_vm5, %v5129_v43, %v6108_v60 }
0x120b   :  { %v6111_v28 = vpop.permute.xlu1 %6110 }
0x120c   :  { %v6113_v47 = vunpack.i.h.bf16 %v6111_v28  ;;  %v6112_v41 = vunpack.i.l.bf16 %v6111_v28 }
0x120e   :  { %v5159_v33 = vsel %vm2506_vm8, %v5157_v51, %v6112_v41  ;;  %v5160_v59 = vsel %vm2506_vm8, %v5158_v57, %v6113_v47  ;;  %v6146_v51 = vld [vmem:[%s7422_s2 + $0x78] sm:$0xff]  }
0x120f   :  { %v5161_v23 = vsel %vm2509_vm9, %v5159_v33, %v6117_v49  ;;  %v5162_v63 = vsel %vm2509_vm9, %v5160_v59, %v6118_v9  ;;  %v5171_v4 = vpop.permute.xlu1 %5170  ;;  %v6145_v49 = vld [vmem:[%s7422_s2 + $0x70] sm:$0xff]  }
0x1210   :  { %v5163_v19 = vpack.c.bf16 %v5162_v63, %v5161_v23  ;;  %6020 = vmatpush3.bf16.msra.mxu0 %v5171_v4 }
0x1211   :  { %6033 = vmatprep.subr.bf16.mxu0 %v6261_v6 }
0x1213   :  { %6022 = vmatmul.mubr.msk.bf16.vlgmr.msra.gmra.mrb[52].mxu0 %vm129_vm4, %v5163_v19 }
0x1214   :  { %6049 = vmatprep.mubr.msk.bf16.mxu0 %vm6262_vm0, %v6261_v6  ;;  %6034 = vmatpush3.bf16.msra.mxu0 %v6139_v14  ;;  %v34_v14 = vld [vmem:[%s7420_s0 + $0x58] sm:$0xff] }
0x1215   :  { %6035 = vmatprep.subr.bf16.mxu0 %v6261_v6 }
0x1218   :  { %6036 = vmatpush3.bf16.msra.mxu0 %v6140_v42  ;;  %v36_v42 = vpack.c.bf16 %v34_v14, %v33_v38 }
0x1219   :  { %6037 = vmatprep.subr.bf16.mxu0 %v6261_v6 }
0x121c   :  { %6038 = vmatpush3.bf16.msra.mxu0 %v6141_v13 }
0x121d   :  { %6039 = vmatprep.subr.bf16.mxu0 %v6261_v6 }
0x1220   :  { %6040 = vmatpush3.bf16.msra.mxu0 %v6142_v11 }
0x1221   :  { %6041 = vmatprep.subr.bf16.mxu0 %v6261_v6 }
0x1224   :  { %6042 = vmatpush3.bf16.msra.mxu0 %v6143_v8 }
0x1225   :  { %6043 = vmatprep.subr.bf16.mxu0 %v6261_v6 }
0x1228   :  { %6044 = vmatpush3.bf16.msra.mxu0 %v6144_v26 }
0x1229   :  { %6045 = vmatprep.subr.bf16.mxu0 %v6261_v6 }
0x122c   :  { %6046 = vmatpush3.bf16.msra.mxu0 %v6145_v49 }
0x122d   :  { %6047 = vmatprep.subr.bf16.mxu0 %v6261_v6 }
0x1230   :  { %6048 = vmatpush3.bf16.msra.mxu0 %v6146_v51 }
0x12e6   :  { %v5211_v5 = vpop.f32.mrb[52].mxu0 }
0x12e7   :  { %v5212_v18 = vadd.f32 %v5211_v5, %v5167_v53  ;;  %v6023_v40 = vpop.f32.mrb[53].mxu0 }
0x12e8   :  { %v5214_v7 = vpop.f32.mrb[54].mxu0 }
0x12e9   :  { %v7313_v46 = vadd.f32 %v5212_v18, %v6867_v54  ;;  %v5215_v2 = vadd.f32 %v5214_v7, %v5167_v53  ;;  %v6024_v17 = vpop.f32.mrb[55].mxu0  ;;  %v5321_v18 = vrot.slane %v7307_v35, %v2669_v21 }
0x12eb   :  { %v7316_v15 = vadd.f32 %v5215_v2, %v6870_v58  ;;  %v5220_v3 = vsel %vm129_vm4, %v7313_v46, 0.0 }
0x12ec   :  { %5221 = vadd.xlane.f32.xlu0 %v5220_v3 }
0x12ed   :  { %v5223_v44 = vsel %vm129_vm4, %v7316_v15, 0.0 }
0x12ee   :  { %5224 = vadd.xlane.f32.xlu1 %v5223_v44 }
0x1379   :  { %v5222_v31 = vpop.xlane.xlu0 %5221 }
0x137a   :  { %v5226_v45 = vmul.f32 0.03125, %v5222_v31 }
0x137b   :  { %v5225_v1 = vpop.xlane.xlu1 %5224 }
0x137c   :  { %v5228_v52 = vsub.f32 %v7313_v46, %v5226_v45  ;;  %v5227_v54 = vmul.f32 0.03125, %v5225_v1 }
0x137e   :  { %v5229_v0 = vsub.f32 %v7316_v15, %v5227_v54  ;;  %v5230_v50 = vmul.f32 %v5228_v52, %v5228_v52 }
0x1380   :  { %v5232_v58 = vsel %vm129_vm4, %v5230_v50, 0.0  ;;  %v5231_v12 = vmul.f32 %v5229_v0, %v5229_v0 }
0x1381   :  { %5233 = vadd.xlane.f32.xlu0 %v5232_v58 }
0x1382   :  { %v5235_v24 = vsel %vm129_vm4, %v5231_v12, 0.0 }
0x1385   :  { %5236 = vadd.xlane.f32.xlu0 %v5235_v24  ;;  %v32_v24 = vld [vmem:[%s7420_s0 + $0x48] sm:$0xff] }
0x140e   :  { %v5234_v29 = vpop.xlane.xlu0 %5233 }
0x140f   :  { %v5238_v32 = vmul.f32 0.03125, %v5234_v29 }
0x1411   :  { %v5240_v62 = vadd.f32 1e-05, %v5238_v32 }
0x1412   :  { %v5237_v34 = vpop.xlane.xlu0 %5236 }
0x1413   :  { %6223 = vrsqrt.f32 %v5240_v62  ;;  %v5239_v43 = vmul.f32 0.03125, %v5237_v34  ;;  %v37_v62 = vld [vmem:[%s7420_s0 + $0x60] sm:$0xff] }
0x1414   :  { %v5442_v34 = vrot.slane %v37_v62, %v6393_v61 }
0x1415   :  { %v5241_v30 = vadd.f32 1e-05, %v5239_v43 }
0x1417   :  { %6225 = vrsqrt.f32 %v5241_v30 }
0x141d   :  { %v6224_v25 = vpop.eup %6223 }
0x141e   :  { %v5244_v20 = vmul.f32 %v6224_v25, %v5228_v52 }
0x1420   :  { %v5250_v60 = vmul.f32 %v5249_v36, %v5244_v20  ;;  %v5448_v20 = vrot.slane %v37_v62, %v6837_v16 }
0x1421   :  { %v6226_v27 = vpop.eup %6225 }
0x1422   :  { %v5245_v48 = vmul.f32 %v6226_v27, %v5229_v0  ;;  %v5256_v47 = vadd.f32 %v5255_v39, %v5250_v60 }
0x1424   :  { %v5251_v28 = vmul.f32 %v5249_v36, %v5245_v48 }
0x1426   :  { %v5257_v41 = vadd.f32 %v5255_v39, %v5251_v28  ;;  %v5455_v28 = vrot.slane %v37_v62, %v6386_v56 }
0x1428   :  { %v5258_v9 = vpack.c.bf16 %v5257_v41, %v5256_v47 }
0x142a   :  { %6030 = vmatmul.mubr.msk.bf16.vlgmr.msra.gmra.mrb[72].mxu1 %vm129_vm4, %v5258_v9 }
0x142b   :  { %6057 = vmatprep.mubr.msk.bf16.mxu1 %vm6262_vm0, %v6261_v6 }
0x14fd   :  { %v5308_v57 = vpop.f32.mrb[72].mxu1 }
0x14fe   :  { %v5309_v33 = vadd.f32 %v5308_v57, %v5262_v22  ;;  %v6031_v59 = vpop.f32.mrb[73].mxu1 }
0x14ff   :  { %v5311_v23 = vpop.f32.mrb[74].mxu1 }
0x1500   :  { %v5312_v63 = vadd.f32 %v5311_v23, %v5262_v22  ;;  %v6032_v4 = vpop.f32.mrb[75].mxu1  ;;  %v5315_v19 = vmax.f32 %v5309_v33, 0.0 }
0x1502   :  { %v5316_v53 = vmax.f32 %v5312_v63, 0.0 }
0x1504   :  { %v5317_v5 = vpack.c.bf16 %v5316_v53, %v5315_v19 }
0x1506   :  { %6050 = vmatmul.mubr.bf16.vlgmr.msra.gmra.mrb[56].mxu0 %v5317_v5 }
0x15d9   :  { %v5404_v40 = vpop.f32.mrb[56].mxu0 }
0x15da   :  { %v5405_v7 = vadd.f32 %v5404_v40, %v5321_v18  ;;  %v6051_v2 = vpop.f32.mrb[57].mxu0 }
0x15db   :  { %v5407_v17 = vpop.f32.mrb[58].mxu0 }
0x15dc   :  { %v5411_v37 = vadd.f32 %v5405_v7, %v7313_v46  ;;  %v5408_v3 = vadd.f32 %v5407_v17, %v5321_v18  ;;  %v6052_v44 = vpop.f32.mrb[59].mxu0 }
0x15de   :  { %v5412_v31 = vadd.f32 %v5408_v3, %v7316_v15  ;;  %v5413_v45 = vsel %vm129_vm4, %v5411_v37, 0.0  ;;  %v31_v15 = vld [vmem:[%s7420_s0 + $0x40] sm:$0xff]  ;;  %s5507_s0 = sshll.u32 %s6281_s24, 4  ;;  %s5508_s0 = int_to_ptr.vmem [resolvable:$true] %s5507_s0 }
0x15df   :  { %5414 = vadd.xlane.f32.xlu1 %v5413_v45  ;;  %v35_v10 = vpack.c.bf16 %v32_v24, %v31_v15  ;;  %s6236_s25 = scalar_lea.vmem %s5508_s0, 256  ;;  %p6241_p1 = scmp.lt.s32.totalorder %s5508_s0, %s5508_s0 }
0x15e0   :  { %v5416_v1 = vsel %vm129_vm4, %v5412_v31, 0.0  ;;  %p6237_p0 = scmp.ne.s32.totalorder %s5508_s0, %s6236_s25  ;;  %p6242_p2 = scmp.lt.s32.totalorder %s6236_s25, %s6236_s25 }
0x15e1   :  { %5417 = vadd.xlane.f32.xlu0 %v5416_v1  ;;  %6054 = vmatpush3.bf16.msra.mxu1 %v35_v10 }
0x15e2   :  { %6055 = vmatprep.subr.bf16.mxu1 %v6261_v6  ;;  %p6243_p3 = por %p6242_p2, %p6241_p1 }
0x15e4   :  { %p6244_p4 = pnand %p6243_p3, %p6237_p0 }
0x15e5   :  { %6056 = vmatpush3.bf16.msra.mxu1 %v36_v42 }
0x166c   :  { %v5415_v52 = vpop.xlane.xlu1 %5414 }
0x166d   :  { %v5419_v55 = vmul.f32 0.03125, %v5415_v52 }
0x166e   :  { %v5418_v54 = vpop.xlane.xlu0 %5417 }
0x166f   :  { %v5421_v21 = vsub.f32 %v5411_v37, %v5419_v55  ;;  %v5420_v35 = vmul.f32 0.03125, %v5418_v54 }
0x1671   :  { %v5422_v0 = vsub.f32 %v5412_v31, %v5420_v35  ;;  %v5423_v50 = vmul.f32 %v5421_v21, %v5421_v21 }
0x1673   :  { %v5425_v58 = vsel %vm129_vm4, %v5423_v50, 0.0  ;;  %v5424_v46 = vmul.f32 %v5422_v0, %v5422_v0 }
0x1674   :  { %5426 = vadd.xlane.f32.xlu1 %v5425_v58 }
0x1675   :  { %v5428_v12 = vsel %vm129_vm4, %v5424_v46, 0.0 }
0x1676   :  { %5429 = vadd.xlane.f32.xlu0 %v5428_v12 }
0x1701   :  { %v5427_v13 = vpop.xlane.xlu1 %5426 }
0x1702   :  { %v5431_v11 = vmul.f32 0.03125, %v5427_v13 }
0x1703   :  { %v5430_v8 = vpop.xlane.xlu0 %5429 }
0x1704   :  { %v5433_v26 = vadd.f32 1e-05, %v5431_v11  ;;  %v5432_v29 = vmul.f32 0.03125, %v5430_v8 }
0x1706   :  { %6227 = vrsqrt.f32 %v5433_v26  ;;  %v5434_v32 = vadd.f32 1e-05, %v5432_v29 }
0x1708   :  { %6229 = vrsqrt.f32 %v5434_v32 }
0x1710   :  { %v6228_v43 = vpop.eup %6227 }
0x1711   :  { %v5437_v30 = vmul.f32 %v6228_v43, %v5421_v21 }
0x1712   :  { %v6230_v25 = vpop.eup %6229 }
0x1713   :  { %v5443_v36 = vmul.f32 %v5442_v34, %v5437_v30  ;;  %v5438_v6 = vmul.f32 %v6230_v25, %v5422_v0 }
0x1715   :  { %v5444_v27 = vmul.f32 %v5442_v34, %v5438_v6  ;;  %v5449_v60 = vadd.f32 %v5448_v20, %v5443_v36 }
0x1717   :  { %v5450_v48 = vadd.f32 %v5448_v20, %v5444_v27 }
0x1719   :  { %v5451_v39 = vpack.c.bf16 %v5450_v48, %v5449_v60 }
0x171b   :  { %6058 = vmatmul.mubr.msk.bf16.vlgmr.msra.gmra.mrb[76].mxu1 %vm129_vm4, %v5451_v39 }
0x17ee   :  { %v5493_v47 = vpop.f32.mrb[76].mxu1 }
0x17ef   :  { %v5494_v41 = vadd.f32 %v5493_v47, %v5455_v28  ;;  %v6059_v61 = vpop.f32.mrb[77].mxu1 }
0x17f0   :  { %v5496_v9 = vpop.f32.mrb[78].mxu1 }
0x17f1   :  { %5500 = vst.msk [vmem:[#allocation2] sm:$0xff] %vm59_vm3, %v5494_v41  ;;  %v5497_v49 = vadd.f32 %v5496_v9, %v5455_v28  ;;  %v6060_v51 = vpop.f32.mrb[79].mxu1 }
0x17f3   :  { %5501 = vst.msk [vmem:[#allocation2 + $0x8] sm:$0xff] %vm59_vm3, %v5497_v49 }
0x17f4   :  { %6247 = shalt.err (!%p6244_p4)
}
0x17f5   :  { %s6248_s28 = scalar_lea.hbm %s7424_s4, 256 }
0x17f6   :  { %p6249_p5 = scmp.ne.s32.totalorder %s7424_s4, %s6248_s28  ;;  %p6252_p6 = scmp.lt.u32.totalorder %s6248_s28, %s7424_s4 }
0x17f8   :  { %p6254_p7 = pnand %p6252_p6, %p6249_p5 }
0x17fa   :  { %6257 = shalt.err (!%p6254_p7)
}
0x17fb   :  { %s6282_s9 = smov 128  }
0x17fc   :  { %5513 = dma.vmem_to_hbm [thread:$0]  %s5508_s0, 256, %s7424_s4, [#allocation3], %s6282_s9, %s6282_s9, %s6279_s8  }
0x17fd   :  { %6258 = dma.done.wait [#allocation3], 256  }
0x17fe   :  { %6259 = vsyncadd [#allocation3], 4294967040 }
0x17ff   :  { %5517 = vsyncpa [#allocation3], 1 }

</bundles_post_ra>
